<compile_context>
chip_gen: v7x
topology: tpu7x:2x2x1
jax: 0.10.0
libtpu: 0.0.40
codegen_flags: <defaults>
</compile_context>

<pallas_src>
import jax
import jax.numpy as jnp
from jax.experimental import pallas as pl
from jax.experimental.pallas import tpu as pltpu


N_LAYERS = 8  # 4 encoder linears + 4 decoder linears


# ----------------------------- Pallas kernel ---------------------------------

def _vanilla_ae_kernel(x_ref, *refs):
    """refs = (w0..w7 [bf16], b0..b7 [f32], recon_ref, latent_ref).

    Encoder: Linear+ReLU x3, Linear (identity) -> latent
    Decoder: Linear+ReLU x3, Linear+Sigmoid   -> reconstruction
    """
    w_refs = refs[:N_LAYERS]
    b_refs = refs[N_LAYERS:2 * N_LAYERS]
    recon_ref, latent_ref = refs[2 * N_LAYERS:]

    h = x_ref[...]                                  # bf16, straight into MXU

    # ---- Encoder (layers 0..3) ----
    for i in range(4):
        acc = jnp.dot(h, w_refs[i][...], preferred_element_type=jnp.float32)
        acc = acc + b_refs[i][...]                  # f32 epilogue
        if i < 3:                                   # ReLU on hidden layers only
            acc = jnp.maximum(acc, 0.0)
        h = acc.astype(jnp.bfloat16)                # carry bf16 between layers
    latent_ref[...] = h.astype(latent_ref.dtype)

    # ---- Decoder (layers 4..7) ----
    for i in range(4, 8):
        acc = jnp.dot(h, w_refs[i][...], preferred_element_type=jnp.float32)
        acc = acc + b_refs[i][...]
        if i < 7:                                   # ReLU on hidden layers
            h = jnp.maximum(acc, 0.0).astype(jnp.bfloat16)
        else:                                       # Sigmoid on the output layer
            recon_ref[...] = jax.nn.sigmoid(acc).astype(recon_ref.dtype)


# ----------------------------- JAX wrapper ------------------------------------

def _round_up(x, m):
    return (x + m - 1) // m * m


def _pad2(a, rows, cols):
    return jnp.pad(a, ((0, rows - a.shape[0]), (0, cols - a.shape[1])))


def _pick_batch_tiling(B, max_tb=512):
    """(TB, n_tiles): TB multiple of 8, minimal batch padding, and >= 2 tiles
    whenever B > 8 so the batch grid axis can be sharded across 2 TensorCores
    on v7x.  max_tb caps tile size so VMEM stays comfortable on every gen."""
    if B <= 8:
        return _round_up(max(B, 1), 8), 1
    n_tiles = max(2, -(-B // max_tb))               # ceil(B / max_tb), >= 2
    tb = _round_up(-(-B // n_tiles), 8)             # ceil(B / n_tiles) -> mult of 8
    return tb, n_tiles


@jax.jit
def vanilla_autoencoder_forward(x, weights, biases):
    """x: (B, ...) flattened to (B, input_dim). Returns (reconstructed, latent) as f32."""
    B = x.shape[0]
    if x.ndim > 2:
        x = x.reshape(B, -1)
    input_dim = x.shape[1]
    latent_dim = weights[3].shape[1]

    # -------- lane-dense (multiple-of-128) padded layer dims --------
    enc_dims = [input_dim] + [w.shape[1] for w in weights[:4]]     # in,h1,h2,h3,lat
    pdims = [_round_up(d, 128) for d in enc_dims]                  # encoder padded
    pdims_rev = pdims[::-1]                                        # decoder mirrors
    layer_in = pdims[:-1] + pdims_rev[:-1]
    layer_out = pdims[1:] + pdims_rev[1:]
    in_pad, lat_pad = pdims[0], pdims[-1]

    # -------- pad & cast params: weights -> bf16, biases stay f32 --------
    w_p = [_pad2(w, pi, po).astype(jnp.bfloat16)
           for w, pi, po in zip(weights, layer_in, layer_out)]
    b_p = [_pad2(b, 1, po).astype(jnp.float32)
           for b, po in zip(biases, layer_out)]

    # -------- batch tiling (>=2 tiles for megacore, minimal padding) --------
    TB, n_tiles = _pick_batch_tiling(B, max_tb=512)
    B_pad = TB * n_tiles
    grid = (n_tiles,)

    # bf16 input: x is consumed by a bf16 matmul anyway; no f32 copy in HBM/VMEM.
    x_p = jnp.pad(x.astype(jnp.bfloat16),
                  ((0, B_pad - B), (0, in_pad - input_dim)))

    act_spec = lambda d: pl.BlockSpec((TB, d), lambda i: (i, 0))
    # Constant index_map -> block never changes -> weights stay resident, no re-DMA.
    resident = lambda shape: pl.BlockSpec(shape, lambda i: (0, 0))

    in_specs = ([act_spec(in_pad)]
                + [resident(w.shape) for w in w_p]
                + [resident(b.shape) for b in b_p])
    out_specs = (act_spec(in_pad), act_spec(lat_pad))
    # bf16 outputs: halves writeback bytes; upcast to f32 after slicing below.
    out_shape = (jax.ShapeDtypeStruct((B_pad, in_pad), jnp.bfloat16),   # recon
                 jax.ShapeDtypeStruct((B_pad, lat_pad), jnp.bfloat16))  # latent

    # -------- scheduler hint --------
    flops = 2 * B_pad * sum(pi * po for pi, po in zip(layer_in, layer_out))
    bytes_accessed = (sum(int(w.size) * 2 for w in w_p)          # bf16 weights
                      + sum(int(b.size) * 4 for b in b_p)        # f32 biases
                      + B_pad * in_pad * 2 * 2                   # bf16 x in + recon out
                      + B_pad * lat_pad * 2)                     # bf16 latent out
    cost = pl.CostEstimate(flops=flops,
                           transcendentals=B_pad * in_pad,       # sigmoid on output
                           bytes_accessed=bytes_accessed)

    recon_p, latent_p = pl.pallas_call(
        _vanilla_ae_kernel,
        out_shape=out_shape,
        grid=grid,
        in_specs=in_specs,
        out_specs=out_specs,
        compiler_params=pltpu.CompilerParams(
            dimension_semantics=("parallel",),     # shard batch tiles across TCs
            vmem_limit_bytes=48 << 20,             # safe on v7x (64 MiB physical)
        ),
        cost_estimate=cost,
    )(x_p, *w_p, *b_p)

    # Strip batch + lane padding; return f32 like the PyTorch module.
    recon = recon_p[:B, :input_dim].astype(jnp.float32)
    latent = latent_p[:B, :latent_dim].astype(jnp.float32)
    return recon, latent


# ----------------------------- Parameter init ---------------------------------

def init_params(key, input_dim=784, hidden_dims=(512, 256, 128), latent_dim=64):
    """Deterministic PyTorch-style Linear init: U(-1/sqrt(fan_in), 1/sqrt(fan_in)).

    Weights are stored already transposed to (in_dim, out_dim); biases are (1, out)."""
    dims = [input_dim] + list(hidden_dims) + [latent_dim]
    layer_dims = list(zip(dims[:-1], dims[1:]))                # encoder
    layer_dims += list(zip(dims[::-1][:-1], dims[::-1][1:]))   # decoder

    weights, biases = [], []
    for (fan_in, fan_out) in layer_dims:
        key, kw, kb = jax.random.split(key, 3)
        bound = 1.0 / (fan_in ** 0.5)
        w = jax.random.uniform(kw, (fan_in, fan_out), jnp.float32, -bound, bound)
        b = jax.random.uniform(kb, (1, fan_out), jnp.float32, -bound, bound)
        weights.append(w)
        biases.append(b)
    return weights, biases


# ----------------------------- Reference ---------------------------------------

def _reference_forward(x, weights, biases):
    """Pure-JAX reference with the same bf16-matmul / f32-accumulate / bf16-carry
    numerics as the kernel."""
    if x.ndim > 2:
        x = x.reshape(x.shape[0], -1)
    h = x.astype(jnp.bfloat16)
    latent = None
    for i in range(8):
        acc = jnp.dot(h, weights[i].astype(jnp.bfloat16),
                      preferred_element_type=jnp.float32) + biases[i]
        if i < 3 or (4 <= i < 7):
            acc = jnp.maximum(acc, 0.0)
        elif i == 7:
            acc = jax.nn.sigmoid(acc)
        h = acc.astype(jnp.bfloat16)
        if i == 3:
            latent = h.astype(jnp.float32)
    recon = h.astype(jnp.float32)
    return recon, latent


# ----------------------------- Main --------------------------------------------

if __name__ == "__main__":
    key = jax.random.PRNGKey(0)
    k_x, k_p = jax.random.split(key)

    # Small MNIST-like input: batch=8, 1x28x28 -> flattened to 784 inside forward.
    x = jax.random.uniform(k_x, (8, 1, 28, 28), jnp.float32)

    weights, biases = init_params(k_p, input_dim=784,
                                  hidden_dims=(512, 256, 128), latent_dim=64)

    recon, latent = jax.block_until_ready(
        vanilla_autoencoder_forward(x, weights, biases))

    # Sanity check against a pure-JAX reference with matching numerics.
    recon_ref, latent_ref = _reference_forward(x, weights, biases)
    assert recon.shape == (8, 784) and latent.shape == (8, 64)
    assert jnp.allclose(recon, recon_ref, atol=2e-2, rtol=2e-2)
    assert jnp.allclose(latent, latent_ref, atol=2e-2, rtol=2e-2)

    print("KERNEL_OK")
</pallas_src>

<mosaic_0001>
module attributes {stable_mosaic.version = 11 : i64} {
  func.func @_vanilla_ae_kernel(%arg0: i32, %arg1: memref<8x896xbf16, #tpu.memory_space<vmem>>, %arg2: memref<896x512xbf16, #tpu.memory_space<vmem>>, %arg3: memref<512x256xbf16, #tpu.memory_space<vmem>>, %arg4: memref<256x128xbf16, #tpu.memory_space<vmem>>, %arg5: memref<128x128xbf16, #tpu.memory_space<vmem>>, %arg6: memref<128x128xbf16, #tpu.memory_space<vmem>>, %arg7: memref<128x256xbf16, #tpu.memory_space<vmem>>, %arg8: memref<256x512xbf16, #tpu.memory_space<vmem>>, %arg9: memref<512x896xbf16, #tpu.memory_space<vmem>>, %arg10: memref<1x512xf32, #tpu.memory_space<vmem>>, %arg11: memref<1x256xf32, #tpu.memory_space<vmem>>, %arg12: memref<1x128xf32, #tpu.memory_space<vmem>>, %arg13: memref<1x128xf32, #tpu.memory_space<vmem>>, %arg14: memref<1x128xf32, #tpu.memory_space<vmem>>, %arg15: memref<1x256xf32, #tpu.memory_space<vmem>>, %arg16: memref<1x512xf32, #tpu.memory_space<vmem>>, %arg17: memref<1x896xf32, #tpu.memory_space<vmem>>, %arg18: memref<8x896xbf16, #tpu.memory_space<vmem>>, %arg19: memref<8x128xbf16, #tpu.memory_space<vmem>>) attributes {dimension_semantics = [#tpu.dimension_semantics<parallel>], iteration_bounds = array<i64: 1>, scalar_prefetch = 0 : i64, scratch_operands = 0 : i64, tpu.core_type = #tpu.core_type<tc>, window_params = [{transform_indices = @transform_0, window_bounds = array<i64: 8, 896>}, {pipeline_mode = #tpu.pipeline_mode<synchronous>, transform_indices = @transform_1, window_bounds = array<i64: 896, 512>}, {pipeline_mode = #tpu.pipeline_mode<synchronous>, transform_indices = @transform_2, window_bounds = array<i64: 512, 256>}, {pipeline_mode = #tpu.pipeline_mode<synchronous>, transform_indices = @transform_3, window_bounds = array<i64: 256, 128>}, {pipeline_mode = #tpu.pipeline_mode<synchronous>, transform_indices = @transform_4, window_bounds = array<i64: 128, 128>}, {pipeline_mode = #tpu.pipeline_mode<synchronous>, transform_indices = @transform_5, window_bounds = array<i64: 128, 128>}, {pipeline_mode = #tpu.pipeline_mode<synchronous>, transform_indices = @transform_6, window_bounds = array<i64: 128, 256>}, {pipeline_mode = #tpu.pipeline_mode<synchronous>, transform_indices = @transform_7, window_bounds = array<i64: 256, 512>}, {pipeline_mode = #tpu.pipeline_mode<synchronous>, transform_indices = @transform_8, window_bounds = array<i64: 512, 896>}, {pipeline_mode = #tpu.pipeline_mode<synchronous>, transform_indices = @transform_9, window_bounds = array<i64: 1, 512>}, {pipeline_mode = #tpu.pipeline_mode<synchronous>, transform_indices = @transform_10, window_bounds = array<i64: 1, 256>}, {pipeline_mode = #tpu.pipeline_mode<synchronous>, transform_indices = @transform_11, window_bounds = array<i64: 1, 128>}, {pipeline_mode = #tpu.pipeline_mode<synchronous>, transform_indices = @transform_12, window_bounds = array<i64: 1, 128>}, {pipeline_mode = #tpu.pipeline_mode<synchronous>, transform_indices = @transform_13, window_bounds = array<i64: 1, 128>}, {pipeline_mode = #tpu.pipeline_mode<synchronous>, transform_indices = @transform_14, window_bounds = array<i64: 1, 256>}, {pipeline_mode = #tpu.pipeline_mode<synchronous>, transform_indices = @transform_15, window_bounds = array<i64: 1, 512>}, {pipeline_mode = #tpu.pipeline_mode<synchronous>, transform_indices = @transform_16, window_bounds = array<i64: 1, 896>}, {transform_indices = @transform_17, window_bounds = array<i64: 8, 896>}, {transform_indices = @transform_18, window_bounds = array<i64: 8, 128>}]} {
    %c0 = arith.constant 0 : index
    %c0_0 = arith.constant 0 : index
    %0 = vector.load %arg1[%c0, %c0_0] : memref<8x896xbf16, #tpu.memory_space<vmem>>, vector<8x896xbf16>
    %c0_1 = arith.constant 0 : index
    %c0_2 = arith.constant 0 : index
    %1 = vector.load %arg2[%c0_1, %c0_2] : memref<896x512xbf16, #tpu.memory_space<vmem>>, vector<896x512xbf16>
    %cst = arith.constant dense<0.000000e+00> : vector<8x512xf32>
    %2 = tpu.matmul %0, %1, %cst {dimension_numbers = #tpu.dot_dimension_numbers<[1], [0], [0], [1], [0, 0, 1, 1], [], []>} : vector<8x896xbf16>, vector<896x512xbf16>, vector<8x512xf32> -> vector<8x512xf32>
    %c0_3 = arith.constant 0 : index
    %c0_4 = arith.constant 0 : index
    %3 = vector.load %arg10[%c0_3, %c0_4] : memref<1x512xf32, #tpu.memory_space<vmem>>, vector<1x512xf32>
    %4 = vector.broadcast %3 : vector<1x512xf32> to vector<8x512xf32>
    %5 = arith.addf %2, %4 : vector<8x512xf32>
    %cst_5 = arith.constant 0.000000e+00 : f32
    %6 = vector.broadcast %cst_5 : f32 to vector<8x512xf32>
    %7 = arith.maximumf %5, %6 : vector<8x512xf32>
    %8 = arith.truncf %7 : vector<8x512xf32> to vector<8x512xbf16>
    %c0_6 = arith.constant 0 : index
    %c0_7 = arith.constant 0 : index
    %9 = vector.load %arg3[%c0_6, %c0_7] : memref<512x256xbf16, #tpu.memory_space<vmem>>, vector<512x256xbf16>
    %cst_8 = arith.constant dense<0.000000e+00> : vector<8x256xf32>
    %10 = tpu.matmul %8, %9, %cst_8 {dimension_numbers = #tpu.dot_dimension_numbers<[1], [0], [0], [1], [0, 0, 1, 1], [], []>} : vector<8x512xbf16>, vector<512x256xbf16>, vector<8x256xf32> -> vector<8x256xf32>
    %c0_9 = arith.constant 0 : index
    %c0_10 = arith.constant 0 : index
    %11 = vector.load %arg11[%c0_9, %c0_10] : memref<1x256xf32, #tpu.memory_space<vmem>>, vector<1x256xf32>
    %12 = vector.broadcast %11 : vector<1x256xf32> to vector<8x256xf32>
    %13 = arith.addf %10, %12 : vector<8x256xf32>
    %cst_11 = arith.constant 0.000000e+00 : f32
    %14 = vector.broadcast %cst_11 : f32 to vector<8x256xf32>
    %15 = arith.maximumf %13, %14 : vector<8x256xf32>
    %16 = arith.truncf %15 : vector<8x256xf32> to vector<8x256xbf16>
    %c0_12 = arith.constant 0 : index
    %c0_13 = arith.constant 0 : index
    %17 = vector.load %arg4[%c0_12, %c0_13] : memref<256x128xbf16, #tpu.memory_space<vmem>>, vector<256x128xbf16>
    %cst_14 = arith.constant dense<0.000000e+00> : vector<8x128xf32>
    %18 = tpu.matmul %16, %17, %cst_14 {dimension_numbers = #tpu.dot_dimension_numbers<[1], [0], [0], [1], [0, 0, 1, 1], [], []>} : vector<8x256xbf16>, vector<256x128xbf16>, vector<8x128xf32> -> vector<8x128xf32>
    %c0_15 = arith.constant 0 : index
    %c0_16 = arith.constant 0 : index
    %19 = vector.load %arg12[%c0_15, %c0_16] : memref<1x128xf32, #tpu.memory_space<vmem>>, vector<1x128xf32>
    %20 = vector.broadcast %19 : vector<1x128xf32> to vector<8x128xf32>
    %21 = arith.addf %18, %20 : vector<8x128xf32>
    %cst_17 = arith.constant 0.000000e+00 : f32
    %22 = vector.broadcast %cst_17 : f32 to vector<8x128xf32>
    %23 = arith.maximumf %21, %22 : vector<8x128xf32>
    %24 = arith.truncf %23 : vector<8x128xf32> to vector<8x128xbf16>
    %c0_18 = arith.constant 0 : index
    %c0_19 = arith.constant 0 : index
    %25 = vector.load %arg5[%c0_18, %c0_19] : memref<128x128xbf16, #tpu.memory_space<vmem>>, vector<128x128xbf16>
    %cst_20 = arith.constant dense<0.000000e+00> : vector<8x128xf32>
    %26 = tpu.matmul %24, %25, %cst_20 {dimension_numbers = #tpu.dot_dimension_numbers<[1], [0], [0], [1], [0, 0, 1, 1], [], []>} : vector<8x128xbf16>, vector<128x128xbf16>, vector<8x128xf32> -> vector<8x128xf32>
    %c0_21 = arith.constant 0 : index
    %c0_22 = arith.constant 0 : index
    %27 = vector.load %arg13[%c0_21, %c0_22] : memref<1x128xf32, #tpu.memory_space<vmem>>, vector<1x128xf32>
    %28 = vector.broadcast %27 : vector<1x128xf32> to vector<8x128xf32>
    %29 = arith.addf %26, %28 : vector<8x128xf32>
    %30 = arith.truncf %29 : vector<8x128xf32> to vector<8x128xbf16>
    %c0_23 = arith.constant 0 : index
    %c0_24 = arith.constant 0 : index
    %31 = vector.load %arg19[%c0_23, %c0_24] : memref<8x128xbf16, #tpu.memory_space<vmem>>, vector<8x128xbf16>
    tpu.vector_store %arg19[%c0_23, %c0_24], %30 {strides = array<i32>} : memref<8x128xbf16, #tpu.memory_space<vmem>>, vector<8x128xbf16>,
    %c0_25 = arith.constant 0 : index
    %c0_26 = arith.constant 0 : index
    %32 = vector.load %arg6[%c0_25, %c0_26] : memref<128x128xbf16, #tpu.memory_space<vmem>>, vector<128x128xbf16>
    %cst_27 = arith.constant dense<0.000000e+00> : vector<8x128xf32>
    %33 = tpu.matmul %30, %32, %cst_27 {dimension_numbers = #tpu.dot_dimension_numbers<[1], [0], [0], [1], [0, 0, 1, 1], [], []>} : vector<8x128xbf16>, vector<128x128xbf16>, vector<8x128xf32> -> vector<8x128xf32>
    %c0_28 = arith.constant 0 : index
    %c0_29 = arith.constant 0 : index
    %34 = vector.load %arg14[%c0_28, %c0_29] : memref<1x128xf32, #tpu.memory_space<vmem>>, vector<1x128xf32>
    %35 = vector.broadcast %34 : vector<1x128xf32> to vector<8x128xf32>
    %36 = arith.addf %33, %35 : vector<8x128xf32>
    %cst_30 = arith.constant 0.000000e+00 : f32
    %37 = vector.broadcast %cst_30 : f32 to vector<8x128xf32>
    %38 = arith.maximumf %36, %37 : vector<8x128xf32>
    %39 = arith.truncf %38 : vector<8x128xf32> to vector<8x128xbf16>
    %c0_31 = arith.constant 0 : index
    %c0_32 = arith.constant 0 : index
    %40 = vector.load %arg7[%c0_31, %c0_32] : memref<128x256xbf16, #tpu.memory_space<vmem>>, vector<128x256xbf16>
    %cst_33 = arith.constant dense<0.000000e+00> : vector<8x256xf32>
    %41 = tpu.matmul %39, %40, %cst_33 {dimension_numbers = #tpu.dot_dimension_numbers<[1], [0], [0], [1], [0, 0, 1, 1], [], []>} : vector<8x128xbf16>, vector<128x256xbf16>, vector<8x256xf32> -> vector<8x256xf32>
    %c0_34 = arith.constant 0 : index
    %c0_35 = arith.constant 0 : index
    %42 = vector.load %arg15[%c0_34, %c0_35] : memref<1x256xf32, #tpu.memory_space<vmem>>, vector<1x256xf32>
    %43 = vector.broadcast %42 : vector<1x256xf32> to vector<8x256xf32>
    %44 = arith.addf %41, %43 : vector<8x256xf32>
    %cst_36 = arith.constant 0.000000e+00 : f32
    %45 = vector.broadcast %cst_36 : f32 to vector<8x256xf32>
    %46 = arith.maximumf %44, %45 : vector<8x256xf32>
    %47 = arith.truncf %46 : vector<8x256xf32> to vector<8x256xbf16>
    %c0_37 = arith.constant 0 : index
    %c0_38 = arith.constant 0 : index
    %48 = vector.load %arg8[%c0_37, %c0_38] : memref<256x512xbf16, #tpu.memory_space<vmem>>, vector<256x512xbf16>
    %cst_39 = arith.constant dense<0.000000e+00> : vector<8x512xf32>
    %49 = tpu.matmul %47, %48, %cst_39 {dimension_numbers = #tpu.dot_dimension_numbers<[1], [0], [0], [1], [0, 0, 1, 1], [], []>} : vector<8x256xbf16>, vector<256x512xbf16>, vector<8x512xf32> -> vector<8x512xf32>
    %c0_40 = arith.constant 0 : index
    %c0_41 = arith.constant 0 : index
    %50 = vector.load %arg16[%c0_40, %c0_41] : memref<1x512xf32, #tpu.memory_space<vmem>>, vector<1x512xf32>
    %51 = vector.broadcast %50 : vector<1x512xf32> to vector<8x512xf32>
    %52 = arith.addf %49, %51 : vector<8x512xf32>
    %cst_42 = arith.constant 0.000000e+00 : f32
    %53 = vector.broadcast %cst_42 : f32 to vector<8x512xf32>
    %54 = arith.maximumf %52, %53 : vector<8x512xf32>
    %55 = arith.truncf %54 : vector<8x512xf32> to vector<8x512xbf16>
    %c0_43 = arith.constant 0 : index
    %c0_44 = arith.constant 0 : index
    %56 = vector.load %arg9[%c0_43, %c0_44] : memref<512x896xbf16, #tpu.memory_space<vmem>>, vector<512x896xbf16>
    %cst_45 = arith.constant dense<0.000000e+00> : vector<8x896xf32>
    %57 = tpu.matmul %55, %56, %cst_45 {dimension_numbers = #tpu.dot_dimension_numbers<[1], [0], [0], [1], [0, 0, 1, 1], [], []>} : vector<8x512xbf16>, vector<512x896xbf16>, vector<8x896xf32> -> vector<8x896xf32>
    %c0_46 = arith.constant 0 : index
    %c0_47 = arith.constant 0 : index
    %58 = vector.load %arg17[%c0_46, %c0_47] : memref<1x896xf32, #tpu.memory_space<vmem>>, vector<1x896xf32>
    %59 = vector.broadcast %58 : vector<1x896xf32> to vector<8x896xf32>
    %60 = arith.addf %57, %59 : vector<8x896xf32>
    %61 = arith.negf %60 : vector<8x896xf32>
    %62 = math.exp %61 : vector<8x896xf32>
    %cst_48 = arith.constant 1.000000e+00 : f32
    %63 = vector.broadcast %cst_48 : f32 to vector<8x896xf32>
    %64 = arith.addf %63, %62 : vector<8x896xf32>
    %65 = arith.divf %63, %64 : vector<8x896xf32>
    %66 = arith.truncf %65 : vector<8x896xf32> to vector<8x896xbf16>
    %c0_49 = arith.constant 0 : index
    %c0_50 = arith.constant 0 : index
    %67 = vector.load %arg18[%c0_49, %c0_50] : memref<8x896xbf16, #tpu.memory_space<vmem>>, vector<8x896xbf16>
    tpu.vector_store %arg18[%c0_49, %c0_50], %66 {strides = array<i32>} : memref<8x896xbf16, #tpu.memory_space<vmem>>, vector<8x896xbf16>,
    return
  }
  func.func @transform_0(%arg0: i32) -> (i32, i32) {
    %c0_i32 = arith.constant 0 : i32
    %c0_i32_0 = arith.constant 0 : i32
    return %arg0, %c0_i32 : i32, i32
  }
  func.func @transform_1(%arg0: i32) -> (i32, i32) {
    %c0_i32 = arith.constant 0 : i32
    %c0_i32_0 = arith.constant 0 : i32
    %c0_i32_1 = arith.constant 0 : i32
    return %c0_i32, %c0_i32_0 : i32, i32
  }
  func.func @transform_2(%arg0: i32) -> (i32, i32) {
    %c0_i32 = arith.constant 0 : i32
    %c0_i32_0 = arith.constant 0 : i32
    %c0_i32_1 = arith.constant 0 : i32
    return %c0_i32, %c0_i32_0 : i32, i32
  }
  func.func @transform_3(%arg0: i32) -> (i32, i32) {
    %c0_i32 = arith.constant 0 : i32
    %c0_i32_0 = arith.constant 0 : i32
    %c0_i32_1 = arith.constant 0 : i32
    return %c0_i32, %c0_i32_0 : i32, i32
  }
  func.func @transform_4(%arg0: i32) -> (i32, i32) {
    %c0_i32 = arith.constant 0 : i32
    %c0_i32_0 = arith.constant 0 : i32
    %c0_i32_1 = arith.constant 0 : i32
    return %c0_i32, %c0_i32_0 : i32, i32
  }
  func.func @transform_5(%arg0: i32) -> (i32, i32) {
    %c0_i32 = arith.constant 0 : i32
    %c0_i32_0 = arith.constant 0 : i32
    %c0_i32_1 = arith.constant 0 : i32
    return %c0_i32, %c0_i32_0 : i32, i32
  }
  func.func @transform_6(%arg0: i32) -> (i32, i32) {
    %c0_i32 = arith.constant 0 : i32
    %c0_i32_0 = arith.constant 0 : i32
    %c0_i32_1 = arith.constant 0 : i32
    return %c0_i32, %c0_i32_0 : i32, i32
  }
  func.func @transform_7(%arg0: i32) -> (i32, i32) {
    %c0_i32 = arith.constant 0 : i32
    %c0_i32_0 = arith.constant 0 : i32
    %c0_i32_1 = arith.constant 0 : i32
    return %c0_i32, %c0_i32_0 : i32, i32
  }
  func.func @transform_8(%arg0: i32) -> (i32, i32) {
    %c0_i32 = arith.constant 0 : i32
    %c0_i32_0 = arith.constant 0 : i32
    %c0_i32_1 = arith.constant 0 : i32
    return %c0_i32, %c0_i32_0 : i32, i32
  }
  func.func @transform_9(%arg0: i32) -> (i32, i32) {
    %c0_i32 = arith.constant 0 : i32
    %c0_i32_0 = arith.constant 0 : i32
    %c0_i32_1 = arith.constant 0 : i32
    return %c0_i32, %c0_i32_0 : i32, i32
  }
  func.func @transform_10(%arg0: i32) -> (i32, i32) {
    %c0_i32 = arith.constant 0 : i32
    %c0_i32_0 = arith.constant 0 : i32
    %c0_i32_1 = arith.constant 0 : i32
    return %c0_i32, %c0_i32_0 : i32, i32
  }
  func.func @transform_11(%arg0: i32) -> (i32, i32) {
    %c0_i32 = arith.constant 0 : i32
    %c0_i32_0 = arith.constant 0 : i32
    %c0_i32_1 = arith.constant 0 : i32
    return %c0_i32, %c0_i32_0 : i32, i32
  }
  func.func @transform_12(%arg0: i32) -> (i32, i32) {
    %c0_i32 = arith.constant 0 : i32
    %c0_i32_0 = arith.constant 0 : i32
    %c0_i32_1 = arith.constant 0 : i32
    return %c0_i32, %c0_i32_0 : i32, i32
  }
  func.func @transform_13(%arg0: i32) -> (i32, i32) {
    %c0_i32 = arith.constant 0 : i32
    %c0_i32_0 = arith.constant 0 : i32
    %c0_i32_1 = arith.constant 0 : i32
    return %c0_i32, %c0_i32_0 : i32, i32
  }
  func.func @transform_14(%arg0: i32) -> (i32, i32) {
    %c0_i32 = arith.constant 0 : i32
    %c0_i32_0 = arith.constant 0 : i32
    %c0_i32_1 = arith.constant 0 : i32
    return %c0_i32, %c0_i32_0 : i32, i32
  }
  func.func @transform_15(%arg0: i32) -> (i32, i32) {
    %c0_i32 = arith.constant 0 : i32
    %c0_i32_0 = arith.constant 0 : i32
    %c0_i32_1 = arith.constant 0 : i32
    return %c0_i32, %c0_i32_0 : i32, i32
  }
  func.func @transform_16(%arg0: i32) -> (i32, i32) {
    %c0_i32 = arith.constant 0 : i32
    %c0_i32_0 = arith.constant 0 : i32
    %c0_i32_1 = arith.constant 0 : i32
    return %c0_i32, %c0_i32_0 : i32, i32
  }
  func.func @transform_17(%arg0: i32) -> (i32, i32) {
    %c0_i32 = arith.constant 0 : i32
    %c0_i32_0 = arith.constant 0 : i32
    return %arg0, %c0_i32 : i32, i32
  }
  func.func @transform_18(%arg0: i32) -> (i32, i32) {
    %c0_i32 = arith.constant 0 : i32
    %c0_i32_0 = arith.constant 0 : i32
    return %arg0, %c0_i32 : i32, i32
  }
}

</mosaic_0001>

<bundles_post_ra>
// kernel: vanilla_autoencoder_forward.1
= control target key start
LH: loop header
LB: loop body
LE: loop exit
PB: predicated region body
PF: predicated region fallthrough
CT: control target
= control target key end

     0   :  { %v6944_v1 = vmov 0   ;;  %vm6946_vm0 = vmmov 0   ;;  %s9106_s1 = inlined_call_operand.vmem [shape: bf16[896,512], index: 1, kind: input, shape index: {}]   ;;  %s9107_s0 = inlined_call_operand.vmem [shape: bf16[8,896], index: 0, kind: input, shape index: {}]   ;;  %s9108_s2 = inlined_call_operand.vmem [shape: bf16[512,256], index: 2, kind: input, shape index: {}]   ;;  %s9109_s3 = inlined_call_operand.vmem [shape: bf16[256,128], index: 3, kind: input, shape index: {}]   ;;  %s9110_s9 = inlined_call_operand.vmem [shape: f32[1,512], index: 9, kind: input, shape index: {}]   ;;  %s9111_s4 = inlined_call_operand.vmem [shape: bf16[128,128], index: 4, kind: input, shape index: {}]   ;;  %s9112_s10 = inlined_call_operand.vmem [shape: f32[1,256], index: 10, kind: input, shape index: {}]   ;;  %s9113_s5 = inlined_call_operand.vmem [shape: bf16[128,128], index: 5, kind: input, shape index: {}]   ;;  %s9114_s11 = inlined_call_operand.vmem [shape: f32[1,128], index: 11, kind: input, shape index: {}]   ;;  %s9115_s6 = inlined_call_operand.vmem [shape: bf16[128,256], index: 6, kind: input, shape index: {}]   ;;  %s9116_s12 = inlined_call_operand.vmem [shape: f32[1,128], index: 12, kind: input, shape index: {}]   ;;  %s9117_s18 = inlined_call_operand.vmem [shape: bf16[8,128], index: 18, kind: output, shape index: {1}]   ;;  %s9118_s7 = inlined_call_operand.vmem [shape: bf16[256,512], index: 7, kind: input, shape index: {}]   ;;  %s9119_s13 = inlined_call_operand.vmem [shape: f32[1,128], index: 13, kind: input, shape index: {}]   ;;  %s9120_s8 = inlined_call_operand.vmem [shape: bf16[512,896], index: 8, kind: input, shape index: {}]   ;;  %s9121_s14 = inlined_call_operand.vmem [shape: f32[1,256], index: 14, kind: input, shape index: {}]   ;;  %s9122_s15 = inlined_call_operand.vmem [shape: f32[1,512], index: 15, kind: input, shape index: {}]   ;;  %s9123_s16 = inlined_call_operand.vmem [shape: f32[1,896], index: 16, kind: input, shape index: {}]   ;;  %s9124_s17 = inlined_call_operand.vmem [shape: bf16[8,896], index: 17, kind: output, shape index: {0}]  }
   0x1   :  { %9128 = sst [smem:[#allocation2_spill]] %s9106_s1  ;;  %1609 = vmatprep.mubr.bf16.mxu1 %v6944_v1 }
   0x2   :  { %9129 = sst [smem:[#allocation3_spill]] %s9107_s0  ;;  %s9131_s29 = sld [smem:[#allocation2_spill]] }
   0x3   :  { %9130 = sst [smem:[#allocation4_spill]] %s9108_s2  ;;  %s9132_s27 = sld [smem:[#allocation3_spill]] }
   0x4   :  { %s9133_s30 = sld [smem:[#allocation4_spill]] }
   0x8   :  { %v6004_v0 = vld [vmem:[%s9131_s29 + $0x4] ss:$16 sps:$4 sm:$0xff]   ;;  %v6008_v3 = vld [vmem:[%s9131_s29] ss:$16 sps:$4 sm:$0xff]   ;;  %v6057_v34 = vld [vmem:[%s9131_s29 + $0xc] ss:$16 sps:$4 sm:$0xff]  }
   0x9   :  { %v6006_v2 = vld [vmem:[%s9131_s29 + $0x604] ss:$16 sps:$4 sm:$0xff]   ;;  %1454 = vmatprep.subr.bf16.mxu0 %v6004_v0  ;;  %v6009_v4 = vld [vmem:[%s9131_s29 + $0x600] ss:$16 sps:$4 sm:$0xff]   ;;  %v6054_v35 = vld [vmem:[%s9132_s27 + $0x18] ss:$0 sps:$4 sm:$0xff]  }
   0xa   :  { %1577 = vmatprep.subr.bf16.mxu1 %v6006_v2  ;;  %v6010_v5 = vld [vmem:[%s9131_s29 + $0x24] ss:$16 sps:$4 sm:$0xff]   ;;  %1455 = vmatpush1.bf16.msra.mxu0 %v6008_v3  ;;  %v6014_v7 = vld [vmem:[%s9131_s29 + $0x20] ss:$16 sps:$4 sm:$0xff]   ;;  %v6055_v36 = vld [vmem:[%s9131_s29 + $0x8] ss:$16 sps:$4 sm:$0xff]  }
   0xb   :  { %1578 = vmatpush1.bf16.msra.mxu1 %v6009_v4  ;;  %v6012_v6 = vld [vmem:[%s9131_s29 + $0x624] ss:$16 sps:$4 sm:$0xff]   ;;  %1456 = vmatprep.subr.bf16.mxu0 %v6010_v5  ;;  %v6015_v8 = vld [vmem:[%s9131_s29 + $0x620] ss:$16 sps:$4 sm:$0xff]   ;;  %v6063_v39 = vld [vmem:[%s9131_s29 + $0x2c] ss:$16 sps:$4 sm:$0xff]  }
   0xc   :  { %1579 = vmatprep.subr.bf16.mxu1 %v6012_v6  ;;  %v6016_v9 = vld [vmem:[%s9131_s29 + $0x44] ss:$16 sps:$4 sm:$0xff]   ;;  %v6020_v11 = vld [vmem:[%s9131_s29 + $0x40] ss:$16 sps:$4 sm:$0xff]   ;;  %v6061_v40 = vld [vmem:[%s9131_s29 + $0x28] ss:$16 sps:$4 sm:$0xff]  }
   0xd   :  { %v6018_v10 = vld [vmem:[%s9131_s29 + $0x644] ss:$16 sps:$4 sm:$0xff]   ;;  %v6021_v12 = vld [vmem:[%s9131_s29 + $0x640] ss:$16 sps:$4 sm:$0xff]   ;;  %v6069_v43 = vld [vmem:[%s9131_s29 + $0x4c] ss:$16 sps:$4 sm:$0xff]  }
   0xe   :  { %1457 = vmatpush1.bf16.msra.mxu0 %v6014_v7  ;;  %v6022_v13 = vld [vmem:[%s9131_s29 + $0x64] ss:$16 sps:$4 sm:$0xff]   ;;  %v6026_v15 = vld [vmem:[%s9131_s29 + $0x60] ss:$16 sps:$4 sm:$0xff]   ;;  %v6067_v44 = vld [vmem:[%s9131_s29 + $0x48] ss:$16 sps:$4 sm:$0xff]  }
   0xf   :  { %1580 = vmatpush1.bf16.msra.mxu1 %v6015_v8  ;;  %1458 = vmatprep.subr.bf16.mxu0 %v6016_v9  ;;  %v6024_v14 = vld [vmem:[%s9131_s29 + $0x664] ss:$16 sps:$4 sm:$0xff]   ;;  %v6027_v16 = vld [vmem:[%s9131_s29 + $0x660] ss:$16 sps:$4 sm:$0xff]   ;;  %v6075_v47 = vld [vmem:[%s9131_s29 + $0x6c] ss:$16 sps:$4 sm:$0xff]  }
  0x10   :  { %1581 = vmatprep.subr.bf16.mxu1 %v6018_v10  ;;  %v6028_v17 = vld [vmem:[%s9131_s29 + $0x84] ss:$16 sps:$4 sm:$0xff]   ;;  %v6032_v19 = vld [vmem:[%s9131_s29 + $0x80] ss:$16 sps:$4 sm:$0xff]   ;;  %v6073_v48 = vld [vmem:[%s9131_s29 + $0x68] ss:$16 sps:$4 sm:$0xff]  }
  0x11   :  { %v6030_v18 = vld [vmem:[%s9131_s29 + $0x684] ss:$16 sps:$4 sm:$0xff]   ;;  %v6033_v20 = vld [vmem:[%s9131_s29 + $0x680] ss:$16 sps:$4 sm:$0xff]   ;;  %v6081_v53 = vld [vmem:[%s9131_s29 + $0x8c] ss:$16 sps:$4 sm:$0xff]  }
  0x12   :  { %1459 = vmatpush1.bf16.msra.mxu0 %v6020_v11  ;;  %v6034_v21 = vld [vmem:[%s9131_s29 + $0xa4] ss:$16 sps:$4 sm:$0xff]   ;;  %v6038_v23 = vld [vmem:[%s9131_s29 + $0xa0] ss:$16 sps:$4 sm:$0xff]   ;;  %v6079_v54 = vld [vmem:[%s9131_s29 + $0x88] ss:$16 sps:$4 sm:$0xff]  }
  0x13   :  { %1582 = vmatpush1.bf16.msra.mxu1 %v6021_v12  ;;  %1460 = vmatprep.subr.bf16.mxu0 %v6022_v13  ;;  %v6036_v22 = vld [vmem:[%s9131_s29 + $0x6a4] ss:$16 sps:$4 sm:$0xff]   ;;  %v6039_v24 = vld [vmem:[%s9131_s29 + $0x6a0] ss:$16 sps:$4 sm:$0xff]   ;;  %v6087_v57 = vld [vmem:[%s9131_s29 + $0xac] ss:$16 sps:$4 sm:$0xff]  }
  0x14   :  { %1583 = vmatprep.subr.bf16.mxu1 %v6024_v14  ;;  %v6040_v25 = vld [vmem:[%s9131_s29 + $0xc4] ss:$16 sps:$4 sm:$0xff]   ;;  %v6044_v27 = vld [vmem:[%s9131_s29 + $0xc0] ss:$16 sps:$4 sm:$0xff]   ;;  %v6085_v58 = vld [vmem:[%s9131_s29 + $0xa8] ss:$16 sps:$4 sm:$0xff]  }
  0x15   :  { %v6042_v26 = vld [vmem:[%s9131_s29 + $0x6c4] ss:$16 sps:$4 sm:$0xff]   ;;  %v6045_v28 = vld [vmem:[%s9131_s29 + $0x6c0] ss:$16 sps:$4 sm:$0xff]   ;;  %v6093_v61 = vld [vmem:[%s9131_s29 + $0xcc] ss:$16 sps:$4 sm:$0xff]  }
  0x16   :  { %1461 = vmatpush1.bf16.msra.mxu0 %v6026_v15  ;;  %v6046_v29 = vld [vmem:[%s9131_s29 + $0xe4] ss:$16 sps:$4 sm:$0xff]   ;;  %v6050_v31 = vld [vmem:[%s9131_s29 + $0xe0] ss:$16 sps:$4 sm:$0xff]   ;;  %v6091_v62 = vld [vmem:[%s9131_s29 + $0xc8] ss:$16 sps:$4 sm:$0xff]  }
  0x17   :  { %1584 = vmatpush1.bf16.msra.mxu1 %v6027_v16  ;;  %1462 = vmatprep.subr.bf16.mxu0 %v6028_v17  ;;  %v6048_v30 = vld [vmem:[%s9131_s29 + $0x6e4] ss:$16 sps:$4 sm:$0xff]   ;;  %v6051_v32 = vld [vmem:[%s9131_s29 + $0x6e0] ss:$16 sps:$4 sm:$0xff]   ;;  %v6099_v2 = vld [vmem:[%s9131_s29 + $0xec] ss:$16 sps:$4 sm:$0xff]  }
  0x18   :  { %1585 = vmatprep.subr.bf16.mxu1 %v6030_v18  ;;  %v6052_v33 = vld [vmem:[%s9131_s29 + $0x104] ss:$16 sps:$4 sm:$0xff]   ;;  %v6058_v37 = vld [vmem:[%s9131_s29 + $0x100] ss:$16 sps:$4 sm:$0xff]   ;;  %v6097_v3 = vld [vmem:[%s9131_s29 + $0xe8] ss:$16 sps:$4 sm:$0xff]  }
  0x19   :  { %v6059_v38 = vld [vmem:[%s9131_s29 + $0x124] ss:$16 sps:$4 sm:$0xff]   ;;  %v6064_v41 = vld [vmem:[%s9131_s29 + $0x120] ss:$16 sps:$4 sm:$0xff]   ;;  %v6108_v6 = vld [vmem:[%s9131_s29 + $0x10c] ss:$16 sps:$4 sm:$0xff]  }
  0x1a   :  { %1463 = vmatpush1.bf16.msra.mxu0 %v6032_v19  ;;  %v6065_v42 = vld [vmem:[%s9131_s29 + $0x144] ss:$16 sps:$4 sm:$0xff]   ;;  %v6070_v45 = vld [vmem:[%s9131_s29 + $0x140] ss:$16 sps:$4 sm:$0xff]   ;;  %v6106_v9 = vld [vmem:[%s9131_s29 + $0x108] ss:$16 sps:$4 sm:$0xff]  }
  0x1b   :  { %1586 = vmatpush1.bf16.msra.mxu1 %v6033_v20  ;;  %1464 = vmatprep.subr.bf16.mxu0 %v6034_v21  ;;  %v6071_v46 = vld [vmem:[%s9131_s29 + $0x164] ss:$16 sps:$4 sm:$0xff]   ;;  %v6076_v50 = vld [vmem:[%s9131_s29 + $0x160] ss:$16 sps:$4 sm:$0xff]   ;;  %v6114_v11 = vld [vmem:[%s9131_s29 + $0x12c] ss:$16 sps:$4 sm:$0xff]  }
  0x1c   :  { %1587 = vmatprep.subr.bf16.mxu1 %v6036_v22  ;;  %v59_v49 = vld [vmem:[%s9132_s27] sm:$0xff]  ;;  %v6112_v13 = vld [vmem:[%s9131_s29 + $0x128] ss:$16 sps:$4 sm:$0xff]   ;;  %v6120_v15 = vld [vmem:[%s9131_s29 + $0x14c] ss:$16 sps:$4 sm:$0xff]  }
  0x1d   :  { %v6077_v51 = vld [vmem:[%s9131_s29 + $0x184] ss:$16 sps:$4 sm:$0xff]   ;;  %v5179_v52 = vcombine.high %v59_v49, %v59_v49  ;;  %v6082_v55 = vld [vmem:[%s9131_s29 + $0x180] ss:$16 sps:$4 sm:$0xff]   ;;  %v7247_v7 = vcombine.low %v59_v49, %v59_v49  ;;  %v6118_v17 = vld [vmem:[%s9131_s29 + $0x148] ss:$16 sps:$4 sm:$0xff]  }
  0x1e   :  { %1465 = vmatpush1.bf16.msra.mxu0 %v6038_v23  ;;  %v6083_v56 = vld [vmem:[%s9131_s29 + $0x1a4] ss:$16 sps:$4 sm:$0xff]   ;;  %v6088_v59 = vld [vmem:[%s9131_s29 + $0x1a0] ss:$16 sps:$4 sm:$0xff]   ;;  %v6126_v19 = vld [vmem:[%s9131_s29 + $0x16c] ss:$16 sps:$4 sm:$0xff]  }
  0x1f   :  { %1588 = vmatpush1.bf16.msra.mxu1 %v6039_v24  ;;  %1466 = vmatprep.subr.bf16.mxu0 %v6040_v25  ;;  %v6089_v60 = vld [vmem:[%s9131_s29 + $0x1c4] ss:$16 sps:$4 sm:$0xff]   ;;  %v6094_v63 = vld [vmem:[%s9131_s29 + $0x1c0] ss:$16 sps:$4 sm:$0xff]   ;;  %v6124_v21 = vld [vmem:[%s9131_s29 + $0x168] ss:$16 sps:$4 sm:$0xff]  }
  0x20   :  { %1589 = vmatprep.subr.bf16.mxu1 %v6042_v26  ;;  %1486 = vmatprep.mubr.bf16.mxu0 %v5179_v52  ;;  %v6095_v0 = vld [vmem:[%s9131_s29 + $0x1e4] ss:$16 sps:$4 sm:$0xff]   ;;  %v6100_v4 = vld [vmem:[%s9131_s29 + $0x1e0] ss:$16 sps:$4 sm:$0xff]   ;;  %v6132_v23 = vld [vmem:[%s9131_s29 + $0x18c] ss:$16 sps:$4 sm:$0xff]  }
  0x21   :  { %v6105_v5 = vld [vmem:[%s9131_s29 + $0x204] ss:$16 sps:$4 sm:$0xff]   ;;  %v6103_v8 = vld [vmem:[%s9131_s29 + $0x200] ss:$16 sps:$4 sm:$0xff]   ;;  %v6130_v25 = vld [vmem:[%s9131_s29 + $0x188] ss:$16 sps:$4 sm:$0xff]  }
  0x22   :  { %1467 = vmatpush1.bf16.msra.mxu0 %v6044_v27  ;;  %v6111_v10 = vld [vmem:[%s9131_s29 + $0x224] ss:$16 sps:$4 sm:$0xff]   ;;  %v6109_v12 = vld [vmem:[%s9131_s29 + $0x220] ss:$16 sps:$4 sm:$0xff]   ;;  %v6138_v27 = vld [vmem:[%s9131_s29 + $0x1ac] ss:$16 sps:$4 sm:$0xff]  }
  0x23   :  { %1590 = vmatpush1.bf16.msra.mxu1 %v6045_v28  ;;  %1468 = vmatprep.subr.bf16.mxu0 %v6046_v29  ;;  %v6117_v14 = vld [vmem:[%s9131_s29 + $0x244] ss:$16 sps:$4 sm:$0xff]   ;;  %v6115_v16 = vld [vmem:[%s9131_s29 + $0x240] ss:$16 sps:$4 sm:$0xff]   ;;  %v6136_v29 = vld [vmem:[%s9131_s29 + $0x1a8] ss:$16 sps:$4 sm:$0xff]  }
  0x24   :  { %1591 = vmatprep.subr.bf16.mxu1 %v6048_v30  ;;  %v6123_v18 = vld [vmem:[%s9131_s29 + $0x264] ss:$16 sps:$4 sm:$0xff]   ;;  %v6121_v20 = vld [vmem:[%s9131_s29 + $0x260] ss:$16 sps:$4 sm:$0xff]   ;;  %v6168_v49 = vld [vmem:[%s9131_s29 + $0x24c] ss:$16 sps:$4 sm:$0xff]  }
  0x25   :  { %v6129_v22 = vld [vmem:[%s9131_s29 + $0x284] ss:$16 sps:$4 sm:$0xff]   ;;  %v6127_v24 = vld [vmem:[%s9131_s29 + $0x280] ss:$16 sps:$4 sm:$0xff]  }
  0x26   :  { %1469 = vmatpush1.bf16.msra.mxu0 %v6050_v31  ;;  %v6135_v26 = vld [vmem:[%s9131_s29 + $0x2a4] ss:$16 sps:$4 sm:$0xff]   ;;  %v6133_v28 = vld [vmem:[%s9131_s29 + $0x2a0] ss:$16 sps:$4 sm:$0xff]   ;;  %v6144_v31 = vld [vmem:[%s9131_s29 + $0x1cc] ss:$16 sps:$4 sm:$0xff]  }
  0x27   :  { %1592 = vmatpush1.bf16.msra.mxu1 %v6051_v32  ;;  %1470 = vmatprep.subr.bf16.mxu0 %v6052_v33  ;;  %v6141_v30 = vld [vmem:[%s9131_s29 + $0x2c4] ss:$16 sps:$4 sm:$0xff]   ;;  %v7325_v32 = vld [vmem:[%s9132_s27 + $0x8] sm:$0xff]  ;;  %v6139_v33 = vld [vmem:[%s9131_s29 + $0x2c0] ss:$16 sps:$4 sm:$0xff]  }
  0x28   :  { %1618 = vmatprep.subr.bf16.mxu1 %v6057_v34  ;;  %v6142_v34 = vld [vmem:[%s9131_s29 + $0x1c8] ss:$16 sps:$4 sm:$0xff]  }
  0x2a   :  { %1610 = vmatmul.mubr.bf16.vlgmr.msra.gmra.mrb[0].mxu1 %v6054_v35  ;;  %1471 = vmatpush1.bf16.msra.mxu0 %v6058_v37  ;;  %v5181_v35 = vcombine.high %v7325_v32, %v7325_v32  ;;  %v6150_v37 = vld [vmem:[%s9131_s29 + $0x1ec] ss:$16 sps:$4 sm:$0xff]  }
  0x2b   :  { %1619 = vmatpush1.bf16.msra.mxu1 %v6055_v36  ;;  %1472 = vmatprep.subr.bf16.mxu0 %v6059_v38  ;;  %v6147_v36 = vld [vmem:[%s9131_s29 + $0x2e4] ss:$16 sps:$4 sm:$0xff]   ;;  %v6145_v38 = vld [vmem:[%s9131_s29 + $0x2e0] ss:$16 sps:$4 sm:$0xff]  }
  0x2c   :  { %1620 = vmatprep.subr.bf16.mxu1 %v6063_v39  ;;  %1650 = vmatprep.mubr.bf16.mxu1 %v5179_v52  ;;  %v6148_v39 = vld [vmem:[%s9131_s29 + $0x1e8] ss:$16 sps:$4 sm:$0xff]   ;;  %v6171_v52 = vld [vmem:[%s9131_s29 + $0x364] ss:$16 sps:$4 sm:$0xff]  }
  0x2e   :  { %1473 = vmatpush1.bf16.msra.mxu0 %v6064_v41  ;;  %v6156_v41 = vld [vmem:[%s9131_s29 + $0x20c] ss:$16 sps:$4 sm:$0xff]  }
  0x2f   :  { %1621 = vmatpush1.bf16.msra.mxu1 %v6061_v40  ;;  %1474 = vmatprep.subr.bf16.mxu0 %v6065_v42  ;;  %v6153_v40 = vld [vmem:[%s9131_s29 + $0x304] ss:$16 sps:$4 sm:$0xff]   ;;  %v6151_v42 = vld [vmem:[%s9131_s29 + $0x300] ss:$16 sps:$4 sm:$0xff]  }
  0x30   :  { %1622 = vmatprep.subr.bf16.mxu1 %v6069_v43  ;;  %v6154_v43 = vld [vmem:[%s9131_s29 + $0x208] ss:$16 sps:$4 sm:$0xff]  }
  0x32   :  { %1475 = vmatpush1.bf16.msra.mxu0 %v6070_v45  ;;  %v6162_v45 = vld [vmem:[%s9131_s29 + $0x22c] ss:$16 sps:$4 sm:$0xff]  }
  0x33   :  { %1623 = vmatpush1.bf16.msra.mxu1 %v6067_v44  ;;  %1476 = vmatprep.subr.bf16.mxu0 %v6071_v46  ;;  %v6159_v44 = vld [vmem:[%s9131_s29 + $0x324] ss:$16 sps:$4 sm:$0xff]   ;;  %v6157_v46 = vld [vmem:[%s9131_s29 + $0x320] ss:$16 sps:$4 sm:$0xff]  }
  0x34   :  { %1624 = vmatprep.subr.bf16.mxu1 %v6075_v47  ;;  %v6160_v47 = vld [vmem:[%s9131_s29 + $0x228] ss:$16 sps:$4 sm:$0xff]  }
  0x36   :  { %1477 = vmatpush1.bf16.msra.mxu0 %v6076_v50  ;;  %v6163_v50 = vld [vmem:[%s9131_s29 + $0x340] ss:$16 sps:$4 sm:$0xff]  }
  0x37   :  { %1625 = vmatpush1.bf16.msra.mxu1 %v6073_v48  ;;  %1478 = vmatprep.subr.bf16.mxu0 %v6077_v51  ;;  %v6165_v48 = vld [vmem:[%s9131_s29 + $0x344] ss:$16 sps:$4 sm:$0xff]   ;;  %v6166_v51 = vld [vmem:[%s9131_s29 + $0x248] ss:$16 sps:$4 sm:$0xff]  }
  0x38   :  { %1626 = vmatprep.subr.bf16.mxu1 %v6081_v53  ;;  %v6174_v53 = vld [vmem:[%s9131_s29 + $0x26c] ss:$16 sps:$4 sm:$0xff]  }
  0x3a   :  { %1479 = vmatpush1.bf16.msra.mxu0 %v6082_v55  ;;  %v6172_v55 = vld [vmem:[%s9131_s29 + $0x268] ss:$16 sps:$4 sm:$0xff]  }
  0x3b   :  { %1627 = vmatpush1.bf16.msra.mxu1 %v6079_v54  ;;  %1480 = vmatprep.subr.bf16.mxu0 %v6083_v56  ;;  %v6169_v54 = vld [vmem:[%s9131_s29 + $0x360] ss:$16 sps:$4 sm:$0xff]   ;;  %v6177_v56 = vld [vmem:[%s9131_s29 + $0x384] ss:$16 sps:$4 sm:$0xff]  }
  0x3c   :  { %1628 = vmatprep.subr.bf16.mxu1 %v6087_v57  ;;  %v6180_v57 = vld [vmem:[%s9131_s29 + $0x28c] ss:$16 sps:$4 sm:$0xff]  }
  0x3e   :  { %1481 = vmatpush1.bf16.msra.mxu0 %v6088_v59  ;;  %v6178_v59 = vld [vmem:[%s9131_s29 + $0x288] ss:$16 sps:$4 sm:$0xff]  }
  0x3f   :  { %1629 = vmatpush1.bf16.msra.mxu1 %v6085_v58  ;;  %1482 = vmatprep.subr.bf16.mxu0 %v6089_v60  ;;  %v6175_v58 = vld [vmem:[%s9131_s29 + $0x380] ss:$16 sps:$4 sm:$0xff]   ;;  %v6183_v60 = vld [vmem:[%s9131_s29 + $0x3a4] ss:$16 sps:$4 sm:$0xff]  }
  0x40   :  { %1630 = vmatprep.subr.bf16.mxu1 %v6093_v61  ;;  %v6186_v61 = vld [vmem:[%s9131_s29 + $0x2ac] ss:$16 sps:$4 sm:$0xff]  }
  0x42   :  { %1483 = vmatpush1.bf16.msra.mxu0 %v6094_v63  ;;  %v6184_v63 = vld [vmem:[%s9131_s29 + $0x2a8] ss:$16 sps:$4 sm:$0xff]  }
  0x43   :  { %1631 = vmatpush1.bf16.msra.mxu1 %v6091_v62  ;;  %1484 = vmatprep.subr.bf16.mxu0 %v6095_v0  ;;  %v6181_v62 = vld [vmem:[%s9131_s29 + $0x3a0] ss:$16 sps:$4 sm:$0xff]   ;;  %v6189_v0 = vld [vmem:[%s9131_s29 + $0x3c4] ss:$16 sps:$4 sm:$0xff]  }
  0x44   :  { %1632 = vmatprep.subr.bf16.mxu1 %v6099_v2  ;;  %v6192_v2 = vld [vmem:[%s9131_s29 + $0x2cc] ss:$16 sps:$4 sm:$0xff]  }
  0x46   :  { %1485 = vmatpush1.bf16.msra.mxu0 %v6100_v4  ;;  %v6190_v4 = vld [vmem:[%s9131_s29 + $0x2c8] ss:$16 sps:$4 sm:$0xff]  }
  0x47   :  { %1633 = vmatpush1.bf16.msra.mxu1 %v6097_v3  ;;  %1495 = vmatprep.subr.bf16.mxu0 %v6105_v5  ;;  %v6187_v3 = vld [vmem:[%s9131_s29 + $0x3c0] ss:$16 sps:$4 sm:$0xff]   ;;  %v6195_v5 = vld [vmem:[%s9131_s29 + $0x3e4] ss:$16 sps:$4 sm:$0xff]  }
  0x48   :  { %1634 = vmatprep.subr.bf16.mxu1 %v6108_v6  ;;  %v6198_v6 = vld [vmem:[%s9131_s29 + $0x2ec] ss:$16 sps:$4 sm:$0xff]  }
  0x49   :  { %1487 = vmatmul.mubr.bf16.vlgmr.msra.gmra.mrb[0].mxu0 %v7247_v7 }
  0x4a   :  { %1496 = vmatpush1.bf16.msra.mxu0 %v6103_v8  ;;  %1527 = vmatprep.mubr.bf16.mxu0 %v5181_v35  ;;  %v6196_v8 = vld [vmem:[%s9131_s29 + $0x2e8] ss:$16 sps:$4 sm:$0xff]  }
  0x4b   :  { %1635 = vmatpush1.bf16.msra.mxu1 %v6106_v9  ;;  %1497 = vmatprep.subr.bf16.mxu0 %v6111_v10  ;;  %v6203_v9 = vld [vmem:[%s9131_s29 + $0x404] ss:$16 sps:$4 sm:$0xff]   ;;  %v6206_v10 = vld [vmem:[%s9131_s29 + $0x30c] ss:$16 sps:$4 sm:$0xff]  }
  0x4c   :  { %1636 = vmatprep.subr.bf16.mxu1 %v6114_v11  ;;  %v7452_v11 = vcombine.low %v7325_v32, %v7325_v32  ;;  %v6233_v32 = vld [vmem:[%s9131_s29 + $0x4a4] ss:$16 sps:$4 sm:$0xff]  }
  0x4e   :  { %1498 = vmatpush1.bf16.msra.mxu0 %v6109_v12  ;;  %v6201_v12 = vld [vmem:[%s9131_s29 + $0x400] ss:$16 sps:$4 sm:$0xff]  }
  0x4f   :  { %1637 = vmatpush1.bf16.msra.mxu1 %v6112_v13  ;;  %1499 = vmatprep.subr.bf16.mxu0 %v6117_v14  ;;  %v6204_v13 = vld [vmem:[%s9131_s29 + $0x308] ss:$16 sps:$4 sm:$0xff]   ;;  %v6209_v14 = vld [vmem:[%s9131_s29 + $0x424] ss:$16 sps:$4 sm:$0xff]  }
  0x50   :  { %1638 = vmatprep.subr.bf16.mxu1 %v6120_v15  ;;  %v6212_v15 = vld [vmem:[%s9131_s29 + $0x32c] ss:$16 sps:$4 sm:$0xff]  }
  0x52   :  { %1500 = vmatpush1.bf16.msra.mxu0 %v6115_v16  ;;  %v7469_v16 = vld [vmem:[%s9132_s27 + $0x10] sm:$0xff] }
  0x53   :  { %1639 = vmatpush1.bf16.msra.mxu1 %v6118_v17  ;;  %1501 = vmatprep.subr.bf16.mxu0 %v6123_v18  ;;  %v7473_v17 = vcombine.high %v7469_v16, %v7469_v16  ;;  %v6207_v18 = vld [vmem:[%s9131_s29 + $0x420] ss:$16 sps:$4 sm:$0xff]  }
  0x54   :  { %1640 = vmatprep.subr.bf16.mxu1 %v6126_v19  ;;  %v6210_v19 = vld [vmem:[%s9131_s29 + $0x328] ss:$16 sps:$4 sm:$0xff]  }
  0x56   :  { %1502 = vmatpush1.bf16.msra.mxu0 %v6121_v20  ;;  %v6215_v20 = vld [vmem:[%s9131_s29 + $0x444] ss:$16 sps:$4 sm:$0xff]  }
  0x57   :  { %1641 = vmatpush1.bf16.msra.mxu1 %v6124_v21  ;;  %1503 = vmatprep.subr.bf16.mxu0 %v6129_v22  ;;  %v6218_v21 = vld [vmem:[%s9131_s29 + $0x34c] ss:$16 sps:$4 sm:$0xff]   ;;  %v6213_v22 = vld [vmem:[%s9131_s29 + $0x440] ss:$16 sps:$4 sm:$0xff]  }
  0x58   :  { %1642 = vmatprep.subr.bf16.mxu1 %v6132_v23  ;;  %v6216_v23 = vld [vmem:[%s9131_s29 + $0x348] ss:$16 sps:$4 sm:$0xff]  }
  0x5a   :  { %1504 = vmatpush1.bf16.msra.mxu0 %v6127_v24  ;;  %v6221_v24 = vld [vmem:[%s9131_s29 + $0x464] ss:$16 sps:$4 sm:$0xff]  }
  0x5b   :  { %1643 = vmatpush1.bf16.msra.mxu1 %v6130_v25  ;;  %1505 = vmatprep.subr.bf16.mxu0 %v6135_v26  ;;  %v6224_v25 = vld [vmem:[%s9131_s29 + $0x36c] ss:$16 sps:$4 sm:$0xff]   ;;  %v6219_v26 = vld [vmem:[%s9131_s29 + $0x460] ss:$16 sps:$4 sm:$0xff]  }
  0x5c   :  { %1644 = vmatprep.subr.bf16.mxu1 %v6138_v27  ;;  %v6222_v27 = vld [vmem:[%s9131_s29 + $0x368] ss:$16 sps:$4 sm:$0xff]  }
  0x5e   :  { %1506 = vmatpush1.bf16.msra.mxu0 %v6133_v28  ;;  %v6227_v28 = vld [vmem:[%s9131_s29 + $0x484] ss:$16 sps:$4 sm:$0xff]  }
  0x5f   :  { %1645 = vmatpush1.bf16.msra.mxu1 %v6136_v29  ;;  %1507 = vmatprep.subr.bf16.mxu0 %v6141_v30  ;;  %v6230_v29 = vld [vmem:[%s9131_s29 + $0x38c] ss:$16 sps:$4 sm:$0xff]   ;;  %v6225_v30 = vld [vmem:[%s9131_s29 + $0x480] ss:$16 sps:$4 sm:$0xff]  }
  0x60   :  { %1646 = vmatprep.subr.bf16.mxu1 %v6144_v31  ;;  %v6228_v31 = vld [vmem:[%s9131_s29 + $0x388] ss:$16 sps:$4 sm:$0xff]  }
  0x62   :  { %1508 = vmatpush1.bf16.msra.mxu0 %v6139_v33  ;;  %v6236_v33 = vld [vmem:[%s9131_s29 + $0x3ac] ss:$16 sps:$4 sm:$0xff]  }
  0x63   :  { %1647 = vmatpush1.bf16.msra.mxu1 %v6142_v34  ;;  %1509 = vmatprep.subr.bf16.mxu0 %v6147_v36  ;;  %v6231_v34 = vld [vmem:[%s9131_s29 + $0x4a0] ss:$16 sps:$4 sm:$0xff]   ;;  %v6239_v36 = vld [vmem:[%s9131_s29 + $0x4c4] ss:$16 sps:$4 sm:$0xff]  }
  0x64   :  { %1648 = vmatprep.subr.bf16.mxu1 %v6150_v37  ;;  %v6242_v37 = vld [vmem:[%s9131_s29 + $0x3cc] ss:$16 sps:$4 sm:$0xff]  }
  0x66   :  { %1510 = vmatpush1.bf16.msra.mxu0 %v6145_v38  ;;  %v6237_v38 = vld [vmem:[%s9131_s29 + $0x4c0] ss:$16 sps:$4 sm:$0xff]  }
  0x67   :  { %1649 = vmatpush1.bf16.msra.mxu1 %v6148_v39  ;;  %1511 = vmatprep.subr.bf16.mxu0 %v6153_v40  ;;  %v6240_v39 = vld [vmem:[%s9131_s29 + $0x3c8] ss:$16 sps:$4 sm:$0xff]   ;;  %v6245_v40 = vld [vmem:[%s9131_s29 + $0x4e4] ss:$16 sps:$4 sm:$0xff]  }
  0x68   :  { %1659 = vmatprep.subr.bf16.mxu1 %v6156_v41  ;;  %v6248_v41 = vld [vmem:[%s9131_s29 + $0x3ec] ss:$16 sps:$4 sm:$0xff]  }
  0x6a   :  { %1651 = vmatmul.mubr.bf16.vlgmr.msra.gmra.mrb[4].mxu1 %v7247_v7  ;;  %1512 = vmatpush1.bf16.msra.mxu0 %v6151_v42  ;;  %v6193_v7 = vld [vmem:[%s9131_s29 + $0x3e0] ss:$16 sps:$4 sm:$0xff]  }
  0x6b   :  { %1660 = vmatpush1.bf16.msra.mxu1 %v6154_v43  ;;  %1513 = vmatprep.subr.bf16.mxu0 %v6159_v44  ;;  %v6243_v42 = vld [vmem:[%s9131_s29 + $0x4e0] ss:$16 sps:$4 sm:$0xff]   ;;  %v6246_v43 = vld [vmem:[%s9131_s29 + $0x3e8] ss:$16 sps:$4 sm:$0xff]   ;;  %v6251_v44 = vld [vmem:[%s9131_s29 + $0x504] ss:$16 sps:$4 sm:$0xff]  }
  0x6c   :  { %1661 = vmatprep.subr.bf16.mxu1 %v6162_v45  ;;  %1691 = vmatprep.mubr.bf16.mxu1 %v5181_v35  ;;  %v6234_v35 = vld [vmem:[%s9131_s29 + $0x3a8] ss:$16 sps:$4 sm:$0xff]   ;;  %v6254_v45 = vld [vmem:[%s9131_s29 + $0x40c] ss:$16 sps:$4 sm:$0xff]  }
  0x6e   :  { %1514 = vmatpush1.bf16.msra.mxu0 %v6157_v46  ;;  %v6249_v46 = vld [vmem:[%s9131_s29 + $0x500] ss:$16 sps:$4 sm:$0xff]  }
  0x6f   :  { %1662 = vmatpush1.bf16.msra.mxu1 %v6160_v47  ;;  %1515 = vmatprep.subr.bf16.mxu0 %v6165_v48  ;;  %v6252_v47 = vld [vmem:[%s9131_s29 + $0x408] ss:$16 sps:$4 sm:$0xff]   ;;  %v6257_v48 = vld [vmem:[%s9131_s29 + $0x524] ss:$16 sps:$4 sm:$0xff]  }
  0x70   :  { %1663 = vmatprep.subr.bf16.mxu1 %v6168_v49  ;;  %v6260_v49 = vld [vmem:[%s9131_s29 + $0x42c] ss:$16 sps:$4 sm:$0xff]  }
  0x72   :  { %1516 = vmatpush1.bf16.msra.mxu0 %v6163_v50  ;;  %v6255_v50 = vld [vmem:[%s9131_s29 + $0x520] ss:$16 sps:$4 sm:$0xff]  }
  0x73   :  { %1664 = vmatpush1.bf16.msra.mxu1 %v6166_v51  ;;  %1517 = vmatprep.subr.bf16.mxu0 %v6171_v52  ;;  %v6258_v51 = vld [vmem:[%s9131_s29 + $0x428] ss:$16 sps:$4 sm:$0xff]   ;;  %v6263_v52 = vld [vmem:[%s9131_s29 + $0x544] ss:$16 sps:$4 sm:$0xff]  }
  0x74   :  { %1665 = vmatprep.subr.bf16.mxu1 %v6174_v53  ;;  %v6266_v53 = vld [vmem:[%s9131_s29 + $0x44c] ss:$16 sps:$4 sm:$0xff]  }
  0x76   :  { %1518 = vmatpush1.bf16.msra.mxu0 %v6169_v54  ;;  %v6261_v54 = vld [vmem:[%s9131_s29 + $0x540] ss:$16 sps:$4 sm:$0xff]  }
  0x77   :  { %1666 = vmatpush1.bf16.msra.mxu1 %v6172_v55  ;;  %1519 = vmatprep.subr.bf16.mxu0 %v6177_v56  ;;  %v6264_v55 = vld [vmem:[%s9131_s29 + $0x448] ss:$16 sps:$4 sm:$0xff]   ;;  %v6269_v56 = vld [vmem:[%s9131_s29 + $0x564] ss:$16 sps:$4 sm:$0xff]  }
  0x78   :  { %1667 = vmatprep.subr.bf16.mxu1 %v6180_v57  ;;  %v6272_v57 = vld [vmem:[%s9131_s29 + $0x46c] ss:$16 sps:$4 sm:$0xff]  }
  0x7a   :  { %1520 = vmatpush1.bf16.msra.mxu0 %v6175_v58  ;;  %v6267_v58 = vld [vmem:[%s9131_s29 + $0x560] ss:$16 sps:$4 sm:$0xff]  }
  0x7b   :  { %1668 = vmatpush1.bf16.msra.mxu1 %v6178_v59  ;;  %1521 = vmatprep.subr.bf16.mxu0 %v6183_v60  ;;  %v6270_v59 = vld [vmem:[%s9131_s29 + $0x468] ss:$16 sps:$4 sm:$0xff]   ;;  %v6275_v60 = vld [vmem:[%s9131_s29 + $0x584] ss:$16 sps:$4 sm:$0xff]  }
  0x7c   :  { %1669 = vmatprep.subr.bf16.mxu1 %v6186_v61  ;;  %v6278_v61 = vld [vmem:[%s9131_s29 + $0x48c] ss:$16 sps:$4 sm:$0xff]  }
  0x7e   :  { %1522 = vmatpush1.bf16.msra.mxu0 %v6181_v62  ;;  %v6273_v62 = vld [vmem:[%s9131_s29 + $0x580] ss:$16 sps:$4 sm:$0xff]  }
  0x7f   :  { %1670 = vmatpush1.bf16.msra.mxu1 %v6184_v63  ;;  %1523 = vmatprep.subr.bf16.mxu0 %v6189_v0  ;;  %v6276_v63 = vld [vmem:[%s9131_s29 + $0x488] ss:$16 sps:$4 sm:$0xff]   ;;  %v6281_v0 = vld [vmem:[%s9131_s29 + $0x5a4] ss:$16 sps:$4 sm:$0xff]  }
  0x80   :  { %1671 = vmatprep.subr.bf16.mxu1 %v6192_v2  ;;  %v6284_v2 = vld [vmem:[%s9131_s29 + $0x4ac] ss:$16 sps:$4 sm:$0xff]  }
  0x82   :  { %1524 = vmatpush1.bf16.msra.mxu0 %v6187_v3  ;;  %v6279_v3 = vld [vmem:[%s9131_s29 + $0x5a0] ss:$16 sps:$4 sm:$0xff]  }
  0x83   :  { %1672 = vmatpush1.bf16.msra.mxu1 %v6190_v4  ;;  %1525 = vmatprep.subr.bf16.mxu0 %v6195_v5  ;;  %v6282_v4 = vld [vmem:[%s9131_s29 + $0x4a8] ss:$16 sps:$4 sm:$0xff]   ;;  %v6287_v5 = vld [vmem:[%s9131_s29 + $0x5c4] ss:$16 sps:$4 sm:$0xff]  }
  0x84   :  { %1673 = vmatprep.subr.bf16.mxu1 %v6198_v6  ;;  %v6290_v6 = vld [vmem:[%s9131_s29 + $0x4cc] ss:$16 sps:$4 sm:$0xff]  }
  0x86   :  { %1526 = vmatpush1.bf16.msra.mxu0 %v6193_v7  ;;  %v6285_v7 = vld [vmem:[%s9131_s29 + $0x5c0] ss:$16 sps:$4 sm:$0xff]  }
  0x87   :  { %1674 = vmatpush1.bf16.msra.mxu1 %v6196_v8  ;;  %1536 = vmatprep.subr.bf16.mxu0 %v6203_v9  ;;  %v6288_v8 = vld [vmem:[%s9131_s29 + $0x4c8] ss:$16 sps:$4 sm:$0xff]   ;;  %v6293_v9 = vld [vmem:[%s9131_s29 + $0x5e4] ss:$16 sps:$4 sm:$0xff]  }
  0x88   :  { %1675 = vmatprep.subr.bf16.mxu1 %v6206_v10  ;;  %v6296_v10 = vld [vmem:[%s9131_s29 + $0x4ec] ss:$16 sps:$4 sm:$0xff]  }
  0x89   :  { %1528 = vmatmul.mubr.bf16.vlgmr.msra.gmra.mrb[0].mxu0 %v7452_v11 }
  0x8a   :  { %1537 = vmatpush1.bf16.msra.mxu0 %v6201_v12  ;;  %1568 = vmatprep.mubr.bf16.mxu0 %v7473_v17  ;;  %v6294_v12 = vld [vmem:[%s9131_s29 + $0x4e8] ss:$16 sps:$4 sm:$0xff]  }
  0x8b   :  { %1676 = vmatpush1.bf16.msra.mxu1 %v6204_v13  ;;  %1538 = vmatprep.subr.bf16.mxu0 %v6209_v14  ;;  %v6301_v13 = vld [vmem:[%s9131_s29 + $0x50c] ss:$16 sps:$4 sm:$0xff]  }
  0x8c   :  { %1677 = vmatprep.subr.bf16.mxu1 %v6212_v15  ;;  %v6349_v14 = vld [vmem:[%s9133_s30 + $0x4] ss:$8 sps:$4 sm:$0xff]   ;;  %v7661_v15 = vcombine.low %v7469_v16, %v7469_v16  ;;  %v6352_v16 = vld [vmem:[%s9133_s30 + $0x14] ss:$8 sps:$4 sm:$0xff]  }
  0x8e   :  { %1539 = vmatpush1.bf16.msra.mxu0 %v6207_v18  ;;  %v6347_v18 = vld [vmem:[%s9133_s30] ss:$8 sps:$4 sm:$0xff]  }
  0x8f   :  { %1678 = vmatpush1.bf16.msra.mxu1 %v6210_v19  ;;  %1540 = vmatprep.subr.bf16.mxu0 %v6215_v20  ;;  %v6304_v19 = vld [vmem:[%s9131_s29 + $0x52c] ss:$16 sps:$4 sm:$0xff]   ;;  %v6302_v20 = vld [vmem:[%s9131_s29 + $0x528] ss:$16 sps:$4 sm:$0xff]  }
  0x90   :  { %1679 = vmatprep.subr.bf16.mxu1 %v6218_v21  ;;  %v6350_v21 = vld [vmem:[%s9133_s30 + $0x10] ss:$8 sps:$4 sm:$0xff]  }
  0x92   :  { %1541 = vmatpush1.bf16.msra.mxu0 %v6213_v22  ;;  %v6307_v22 = vld [vmem:[%s9131_s29 + $0x54c] ss:$16 sps:$4 sm:$0xff]  }
  0x93   :  { %1680 = vmatpush1.bf16.msra.mxu1 %v6216_v23  ;;  %1542 = vmatprep.subr.bf16.mxu0 %v6221_v24  ;;  %v6355_v23 = vld [vmem:[%s9133_s30 + $0x24] ss:$8 sps:$4 sm:$0xff]   ;;  %v6305_v24 = vld [vmem:[%s9131_s29 + $0x548] ss:$16 sps:$4 sm:$0xff]  }
  0x94   :  { %1681 = vmatprep.subr.bf16.mxu1 %v6224_v25  ;;  %v6353_v25 = vld [vmem:[%s9133_s30 + $0x20] ss:$8 sps:$4 sm:$0xff]  }
  0x96   :  { %1543 = vmatpush1.bf16.msra.mxu0 %v6219_v26  ;;  %v6310_v26 = vld [vmem:[%s9131_s29 + $0x56c] ss:$16 sps:$4 sm:$0xff]  }
  0x97   :  { %1682 = vmatpush1.bf16.msra.mxu1 %v6222_v27  ;;  %1544 = vmatprep.subr.bf16.mxu0 %v6227_v28  ;;  %v6358_v27 = vld [vmem:[%s9133_s30 + $0x34] ss:$8 sps:$4 sm:$0xff]   ;;  %v6308_v28 = vld [vmem:[%s9131_s29 + $0x568] ss:$16 sps:$4 sm:$0xff]  }
  0x98   :  { %1683 = vmatprep.subr.bf16.mxu1 %v6230_v29  ;;  %v6356_v29 = vld [vmem:[%s9133_s30 + $0x30] ss:$8 sps:$4 sm:$0xff]  }
  0x9a   :  { %1545 = vmatpush1.bf16.msra.mxu0 %v6225_v30  ;;  %v6313_v30 = vld [vmem:[%s9131_s29 + $0x58c] ss:$16 sps:$4 sm:$0xff]  }
  0x9b   :  { %1684 = vmatpush1.bf16.msra.mxu1 %v6228_v31  ;;  %1546 = vmatprep.subr.bf16.mxu0 %v6233_v32  ;;  %v6361_v31 = vld [vmem:[%s9133_s30 + $0x44] ss:$8 sps:$4 sm:$0xff]   ;;  %v6311_v32 = vld [vmem:[%s9131_s29 + $0x588] ss:$16 sps:$4 sm:$0xff]  }
  0x9c   :  { %1685 = vmatprep.subr.bf16.mxu1 %v6236_v33  ;;  %v6359_v33 = vld [vmem:[%s9133_s30 + $0x40] ss:$8 sps:$4 sm:$0xff]  }
  0x9e   :  { %1547 = vmatpush1.bf16.msra.mxu0 %v6231_v34  ;;  %v6316_v34 = vld [vmem:[%s9131_s29 + $0x5ac] ss:$16 sps:$4 sm:$0xff]  }
  0x9f   :  { %1686 = vmatpush1.bf16.msra.mxu1 %v6234_v35  ;;  %1548 = vmatprep.subr.bf16.mxu0 %v6239_v36  ;;  %v6364_v35 = vld [vmem:[%s9133_s30 + $0x54] ss:$8 sps:$4 sm:$0xff]   ;;  %v6314_v36 = vld [vmem:[%s9131_s29 + $0x5a8] ss:$16 sps:$4 sm:$0xff]  }
  0xa0   :  { %1687 = vmatprep.subr.bf16.mxu1 %v6242_v37  ;;  %v6362_v37 = vld [vmem:[%s9133_s30 + $0x50] ss:$8 sps:$4 sm:$0xff]  }
  0xa2   :  { %1549 = vmatpush1.bf16.msra.mxu0 %v6237_v38  ;;  %v6319_v38 = vld [vmem:[%s9131_s29 + $0x5cc] ss:$16 sps:$4 sm:$0xff]  }
  0xa3   :  { %1688 = vmatpush1.bf16.msra.mxu1 %v6240_v39  ;;  %1550 = vmatprep.subr.bf16.mxu0 %v6245_v40  ;;  %v6367_v39 = vld [vmem:[%s9133_s30 + $0x64] ss:$8 sps:$4 sm:$0xff]   ;;  %v6317_v40 = vld [vmem:[%s9131_s29 + $0x5c8] ss:$16 sps:$4 sm:$0xff]  }
  0xa4   :  { %1689 = vmatprep.subr.bf16.mxu1 %v6248_v41  ;;  %v6365_v41 = vld [vmem:[%s9133_s30 + $0x60] ss:$8 sps:$4 sm:$0xff]  }
  0xa6   :  { %1551 = vmatpush1.bf16.msra.mxu0 %v6243_v42  ;;  %v6322_v42 = vld [vmem:[%s9131_s29 + $0x5ec] ss:$16 sps:$4 sm:$0xff]  }
  0xa7   :  { %1690 = vmatpush1.bf16.msra.mxu1 %v6246_v43  ;;  %1552 = vmatprep.subr.bf16.mxu0 %v6251_v44  ;;  %v6370_v43 = vld [vmem:[%s9133_s30 + $0x74] ss:$8 sps:$4 sm:$0xff]   ;;  %v6320_v44 = vld [vmem:[%s9131_s29 + $0x5e8] ss:$16 sps:$4 sm:$0xff]  }
  0xa8   :  { %1700 = vmatprep.subr.bf16.mxu1 %v6254_v45  ;;  %v6368_v45 = vld [vmem:[%s9133_s30 + $0x70] ss:$8 sps:$4 sm:$0xff]  }
  0xaa   :  { %1692 = vmatmul.mubr.bf16.vlgmr.msra.gmra.mrb[4].mxu1 %v7452_v11  ;;  %1553 = vmatpush1.bf16.msra.mxu0 %v6249_v46  ;;  %v6291_v11 = vld [vmem:[%s9131_s29 + $0x5e0] ss:$16 sps:$4 sm:$0xff]   ;;  %v6325_v46 = vld [vmem:[%s9131_s29 + $0x60c] ss:$16 sps:$4 sm:$0xff]  }
  0xab   :  { %1701 = vmatpush1.bf16.msra.mxu1 %v6252_v47  ;;  %1554 = vmatprep.subr.bf16.mxu0 %v6257_v48  ;;  %v6373_v47 = vld [vmem:[%s9133_s30 + $0x84] ss:$8 sps:$4 sm:$0xff]   ;;  %v6323_v48 = vld [vmem:[%s9131_s29 + $0x608] ss:$16 sps:$4 sm:$0xff]  }
  0xac   :  { %1702 = vmatprep.subr.bf16.mxu1 %v6260_v49  ;;  %1732 = vmatprep.mubr.bf16.mxu1 %v7473_v17  ;;  %v6299_v17 = vld [vmem:[%s9131_s29 + $0x508] ss:$16 sps:$4 sm:$0xff]   ;;  %v6328_v49 = vld [vmem:[%s9131_s29 + $0x62c] ss:$16 sps:$4 sm:$0xff]  }
  0xae   :  { %1555 = vmatpush1.bf16.msra.mxu0 %v6255_v50  ;;  %v6371_v50 = vld [vmem:[%s9133_s30 + $0x80] ss:$8 sps:$4 sm:$0xff]  }
  0xaf   :  { %1703 = vmatpush1.bf16.msra.mxu1 %v6258_v51  ;;  %1556 = vmatprep.subr.bf16.mxu0 %v6263_v52  ;;  %v6376_v51 = vld [vmem:[%s9133_s30 + $0x94] ss:$8 sps:$4 sm:$0xff]   ;;  %v6326_v52 = vld [vmem:[%s9131_s29 + $0x628] ss:$16 sps:$4 sm:$0xff]  }
  0xb0   :  { %1704 = vmatprep.subr.bf16.mxu1 %v6266_v53  ;;  %v6331_v53 = vld [vmem:[%s9131_s29 + $0x64c] ss:$16 sps:$4 sm:$0xff]  }
  0xb2   :  { %1557 = vmatpush1.bf16.msra.mxu0 %v6261_v54  ;;  %v6374_v54 = vld [vmem:[%s9133_s30 + $0x90] ss:$8 sps:$4 sm:$0xff]  }
  0xb3   :  { %1705 = vmatpush1.bf16.msra.mxu1 %v6264_v55  ;;  %1558 = vmatprep.subr.bf16.mxu0 %v6269_v56  ;;  %v6379_v55 = vld [vmem:[%s9133_s30 + $0xa4] ss:$8 sps:$4 sm:$0xff]   ;;  %v6329_v56 = vld [vmem:[%s9131_s29 + $0x648] ss:$16 sps:$4 sm:$0xff]  }
  0xb4   :  { %1706 = vmatprep.subr.bf16.mxu1 %v6272_v57  ;;  %v6334_v57 = vld [vmem:[%s9131_s29 + $0x66c] ss:$16 sps:$4 sm:$0xff]  }
  0xb6   :  { %1559 = vmatpush1.bf16.msra.mxu0 %v6267_v58  ;;  %v6377_v58 = vld [vmem:[%s9133_s30 + $0xa0] ss:$8 sps:$4 sm:$0xff]  }
  0xb7   :  { %1707 = vmatpush1.bf16.msra.mxu1 %v6270_v59  ;;  %1560 = vmatprep.subr.bf16.mxu0 %v6275_v60  ;;  %v6382_v59 = vld [vmem:[%s9133_s30 + $0xb4] ss:$8 sps:$4 sm:$0xff]   ;;  %v6332_v60 = vld [vmem:[%s9131_s29 + $0x668] ss:$16 sps:$4 sm:$0xff]  }
  0xb8   :  { %1708 = vmatprep.subr.bf16.mxu1 %v6278_v61  ;;  %v6337_v61 = vld [vmem:[%s9131_s29 + $0x68c] ss:$16 sps:$4 sm:$0xff]  }
  0xba   :  { %1561 = vmatpush1.bf16.msra.mxu0 %v6273_v62  ;;  %v6380_v62 = vld [vmem:[%s9133_s30 + $0xb0] ss:$8 sps:$4 sm:$0xff]  }
  0xbb   :  { %1709 = vmatpush1.bf16.msra.mxu1 %v6276_v63  ;;  %1562 = vmatprep.subr.bf16.mxu0 %v6281_v0  ;;  %v6385_v63 = vld [vmem:[%s9133_s30 + $0xc4] ss:$8 sps:$4 sm:$0xff]   ;;  %v6335_v0 = vld [vmem:[%s9131_s29 + $0x688] ss:$16 sps:$4 sm:$0xff]  }
  0xbc   :  { %1710 = vmatprep.subr.bf16.mxu1 %v6284_v2  ;;  %v6340_v2 = vld [vmem:[%s9131_s29 + $0x6ac] ss:$16 sps:$4 sm:$0xff]  }
  0xbe   :  { %1563 = vmatpush1.bf16.msra.mxu0 %v6279_v3  ;;  %v6383_v3 = vld [vmem:[%s9133_s30 + $0xc0] ss:$8 sps:$4 sm:$0xff]  }
  0xbf   :  { %1711 = vmatpush1.bf16.msra.mxu1 %v6282_v4  ;;  %1564 = vmatprep.subr.bf16.mxu0 %v6287_v5  ;;  %v6388_v4 = vld [vmem:[%s9133_s30 + $0xd4] ss:$8 sps:$4 sm:$0xff]   ;;  %v6338_v5 = vld [vmem:[%s9131_s29 + $0x6a8] ss:$16 sps:$4 sm:$0xff]  }
  0xc0   :  { %1712 = vmatprep.subr.bf16.mxu1 %v6290_v6  ;;  %v6343_v6 = vld [vmem:[%s9131_s29 + $0x6cc] ss:$16 sps:$4 sm:$0xff]  }
  0xc2   :  { %1565 = vmatpush1.bf16.msra.mxu0 %v6285_v7  ;;  %v6386_v7 = vld [vmem:[%s9133_s30 + $0xd0] ss:$8 sps:$4 sm:$0xff]  }
  0xc3   :  { %1713 = vmatpush1.bf16.msra.mxu1 %v6288_v8  ;;  %1566 = vmatprep.subr.bf16.mxu0 %v6293_v9 }
  0xc4   :  { %1714 = vmatprep.subr.bf16.mxu1 %v6296_v10 }
  0xc6   :  { %1567 = vmatpush1.bf16.msra.mxu0 %v6291_v11  ;;  %v6341_v11 = vld [vmem:[%s9131_s29 + $0x6c8] ss:$16 sps:$4 sm:$0xff]  }
  0xc7   :  { %1715 = vmatpush1.bf16.msra.mxu1 %v6294_v12  ;;  %2186 = vmatprep.subr.bf16.mxu0 %v6349_v14  ;;  %v6344_v14 = vld [vmem:[%s9131_s29 + $0x6e8] ss:$16 sps:$4 sm:$0xff]  }
  0xc8   :  { %1716 = vmatprep.subr.bf16.mxu1 %v6301_v13  ;;  %v6346_v13 = vld [vmem:[%s9131_s29 + $0x6ec] ss:$16 sps:$4 sm:$0xff]  }
  0xc9   :  { %1569 = vmatmul.mubr.bf16.vlgmr.msra.gmra.mrb[0].mxu0 %v7661_v15 }
  0xca   :  { %2187 = vmatpush1.bf16.msra.mxu0 %v6347_v18  ;;  %v6389_v18 = vld [vmem:[%s9133_s30 + $0xe0] ss:$8 sps:$4 sm:$0xff]  }
  0xcb   :  { %1717 = vmatpush1.bf16.msra.mxu1 %v6299_v17  ;;  %2188 = vmatprep.subr.bf16.mxu0 %v6352_v16  ;;  %v6391_v17 = vld [vmem:[%s9133_s30 + $0xe4] ss:$8 sps:$4 sm:$0xff]   ;;  %v6392_v16 = vld [vmem:[%s9133_s30 + $0xf0] ss:$8 sps:$4 sm:$0xff]  }
  0xcc   :  { %1718 = vmatprep.subr.bf16.mxu1 %v6304_v19  ;;  %v6394_v19 = vld [vmem:[%s9133_s30 + $0xf4] ss:$8 sps:$4 sm:$0xff]  }
  0xce   :  { %2189 = vmatpush1.bf16.msra.mxu0 %v6350_v21  ;;  %v6443_v21 = vld [vmem:[%s9109_s3 + $0x40] sm:$0xff]  }
  0xcf   :  { %1719 = vmatpush1.bf16.msra.mxu1 %v6302_v20  ;;  %2190 = vmatprep.subr.bf16.mxu0 %v6355_v23  ;;  %v6397_v20 = vld [vmem:[%s9133_s30 + $0x104] ss:$8 sps:$4 sm:$0xff]  }
  0xd0   :  { %1720 = vmatprep.subr.bf16.mxu1 %v6307_v22  ;;  %v6444_v22 = vld [vmem:[%s9109_s3] sm:$0xff]   ;;  %v6445_v23 = vld [vmem:[%s9109_s3 + $0x48] sm:$0xff]  }
  0xd2   :  { %2191 = vmatpush1.bf16.msra.mxu0 %v6353_v25  ;;  %v6447_v25 = vld [vmem:[%s9109_s3 + $0x50] sm:$0xff]  }
  0xd3   :  { %1721 = vmatpush1.bf16.msra.mxu1 %v6305_v24  ;;  %2192 = vmatprep.subr.bf16.mxu0 %v6358_v27  ;;  %v6446_v24 = vld [vmem:[%s9109_s3 + $0x8] sm:$0xff]   ;;  %v6449_v27 = vld [vmem:[%s9109_s3 + $0x58] sm:$0xff]  }
  0xd4   :  { %1722 = vmatprep.subr.bf16.mxu1 %v6310_v26  ;;  %v6448_v26 = vld [vmem:[%s9109_s3 + $0x10] sm:$0xff]  }
  0xd6   :  { %2193 = vmatpush1.bf16.msra.mxu0 %v6356_v29  ;;  %v6451_v29 = vld [vmem:[%s9109_s3 + $0x60] sm:$0xff]  }
  0xd7   :  { %1723 = vmatpush1.bf16.msra.mxu1 %v6308_v28  ;;  %2194 = vmatprep.subr.bf16.mxu0 %v6361_v31  ;;  %v6450_v28 = vld [vmem:[%s9109_s3 + $0x18] sm:$0xff]   ;;  %v6453_v31 = vld [vmem:[%s9109_s3 + $0x68] sm:$0xff]  }
  0xd8   :  { %1724 = vmatprep.subr.bf16.mxu1 %v6313_v30  ;;  %v6452_v30 = vld [vmem:[%s9109_s3 + $0x20] sm:$0xff]  }
  0xda   :  { %2195 = vmatpush1.bf16.msra.mxu0 %v6359_v33  ;;  %v289_v33 = vlaneseq }
  0xdb   :  { %1725 = vmatpush1.bf16.msra.mxu1 %v6311_v32  ;;  %2196 = vmatprep.subr.bf16.mxu0 %v6364_v35  ;;  %v6454_v32 = vld [vmem:[%s9109_s3 + $0x28] sm:$0xff]  }
  0xdc   :  { %1726 = vmatprep.subr.bf16.mxu1 %v6316_v34  ;;  %v7898_v34 = vshrl.u32 %v289_v33, 7 }
  0xde   :  { %2197 = vmatpush1.bf16.msra.mxu0 %v6362_v37  ;;  %v7901_v35 = vsub.s32 0, %v7898_v34  ;;  %v7909_v37 = vsub.s32 1, %v7898_v34 }
  0xdf   :  { %1727 = vmatpush1.bf16.msra.mxu1 %v6314_v36  ;;  %2198 = vmatprep.subr.bf16.mxu0 %v6367_v39  ;;  %v7906_v36 = vld [vmem:[%s9110_s9] sm:$0xf] }
  0xe0   :  { %1728 = vmatprep.subr.bf16.mxu1 %v6319_v38  ;;  %v292_v38 = vrot.slane %v7906_v36, %v7901_v35  ;;  %v296_v39 = vrot.slane %v7906_v36, %v7909_v37 }
  0xe2   :  { %2199 = vmatpush1.bf16.msra.mxu0 %v6365_v41 }
  0xe3   :  { %1729 = vmatpush1.bf16.msra.mxu1 %v6317_v40  ;;  %2200 = vmatprep.subr.bf16.mxu0 %v6370_v43 }
  0xe4   :  { %1730 = vmatprep.subr.bf16.mxu1 %v6322_v42 }
  0xe6   :  { %2201 = vmatpush1.bf16.msra.mxu0 %v6368_v45 }
  0xe7   :  { %1731 = vmatpush1.bf16.msra.mxu1 %v6320_v44  ;;  %2202 = vmatprep.subr.bf16.mxu0 %v6373_v47 }
  0xe8   :  { %1741 = vmatprep.subr.bf16.mxu1 %v6325_v46 }
  0xea   :  { %1733 = vmatmul.mubr.bf16.vlgmr.msra.gmra.mrb[4].mxu1 %v7661_v15  ;;  %2203 = vmatpush1.bf16.msra.mxu0 %v6371_v50  ;;  %v6943_v15 = vld [vmem:[%s9132_s27 + $0x18] ss:$0 sps:$4 sm:$0xff]  }
  0xeb   :  { %1742 = vmatpush1.bf16.msra.mxu1 %v6323_v48  ;;  %1773 = vmatprep.mubr.bf16.mxu1 %v6944_v1 }
  0xec   :  { %1743 = vmatprep.subr.bf16.mxu1 %v6328_v49  ;;  %2204 = vmatprep.subr.bf16.mxu0 %v6376_v51  ;;  %v6395_v51 = vld [vmem:[%s9133_s30 + $0x100] ss:$8 sps:$4 sm:$0xff]  }
  0xee   :  { %2205 = vmatpush1.bf16.msra.mxu0 %v6374_v54  ;;  %v6398_v54 = vld [vmem:[%s9133_s30 + $0x110] ss:$8 sps:$4 sm:$0xff]  }
  0xef   :  { %1744 = vmatpush1.bf16.msra.mxu1 %v6326_v52  ;;  %2206 = vmatprep.subr.bf16.mxu0 %v6379_v55  ;;  %v6403_v55 = vld [vmem:[%s9133_s30 + $0x124] ss:$8 sps:$4 sm:$0xff]  }
  0xf0   :  { %1745 = vmatprep.subr.bf16.mxu1 %v6331_v53  ;;  %v6400_v53 = vld [vmem:[%s9133_s30 + $0x114] ss:$8 sps:$4 sm:$0xff]  }
  0xf2   :  { %2207 = vmatpush1.bf16.msra.mxu0 %v6377_v58  ;;  %v6404_v58 = vld [vmem:[%s9133_s30 + $0x130] ss:$8 sps:$4 sm:$0xff]  }
  0xf3   :  { %1746 = vmatpush1.bf16.msra.mxu1 %v6329_v56  ;;  %2208 = vmatprep.subr.bf16.mxu0 %v6382_v59  ;;  %v6401_v56 = vld [vmem:[%s9133_s30 + $0x120] ss:$8 sps:$4 sm:$0xff]   ;;  %v6409_v59 = vld [vmem:[%s9133_s30 + $0x144] ss:$8 sps:$4 sm:$0xff]  }
  0xf4   :  { %1747 = vmatprep.subr.bf16.mxu1 %v6334_v57  ;;  %v6406_v57 = vld [vmem:[%s9133_s30 + $0x134] ss:$8 sps:$4 sm:$0xff]  }
  0xf6   :  { %2209 = vmatpush1.bf16.msra.mxu0 %v6380_v62  ;;  %v6410_v62 = vld [vmem:[%s9133_s30 + $0x150] ss:$8 sps:$4 sm:$0xff]  }
  0xf7   :  { %1748 = vmatpush1.bf16.msra.mxu1 %v6332_v60  ;;  %2210 = vmatprep.subr.bf16.mxu0 %v6385_v63  ;;  %v6407_v60 = vld [vmem:[%s9133_s30 + $0x140] ss:$8 sps:$4 sm:$0xff]   ;;  %v6415_v63 = vld [vmem:[%s9133_s30 + $0x164] ss:$8 sps:$4 sm:$0xff]  }
  0xf8   :  { %1749 = vmatprep.subr.bf16.mxu1 %v6337_v61  ;;  %v6412_v61 = vld [vmem:[%s9133_s30 + $0x154] ss:$8 sps:$4 sm:$0xff]  }
  0xfa   :  { %2211 = vmatpush1.bf16.msra.mxu0 %v6383_v3  ;;  %v6416_v3 = vld [vmem:[%s9133_s30 + $0x170] ss:$8 sps:$4 sm:$0xff]  }
  0xfb   :  { %1750 = vmatpush1.bf16.msra.mxu1 %v6335_v0  ;;  %2212 = vmatprep.subr.bf16.mxu0 %v6388_v4  ;;  %v6413_v0 = vld [vmem:[%s9133_s30 + $0x160] ss:$8 sps:$4 sm:$0xff]   ;;  %v6421_v4 = vld [vmem:[%s9133_s30 + $0x184] ss:$8 sps:$4 sm:$0xff]  }
  0xfc   :  { %1751 = vmatprep.subr.bf16.mxu1 %v6340_v2  ;;  %v6418_v2 = vld [vmem:[%s9133_s30 + $0x174] ss:$8 sps:$4 sm:$0xff]  }
  0xfd   :  { %v7831_v8 = vpop.f32.mrb[0].mxu1 }
  0xfe   :  { %v7833_v9 = vpop.f32.mrb[1].mxu1  ;;  %2213 = vmatpush1.bf16.msra.mxu0 %v6386_v7  ;;  %v6422_v7 = vld [vmem:[%s9133_s30 + $0x190] ss:$8 sps:$4 sm:$0xff]  }
  0xff   :  { %v1615_v10 = vpop.f32.mrb[2].mxu1  ;;  %1752 = vmatpush1.bf16.msra.mxu1 %v6338_v5  ;;  %2214 = vmatprep.subr.bf16.mxu0 %v6391_v17  ;;  %v6419_v5 = vld [vmem:[%s9133_s30 + $0x180] ss:$8 sps:$4 sm:$0xff]   ;;  %v7999_v17 = vsub.s32 3, %v7898_v34 }
 0x100   :  { %v1616_v12 = vpop.f32.mrb[3].mxu1  ;;  %1753 = vmatprep.subr.bf16.mxu1 %v6343_v6  ;;  %v6424_v6 = vld [vmem:[%s9133_s30 + $0x194] ss:$8 sps:$4 sm:$0xff]  }
 0x101   :  { %v6430_v10 = vld [vmem:[%s9133_s30 + $0x1b4] ss:$8 sps:$4 sm:$0xff]   ;;  %v6433_v12 = vld [vmem:[%s9133_s30 + $0x1c4] ss:$8 sps:$4 sm:$0xff]  }
 0x102   :  { %2215 = vmatpush1.bf16.msra.mxu0 %v6389_v18  ;;  %v6434_v18 = vld [vmem:[%s9133_s30 + $0x1d0] ss:$8 sps:$4 sm:$0xff]  }
 0x103   :  { %1754 = vmatpush1.bf16.msra.mxu1 %v6341_v11  ;;  %2216 = vmatprep.subr.bf16.mxu0 %v6394_v19  ;;  %v6428_v11 = vld [vmem:[%s9133_s30 + $0x1b0] ss:$8 sps:$4 sm:$0xff]  }
 0x104   :  { %1755 = vmatprep.subr.bf16.mxu1 %v6346_v13  ;;  %v6431_v13 = vld [vmem:[%s9133_s30 + $0x1c0] ss:$8 sps:$4 sm:$0xff]  }
 0x106   :  { %2217 = vmatpush1.bf16.msra.mxu0 %v6392_v16  ;;  %v6439_v16 = vld [vmem:[%s9133_s30 + $0x1e4] ss:$8 sps:$4 sm:$0xff]  }
 0x107   :  { %1756 = vmatpush1.bf16.msra.mxu1 %v6344_v14  ;;  %2227 = vmatprep.subr.bf16.mxu0 %v6397_v20  ;;  %v6436_v14 = vld [vmem:[%s9133_s30 + $0x1d4] ss:$8 sps:$4 sm:$0xff]   ;;  %v304_v20 = vrot.slane %v7906_v36, %v7999_v17 }
 0x108   :  { %5827 = vmatprep.subr.bf16.mxu1 %v6443_v21 }
 0x10a   :  { %1774 = vmatmul.mubr.bf16.vlgmr.msra.gmra.mrb[4].mxu1 %v6943_v15  ;;  %v7996_v15 = vsub.s32 2, %v7898_v34 }
 0x10b   :  { %5828 = vmatpush3.bf16.msra.mxu1 %v6444_v22  ;;  %v6437_v22 = vld [vmem:[%s9133_s30 + $0x1e0] ss:$8 sps:$4 sm:$0xff]  }
 0x10c   :  { %5829 = vmatprep.subr.bf16.mxu1 %v6445_v23  ;;  %v300_v19 = vrot.slane %v7906_v36, %v7996_v15  ;;  %v6455_v36 = vld [vmem:[%s9109_s3 + $0x70] sm:$0xff]  }
 0x10f   :  { %5830 = vmatpush3.bf16.msra.mxu1 %v6446_v24 }
 0x110   :  { %5831 = vmatprep.subr.bf16.mxu1 %v6447_v25  ;;  %v6442_v25 = vld [vmem:[%s9133_s30 + $0x1f4] ss:$8 sps:$4 sm:$0xff]  }
 0x113   :  { %5832 = vmatpush3.bf16.msra.mxu1 %v6448_v26 }
 0x114   :  { %5833 = vmatprep.subr.bf16.mxu1 %v6449_v27 }
 0x117   :  { %5834 = vmatpush3.bf16.msra.mxu1 %v6450_v28 }
 0x118   :  { %5835 = vmatprep.subr.bf16.mxu1 %v6451_v29 }
 0x11b   :  { %5836 = vmatpush3.bf16.msra.mxu1 %v6452_v30  ;;  %v6440_v30 = vld [vmem:[%s9133_s30 + $0x1f0] ss:$8 sps:$4 sm:$0xff]  }
 0x11c   :  { %5837 = vmatprep.subr.bf16.mxu1 %v6453_v31 }
 0x11f   :  { %5838 = vmatpush3.bf16.msra.mxu1 %v6454_v32 }
 0x120   :  { %5839 = vmatprep.subr.bf16.mxu1 %v6455_v36  ;;  %v6487_v36 = vld [vmem:[%s9115_s6 + $0x40] ss:$8 sps:$4 sm:$0xff]  }
 0x19c   :  { %v1570_v40 = vpop.f32.mrb[0].mxu0 }
 0x19d   :  { %v5951_v41 = vadd.f32 %v1570_v40, %v292_v38  ;;  %v1572_v42 = vpop.f32.mrb[1].mxu0  ;;  %v6456_v38 = vld [vmem:[%s9109_s3 + $0x30] sm:$0xff]   ;;  %v6458_v40 = vld [vmem:[%s9109_s3 + $0x38] sm:$0xff]  }
 0x19e   :  { %v5953_v43 = vadd.f32 %v1572_v42, %v296_v39  ;;  %v1574_v44 = vpop.f32.mrb[2].mxu0  ;;  %5840 = vmatpush3.bf16.msra.mxu1 %v6456_v38  ;;  %v6457_v39 = vld [vmem:[%s9109_s3 + $0x78] sm:$0xff]   ;;  %v1854_v42 = vld [vmem:[%s9112_s10] sm:$0x3] }
 0x19f   :  { %v5952_v45 = vadd.f32 %v5951_v41, %v7831_v8  ;;  %v1575_v46 = vpop.f32.mrb[3].mxu0  ;;  %v6427_v8 = vld [vmem:[%s9133_s30 + $0x1a4] ss:$8 sps:$4 sm:$0xff]   ;;  %5841 = vmatprep.subr.bf16.mxu1 %v6457_v39  ;;  %v6945_v41 = vmov 0.0   ;;  %v1863_v44 = vrot.slane %v1854_v42, %v7909_v37  ;;  %v6492_v38 = vld [vmem:[%s9115_s6 + $0x54] ss:$8 sps:$4 sm:$0xff]  }
 0x1a0   :  { %v5954_v47 = vadd.f32 %v5953_v43, %v7833_v9  ;;  %v6425_v9 = vld [vmem:[%s9133_s30 + $0x1a0] ss:$8 sps:$4 sm:$0xff]   ;;  %v1859_v43 = vrot.slane %v1854_v42, %v7901_v35  ;;  %v6490_v39 = vld [vmem:[%s9115_s6 + $0x50] ss:$8 sps:$4 sm:$0xff]   ;;  %v6498_v42 = vld [vmem:[%s9115_s6 + $0x74] ss:$8 sps:$4 sm:$0xff]  }
 0x1a1   :  { %v1782_v48 = vmax.f32 %v5952_v45, 0.0 }
 0x1a2   :  { %v1783_v49 = vmax.f32 %v5954_v47, 0.0  ;;  %5842 = vmatpush3.bf16.msra.mxu1 %v6458_v40  ;;  %v6495_v40 = vld [vmem:[%s9115_s6 + $0x64] ss:$8 sps:$4 sm:$0xff]  }
 0x1a3   :  { %v1786_v52 = vpack.c.bf16 %v1782_v48, %v1782_v48  ;;  %5911 = vmatprep.subr.bf16.mxu1 %v6945_v41 }
 0x1a4   :  { %v1787_v50 = vpack.c.bf16 %v1783_v49, %v1783_v49 }
 0x1a6   :  { %2218 = vmatprep.mubr.bf16.mxu0 %v1787_v50 }
 0x1a7   :  { %2219 = vmatmul.mubr.bf16.vlgmr.msra.gmra.mrb[4].mxu0 %v1786_v52 }
 0x1a8   :  { %2228 = vmatpush1.bf16.msra.mxu0 %v6395_v51 }
 0x1a9   :  { %2229 = vmatprep.subr.bf16.mxu0 %v6400_v53 }
 0x1ac   :  { %2230 = vmatpush1.bf16.msra.mxu0 %v6398_v54  ;;  %v6459_v54 = vld [vmem:[%s9111_s4] sm:$0xff]  }
 0x1ad   :  { %2231 = vmatprep.subr.bf16.mxu0 %v6403_v55 }
 0x1b0   :  { %2232 = vmatpush1.bf16.msra.mxu0 %v6401_v56  ;;  %v6460_v56 = vld [vmem:[%s9111_s4 + $0x8] sm:$0xff]  }
 0x1b1   :  { %2233 = vmatprep.subr.bf16.mxu0 %v6406_v57  ;;  %v6461_v57 = vld [vmem:[%s9111_s4 + $0x10] sm:$0xff]  }
 0x1b4   :  { %2234 = vmatpush1.bf16.msra.mxu0 %v6404_v58  ;;  %v6462_v58 = vld [vmem:[%s9111_s4 + $0x18] sm:$0xff]  }
 0x1b5   :  { %2235 = vmatprep.subr.bf16.mxu0 %v6409_v59  ;;  %v6463_v59 = vld [vmem:[%s9111_s4 + $0x20] sm:$0xff]  }
 0x1b8   :  { %2236 = vmatpush1.bf16.msra.mxu0 %v6407_v60  ;;  %v6464_v60 = vld [vmem:[%s9111_s4 + $0x28] sm:$0xff]  }
 0x1b9   :  { %2237 = vmatprep.subr.bf16.mxu0 %v6412_v61  ;;  %v6465_v61 = vld [vmem:[%s9111_s4 + $0x30] sm:$0xff]  }
 0x1bc   :  { %2238 = vmatpush1.bf16.msra.mxu0 %v6410_v62  ;;  %v6466_v62 = vld [vmem:[%s9111_s4 + $0x38] sm:$0xff]  }
 0x1bd   :  { %2239 = vmatprep.subr.bf16.mxu0 %v6415_v63 }
 0x1c0   :  { %2240 = vmatpush1.bf16.msra.mxu0 %v6413_v0  ;;  %v5473_v0 = vld [vmem:[%s9114_s11] ss:$0 sm:$0xff] }
 0x1c1   :  { %2241 = vmatprep.subr.bf16.mxu0 %v6418_v2 }
 0x1c4   :  { %2242 = vmatpush1.bf16.msra.mxu0 %v6416_v3 }
 0x1c5   :  { %2243 = vmatprep.subr.bf16.mxu0 %v6421_v4 }
 0x1c8   :  { %2244 = vmatpush1.bf16.msra.mxu0 %v6419_v5 }
 0x1c9   :  { %2245 = vmatprep.subr.bf16.mxu0 %v6424_v6 }
 0x1cc   :  { %2246 = vmatpush1.bf16.msra.mxu0 %v6422_v7 }
 0x1cd   :  { %2247 = vmatprep.subr.bf16.mxu0 %v6427_v8  ;;  %v6467_v8 = vld [vmem:[%s9113_s5] sm:$0xff]  }
 0x1d0   :  { %2248 = vmatpush1.bf16.msra.mxu0 %v6425_v9 }
 0x1d1   :  { %2249 = vmatprep.subr.bf16.mxu0 %v6430_v10  ;;  %v6468_v10 = vld [vmem:[%s9113_s5 + $0x8] sm:$0xff]  }
 0x1d4   :  { %2250 = vmatpush1.bf16.msra.mxu0 %v6428_v11  ;;  %v6469_v11 = vld [vmem:[%s9113_s5 + $0x10] sm:$0xff]  }
 0x1d5   :  { %2251 = vmatprep.subr.bf16.mxu0 %v6433_v12  ;;  %v6470_v12 = vld [vmem:[%s9113_s5 + $0x18] sm:$0xff]  }
 0x1d8   :  { %2252 = vmatpush1.bf16.msra.mxu0 %v6431_v13  ;;  %v6471_v13 = vld [vmem:[%s9113_s5 + $0x20] sm:$0xff]  }
 0x1d9   :  { %2253 = vmatprep.subr.bf16.mxu0 %v6436_v14  ;;  %v6472_v14 = vld [vmem:[%s9113_s5 + $0x28] sm:$0xff]  }
 0x1dc   :  { %2254 = vmatpush1.bf16.msra.mxu0 %v6434_v18  ;;  %v6473_v18 = vld [vmem:[%s9113_s5 + $0x30] sm:$0xff]  }
 0x1dd   :  { %v1775_v21 = vpop.f32.mrb[4].mxu1  ;;  %2255 = vmatprep.subr.bf16.mxu0 %v6439_v16  ;;  %v6477_v16 = vld [vmem:[%s9115_s6 + $0x4] ss:$8 sps:$4 sm:$0xff]  }
 0x1de   :  { %v5955_v23 = vadd.f32 %v1775_v21, %v300_v19  ;;  %v1777_v24 = vpop.f32.mrb[5].mxu1  ;;  %v6474_v19 = vld [vmem:[%s9113_s5 + $0x38] sm:$0xff]  }
 0x1df   :  { %v5956_v26 = vadd.f32 %v1777_v24, %v304_v20  ;;  %v1779_v27 = vpop.f32.mrb[6].mxu1  ;;  %v5490_v20 = vld [vmem:[%s9116_s12] ss:$0 sm:$0xff] }
 0x1e0   :  { %v1780_v28 = vpop.f32.mrb[7].mxu1  ;;  %2256 = vmatpush1.bf16.msra.mxu0 %v6437_v22  ;;  %v1784_v31 = vmax.f32 %v5955_v23, 0.0 }
 0x1e1   :  { %v1785_v29 = vmax.f32 %v5956_v26, 0.0  ;;  %2257 = vmatprep.subr.bf16.mxu0 %v6442_v25  ;;  %v6475_v25 = vld [vmem:[%s9115_s6] ss:$8 sps:$4 sm:$0xff]   ;;  %v6480_v28 = vld [vmem:[%s9115_s6 + $0x14] ss:$8 sps:$4 sm:$0xff]  }
 0x1e2   :  { %v1788_v33 = vpack.c.bf16 %v1784_v31, %v1784_v31  ;;  %v6481_v31 = vld [vmem:[%s9115_s6 + $0x20] ss:$8 sps:$4 sm:$0xff]  }
 0x1e3   :  { %v1789_v32 = vpack.c.bf16 %v1785_v29, %v1785_v29  ;;  %v6478_v29 = vld [vmem:[%s9115_s6 + $0x10] ss:$8 sps:$4 sm:$0xff]  }
 0x1e4   :  { %2258 = vmatpush1.bf16.msra.mxu0 %v6440_v30  ;;  %v6483_v30 = vld [vmem:[%s9115_s6 + $0x24] ss:$8 sps:$4 sm:$0xff]  }
 0x1e5   :  { %2259 = vmatprep.mubr.bf16.mxu0 %v1789_v32  ;;  %v6486_v32 = vld [vmem:[%s9115_s6 + $0x34] ss:$8 sps:$4 sm:$0xff]  }
 0x1e7   :  { %2260 = vmatmul.mubr.bf16.vlgmr.msra.gmra.mrb[4].mxu0 %v1788_v33  ;;  %v6489_v33 = vld [vmem:[%s9115_s6 + $0x44] ss:$8 sps:$4 sm:$0xff]  }
 0x2ba   :  { %v2261_v45 = vpop.f32.mrb[4].mxu0 }
 0x2bb   :  { %v5957_v46 = vadd.f32 %v2261_v45, %v1859_v43  ;;  %v2263_v47 = vpop.f32.mrb[5].mxu0  ;;  %v6496_v43 = vld [vmem:[%s9115_s6 + $0x70] ss:$8 sps:$4 sm:$0xff]   ;;  %v6501_v45 = vld [vmem:[%s9118_s7 + $0x4] ss:$16 sps:$4 sm:$0xff]  }
 0x2bc   :  { %v5958_v48 = vadd.f32 %v2263_v47, %v1863_v44  ;;  %v2265_v49 = vpop.f32.mrb[6].mxu0  ;;  %v6499_v44 = vld [vmem:[%s9118_s7] ss:$16 sps:$4 sm:$0xff]   ;;  %3234 = vmatprep.subr.bf16.mxu0 %v6501_v45  ;;  %v6507_v47 = vld [vmem:[%s9118_s7 + $0x24] ss:$16 sps:$4 sm:$0xff]  }
 0x2bd   :  { %v2268_v50 = vmax.f32 %v5957_v46, 0.0  ;;  %v2266_v51 = vpop.f32.mrb[7].mxu0  ;;  %v6504_v46 = vld [vmem:[%s9118_s7 + $0xc] ss:$16 sps:$4 sm:$0xff]   ;;  %3235 = vmatpush1.bf16.msra.mxu0 %v6499_v44  ;;  %v6513_v49 = vld [vmem:[%s9118_s7 + $0x44] ss:$16 sps:$4 sm:$0xff]  }
 0x2be   :  { %v2269_v52 = vmax.f32 %v5958_v48, 0.0  ;;  %v6505_v48 = vld [vmem:[%s9118_s7 + $0x20] ss:$16 sps:$4 sm:$0xff]   ;;  %3236 = vmatprep.subr.bf16.mxu0 %v6507_v47  ;;  %v6519_v51 = vld [vmem:[%s9118_s7 + $0x64] ss:$16 sps:$4 sm:$0xff]  }
 0x2bf   :  { %v2270_v55 = vpack.c.bf16 %v2268_v50, %v2268_v50  ;;  %v6511_v50 = vld [vmem:[%s9118_s7 + $0x40] ss:$16 sps:$4 sm:$0xff]   ;;  %v6568_v44 = vld [vmem:[%s9118_s7 + $0x168] ss:$16 sps:$4 sm:$0xff]   ;;  %v6576_v45 = vld [vmem:[%s9118_s7 + $0x18c] ss:$16 sps:$4 sm:$0xff]  }
 0x2c0   :  { %v2271_v53 = vpack.c.bf16 %v2269_v52, %v2269_v52  ;;  %v6517_v52 = vld [vmem:[%s9118_s7 + $0x60] ss:$16 sps:$4 sm:$0xff]   ;;  %v6582_v47 = vld [vmem:[%s9118_s7 + $0x1ac] ss:$16 sps:$4 sm:$0xff]  }
 0x2c1   :  { %3237 = vmatpush1.bf16.msra.mxu0 %v6505_v48  ;;  %v6580_v48 = vld [vmem:[%s9118_s7 + $0x1a8] ss:$16 sps:$4 sm:$0xff]  }
 0x2c2   :  { %2439 = vmatprep.mubr.bf16.mxu1 %v2271_v53  ;;  %3238 = vmatprep.subr.bf16.mxu0 %v6513_v49  ;;  %v6525_v53 = vld [vmem:[%s9118_s7 + $0x84] ss:$16 sps:$4 sm:$0xff]  }
 0x2c3   :  { %2440 = vmatmul.mubr.bf16.vlgmr.msra.gmra.mrb[8].mxu1 %v2270_v55  ;;  %v6531_v55 = vld [vmem:[%s9118_s7 + $0xa4] ss:$16 sps:$4 sm:$0xff]  }
 0x2c4   :  { %5912 = vmatpush3.bf16.msra.mxu1 %v6459_v54  ;;  %5927 = vmatprep.mubr.msk.bf16.mxu1 %vm6946_vm0, %v6945_v41  ;;  %v6523_v54 = vld [vmem:[%s9118_s7 + $0x80] ss:$16 sps:$4 sm:$0xff]   ;;  %v6585_v49 = vld [vmem:[%s9118_s7 + $0x1c4] ss:$16 sps:$4 sm:$0xff]  }
 0x2c5   :  { %5913 = vmatprep.subr.bf16.mxu1 %v6945_v41  ;;  %3239 = vmatpush1.bf16.msra.mxu0 %v6511_v50  ;;  %v6588_v50 = vld [vmem:[%s9118_s7 + $0x1cc] ss:$16 sps:$4 sm:$0xff]  }
 0x2c6   :  { %3240 = vmatprep.subr.bf16.mxu0 %v6519_v51  ;;  %v6583_v51 = vld [vmem:[%s9118_s7 + $0x1c0] ss:$16 sps:$4 sm:$0xff]  }
 0x2c8   :  { %5914 = vmatpush3.bf16.msra.mxu1 %v6460_v56  ;;  %v6529_v56 = vld [vmem:[%s9118_s7 + $0xa0] ss:$16 sps:$4 sm:$0xff]  }
 0x2c9   :  { %5915 = vmatprep.subr.bf16.mxu1 %v6945_v41  ;;  %3241 = vmatpush1.bf16.msra.mxu0 %v6517_v52  ;;  %v6586_v52 = vld [vmem:[%s9118_s7 + $0x1c8] ss:$16 sps:$4 sm:$0xff]  }
 0x2ca   :  { %3242 = vmatprep.subr.bf16.mxu0 %v6525_v53  ;;  %v6591_v53 = vld [vmem:[%s9118_s7 + $0x1e4] ss:$16 sps:$4 sm:$0xff]  }
 0x2cc   :  { %5916 = vmatpush3.bf16.msra.mxu1 %v6461_v57  ;;  %v6537_v57 = vld [vmem:[%s9118_s7 + $0xc4] ss:$16 sps:$4 sm:$0xff]  }
 0x2cd   :  { %5917 = vmatprep.subr.bf16.mxu1 %v6945_v41  ;;  %3243 = vmatpush1.bf16.msra.mxu0 %v6523_v54  ;;  %v6594_v54 = vld [vmem:[%s9118_s7 + $0x1ec] ss:$16 sps:$4 sm:$0xff]  }
 0x2ce   :  { %3244 = vmatprep.subr.bf16.mxu0 %v6531_v55  ;;  %v6589_v55 = vld [vmem:[%s9118_s7 + $0x1e0] ss:$16 sps:$4 sm:$0xff]  }
 0x2d0   :  { %5918 = vmatpush3.bf16.msra.mxu1 %v6462_v58  ;;  %v6535_v58 = vld [vmem:[%s9118_s7 + $0xc0] ss:$16 sps:$4 sm:$0xff]  }
 0x2d1   :  { %5919 = vmatprep.subr.bf16.mxu1 %v6945_v41  ;;  %3245 = vmatpush1.bf16.msra.mxu0 %v6529_v56  ;;  %v6592_v56 = vld [vmem:[%s9118_s7 + $0x1e8] ss:$16 sps:$4 sm:$0xff]  }
 0x2d2   :  { %3246 = vmatprep.subr.bf16.mxu0 %v6537_v57  ;;  %v6597_v57 = vld [vmem:[%s9120_s8 + $0x4] ss:$28 sps:$4 sm:$0xff]  }
 0x2d4   :  { %5920 = vmatpush3.bf16.msra.mxu1 %v6463_v59  ;;  %v6543_v59 = vld [vmem:[%s9118_s7 + $0xe4] ss:$16 sps:$4 sm:$0xff]  }
 0x2d5   :  { %5921 = vmatprep.subr.bf16.mxu1 %v6945_v41  ;;  %3247 = vmatpush1.bf16.msra.mxu0 %v6535_v58  ;;  %v6600_v58 = vld [vmem:[%s9120_s8 + $0xc] ss:$28 sps:$4 sm:$0xff]  }
 0x2d6   :  { %3248 = vmatprep.subr.bf16.mxu0 %v6543_v59  ;;  %v2691_v59 = vld [vmem:[%s9121_s14] sm:$0x3] }
 0x2d8   :  { %5922 = vmatpush3.bf16.msra.mxu1 %v6464_v60  ;;  %v6541_v60 = vld [vmem:[%s9118_s7 + $0xe0] ss:$16 sps:$4 sm:$0xff]  }
 0x2d9   :  { %5923 = vmatprep.subr.bf16.mxu1 %v6945_v41  ;;  %3249 = vmatpush1.bf16.msra.mxu0 %v6541_v60  ;;  %v2696_v60 = vrot.slane %v2691_v59, %v7901_v35 }
 0x2dc   :  { %5924 = vmatpush3.bf16.msra.mxu1 %v6465_v61  ;;  %v6549_v61 = vld [vmem:[%s9118_s7 + $0x104] ss:$16 sps:$4 sm:$0xff]  }
 0x2dd   :  { %5925 = vmatprep.subr.bf16.mxu1 %v6945_v41  ;;  %3250 = vmatprep.subr.bf16.mxu0 %v6549_v61  ;;  %v2700_v61 = vrot.slane %v2691_v59, %v7909_v37  ;;  %v6669_v59 = vld [vmem:[%s9120_s8 + $0x2a4] ss:$28 sps:$4 sm:$0xff]  }
 0x2e0   :  { %5926 = vmatpush3.bf16.msra.mxu1 %v6466_v62  ;;  %v6547_v62 = vld [vmem:[%s9118_s7 + $0x100] ss:$16 sps:$4 sm:$0xff]  }
 0x2e1   :  { %5931 = vmatprep.subr.bf16.mxu1 %v6945_v41  ;;  %3251 = vmatpush1.bf16.msra.mxu0 %v6547_v62 }
 0x396   :  { %v5843_v63 = vpop.f32.mrb[8].mxu1 }
 0x397   :  { %v5844_v2 = vpop.f32.mrb[9].mxu1 }
 0x398   :  { %v5845_v3 = vadd.f32 %v5844_v2, %v5843_v63  ;;  %v5846_v4 = vpop.f32.mrb[10].mxu1  ;;  %v6555_v63 = vld [vmem:[%s9118_s7 + $0x124] ss:$16 sps:$4 sm:$0xff]  }
 0x399   :  { %v5847_v5 = vpop.f32.mrb[11].mxu1  ;;  %3252 = vmatprep.subr.bf16.mxu0 %v6555_v63  ;;  %v6561_v2 = vld [vmem:[%s9118_s7 + $0x144] ss:$16 sps:$4 sm:$0xff]  }
 0x39a   :  { %v2442_v6 = vadd.f32 %v5845_v3, %v5473_v0  ;;  %v6553_v0 = vld [vmem:[%s9118_s7 + $0x120] ss:$16 sps:$4 sm:$0xff]   ;;  %v6567_v4 = vld [vmem:[%s9118_s7 + $0x164] ss:$16 sps:$4 sm:$0xff]  }
 0x39b   :  { %3253 = vmatpush1.bf16.msra.mxu0 %v6553_v0  ;;  %v6559_v3 = vld [vmem:[%s9118_s7 + $0x140] ss:$16 sps:$4 sm:$0xff]  }
 0x39c   :  { %v2447_v7 = vmax.f32 %v2442_v6, 0.0  ;;  %3254 = vmatprep.subr.bf16.mxu0 %v6561_v2  ;;  %v6565_v5 = vld [vmem:[%s9118_s7 + $0x160] ss:$16 sps:$4 sm:$0xff]   ;;  %v6573_v6 = vld [vmem:[%s9118_s7 + $0x184] ss:$16 sps:$4 sm:$0xff]  }
 0x39e   :  { %v2448_v9 = vpack.c.bf16 %v2447_v7, %v2447_v7  ;;  %v6571_v7 = vld [vmem:[%s9118_s7 + $0x180] ss:$16 sps:$4 sm:$0xff]  }
 0x39f   :  { %3255 = vmatpush1.bf16.msra.mxu0 %v6559_v3 }
 0x3a0   :  { %5928 = vmatmul.mubr.bf16.vlgmr.msra.gmra.mrb[12].mxu1 %v2448_v9  ;;  %3256 = vmatprep.subr.bf16.mxu0 %v6567_v4  ;;  %v6577_v9 = vld [vmem:[%s9118_s7 + $0x1a0] ss:$16 sps:$4 sm:$0xff]  }
 0x3a1   :  { %5932 = vmatpush3.bf16.msra.mxu1 %v6467_v8  ;;  %5947 = vmatprep.mubr.msk.bf16.mxu1 %vm6946_vm0, %v6945_v41  ;;  %v6579_v8 = vld [vmem:[%s9118_s7 + $0x1a4] ss:$16 sps:$4 sm:$0xff]  }
 0x3a2   :  { %5933 = vmatprep.subr.bf16.mxu1 %v6945_v41 }
 0x3a3   :  { %3257 = vmatpush1.bf16.msra.mxu0 %v6565_v5 }
 0x3a4   :  { %3258 = vmatprep.subr.bf16.mxu0 %v6573_v6 }
 0x3a5   :  { %5934 = vmatpush3.bf16.msra.mxu1 %v6468_v10  ;;  %v5499_v10 = vld [vmem:[%s9119_s13] ss:$0 sm:$0xff] }
 0x3a6   :  { %5935 = vmatprep.subr.bf16.mxu1 %v6945_v41 }
 0x3a7   :  { %3259 = vmatpush1.bf16.msra.mxu0 %v6571_v7 }
 0x3a8   :  { %3260 = vmatprep.subr.bf16.mxu0 %v6579_v8  ;;  %v6595_v8 = vld [vmem:[%s9120_s8] ss:$28 sps:$4 sm:$0xff]  }
 0x3a9   :  { %5936 = vmatpush3.bf16.msra.mxu1 %v6469_v11 }
 0x3aa   :  { %5937 = vmatprep.subr.bf16.mxu1 %v6945_v41 }
 0x3ab   :  { %3261 = vmatpush1.bf16.msra.mxu0 %v6577_v9  ;;  %v6598_v9 = vld [vmem:[%s9120_s8 + $0x8] ss:$28 sps:$4 sm:$0xff]  }
 0x3ac   :  { %3262 = vmatprep.subr.bf16.mxu0 %v6585_v49  ;;  %v6649_v49 = vld [vmem:[%s9120_s8 + $0x1f8] ss:$28 sps:$4 sm:$0xff]  }
 0x3ad   :  { %5938 = vmatpush3.bf16.msra.mxu1 %v6470_v12 }
 0x3ae   :  { %5939 = vmatprep.subr.bf16.mxu1 %v6945_v41 }
 0x3af   :  { %3263 = vmatpush1.bf16.msra.mxu0 %v6583_v51  ;;  %v6657_v51 = vld [vmem:[%s9120_s8 + $0x234] ss:$28 sps:$4 sm:$0xff]  }
 0x3b0   :  { %3264 = vmatprep.subr.bf16.mxu0 %v6591_v53  ;;  %v6655_v53 = vld [vmem:[%s9120_s8 + $0x230] ss:$28 sps:$4 sm:$0xff]  }
 0x3b1   :  { %5940 = vmatpush3.bf16.msra.mxu1 %v6471_v13 }
 0x3b2   :  { %5941 = vmatprep.subr.bf16.mxu1 %v6945_v41 }
 0x3b3   :  { %3265 = vmatpush1.bf16.msra.mxu0 %v6589_v55  ;;  %v6663_v55 = vld [vmem:[%s9120_s8 + $0x26c] ss:$28 sps:$4 sm:$0xff]  }
 0x3b4   :  { %4769 = vmatprep.subr.bf16.mxu0 %v6597_v57  ;;  %v6661_v57 = vld [vmem:[%s9120_s8 + $0x268] ss:$28 sps:$4 sm:$0xff]  }
 0x3b5   :  { %5942 = vmatpush3.bf16.msra.mxu1 %v6472_v14 }
 0x3b6   :  { %5943 = vmatprep.subr.bf16.mxu1 %v6945_v41 }
 0x3b9   :  { %5944 = vmatpush3.bf16.msra.mxu1 %v6473_v18 }
 0x3ba   :  { %5945 = vmatprep.subr.bf16.mxu1 %v6945_v41  ;;  %v6493_v41 = vld [vmem:[%s9115_s6 + $0x60] ss:$8 sps:$4 sm:$0xff]  }
 0x3bd   :  { %5946 = vmatpush3.bf16.msra.mxu1 %v6474_v19 }
 0x3be   :  { %2783 = vmatprep.subr.bf16.mxu1 %v6477_v16  ;;  %v6502_v16 = vld [vmem:[%s9118_s7 + $0x8] ss:$16 sps:$4 sm:$0xff]  }
 0x473   :  { %v2554_v21 = vpop.f32.mrb[12].mxu1 }
 0x474   :  { %v2555_v22 = vadd.f32 %v5490_v20, %v2554_v21  ;;  %v5929_v23 = vpop.f32.mrb[13].mxu1  ;;  %v6510_v21 = vld [vmem:[%s9118_s7 + $0x2c] ss:$16 sps:$4 sm:$0xff]  }
 0x475   :  { %v2557_v24 = vpop.f32.mrb[14].mxu1  ;;  %v6516_v23 = vld [vmem:[%s9118_s7 + $0x4c] ss:$16 sps:$4 sm:$0xff]  }
 0x476   :  { %v2560_v26 = vpack.c.bf16 %v2555_v22, %v2555_v22  ;;  %v5930_v27 = vpop.f32.mrb[15].mxu1  ;;  %v6508_v22 = vld [vmem:[%s9118_s7 + $0x28] ss:$16 sps:$4 sm:$0xff]  }
 0x477   :  { %v6514_v24 = vld [vmem:[%s9118_s7 + $0x48] ss:$16 sps:$4 sm:$0xff]   ;;  %v6528_v27 = vld [vmem:[%s9118_s7 + $0x8c] ss:$16 sps:$4 sm:$0xff]  }
 0x478   :  { %2561 = vst [vmem:[%s9117_s18] sm:$0xf] %v2560_v26  ;;  %5948 = vmatmul.mubr.bf16.vlgmr.msra.gmra.mrb[16].mxu1 %v2560_v26  ;;  %v6520_v26 = vld [vmem:[%s9118_s7 + $0x68] ss:$16 sps:$4 sm:$0xff]  }
 0x479   :  { %2784 = vmatpush1.bf16.msra.mxu1 %v6475_v25  ;;  %2815 = vmatprep.mubr.bf16.mxu1 %v6944_v1  ;;  %v6484_v1 = vld [vmem:[%s9115_s6 + $0x30] ss:$8 sps:$4 sm:$0xff]   ;;  %v6522_v25 = vld [vmem:[%s9118_s7 + $0x6c] ss:$16 sps:$4 sm:$0xff]  }
 0x47a   :  { %2785 = vmatprep.subr.bf16.mxu1 %v6480_v28  ;;  %v6526_v28 = vld [vmem:[%s9118_s7 + $0x88] ss:$16 sps:$4 sm:$0xff]  }
 0x47d   :  { %2786 = vmatpush1.bf16.msra.mxu1 %v6478_v29  ;;  %v6534_v29 = vld [vmem:[%s9118_s7 + $0xac] ss:$16 sps:$4 sm:$0xff]  }
 0x47e   :  { %2787 = vmatprep.subr.bf16.mxu1 %v6483_v30  ;;  %v6532_v30 = vld [vmem:[%s9118_s7 + $0xa8] ss:$16 sps:$4 sm:$0xff]  }
 0x481   :  { %2788 = vmatpush1.bf16.msra.mxu1 %v6481_v31  ;;  %v6540_v31 = vld [vmem:[%s9118_s7 + $0xcc] ss:$16 sps:$4 sm:$0xff]  }
 0x482   :  { %2789 = vmatprep.subr.bf16.mxu1 %v6486_v32  ;;  %v6538_v32 = vld [vmem:[%s9118_s7 + $0xc8] ss:$16 sps:$4 sm:$0xff]  }
 0x485   :  { %2790 = vmatpush1.bf16.msra.mxu1 %v6484_v1  ;;  %v6546_v1 = vld [vmem:[%s9118_s7 + $0xec] ss:$16 sps:$4 sm:$0xff]  }
 0x486   :  { %2791 = vmatprep.subr.bf16.mxu1 %v6489_v33  ;;  %v6544_v33 = vld [vmem:[%s9118_s7 + $0xe8] ss:$16 sps:$4 sm:$0xff]  }
 0x489   :  { %2792 = vmatpush1.bf16.msra.mxu1 %v6487_v36  ;;  %v6552_v36 = vld [vmem:[%s9118_s7 + $0x10c] ss:$16 sps:$4 sm:$0xff]  }
 0x48a   :  { %2793 = vmatprep.subr.bf16.mxu1 %v6492_v38  ;;  %v6550_v38 = vld [vmem:[%s9118_s7 + $0x108] ss:$16 sps:$4 sm:$0xff]  }
 0x48d   :  { %2794 = vmatpush1.bf16.msra.mxu1 %v6490_v39  ;;  %v6558_v39 = vld [vmem:[%s9118_s7 + $0x12c] ss:$16 sps:$4 sm:$0xff]  }
 0x48e   :  { %2795 = vmatprep.subr.bf16.mxu1 %v6495_v40  ;;  %v6556_v40 = vld [vmem:[%s9118_s7 + $0x128] ss:$16 sps:$4 sm:$0xff]  }
 0x491   :  { %2796 = vmatpush1.bf16.msra.mxu1 %v6493_v41  ;;  %v6564_v41 = vld [vmem:[%s9118_s7 + $0x14c] ss:$16 sps:$4 sm:$0xff]  }
 0x492   :  { %2797 = vmatprep.subr.bf16.mxu1 %v6498_v42  ;;  %v6562_v42 = vld [vmem:[%s9118_s7 + $0x148] ss:$16 sps:$4 sm:$0xff]  }
 0x495   :  { %2798 = vmatpush1.bf16.msra.mxu1 %v6496_v43  ;;  %v6570_v43 = vld [vmem:[%s9118_s7 + $0x16c] ss:$16 sps:$4 sm:$0xff]  }
 0x496   :  { %3275 = vmatprep.subr.bf16.mxu1 %v6504_v46  ;;  %v6574_v46 = vld [vmem:[%s9118_s7 + $0x188] ss:$16 sps:$4 sm:$0xff]  }
 0x54b   :  { %v2667_v11 = vpop.f32.mrb[16].mxu1 }
 0x54c   :  { %v2668_v12 = vadd.f32 %v5499_v10, %v2667_v11  ;;  %v5949_v13 = vpop.f32.mrb[17].mxu1  ;;  %v6603_v11 = vld [vmem:[%s9120_s8 + $0x3c] ss:$28 sps:$4 sm:$0xff]  }
 0x54d   :  { %v2670_v14 = vpop.f32.mrb[18].mxu1  ;;  %v6601_v13 = vld [vmem:[%s9120_s8 + $0x38] ss:$28 sps:$4 sm:$0xff]  }
 0x54e   :  { %v2673_v18 = vmax.f32 %v2668_v12, 0.0  ;;  %v5950_v19 = vpop.f32.mrb[19].mxu1  ;;  %v6606_v12 = vld [vmem:[%s9120_s8 + $0x44] ss:$28 sps:$4 sm:$0xff]  }
 0x54f   :  { %v6604_v14 = vld [vmem:[%s9120_s8 + $0x40] ss:$28 sps:$4 sm:$0xff]  }
 0x550   :  { %v2674_v20 = vpack.c.bf16 %v2673_v18, %v2673_v18  ;;  %v6609_v18 = vld [vmem:[%s9120_s8 + $0x74] ss:$28 sps:$4 sm:$0xff]   ;;  %v6612_v19 = vld [vmem:[%s9120_s8 + $0x7c] ss:$28 sps:$4 sm:$0xff]  }
 0x552   :  { %2816 = vmatmul.mubr.bf16.vlgmr.msra.gmra.mrb[20].mxu1 %v2674_v20  ;;  %v6610_v20 = vld [vmem:[%s9120_s8 + $0x78] ss:$28 sps:$4 sm:$0xff]  }
 0x553   :  { %3276 = vmatpush1.bf16.msra.mxu1 %v6502_v16  ;;  %v6607_v16 = vld [vmem:[%s9120_s8 + $0x70] ss:$28 sps:$4 sm:$0xff]  }
 0x554   :  { %3277 = vmatprep.subr.bf16.mxu1 %v6510_v21  ;;  %v6615_v21 = vld [vmem:[%s9120_s8 + $0xac] ss:$28 sps:$4 sm:$0xff]  }
 0x557   :  { %3278 = vmatpush1.bf16.msra.mxu1 %v6508_v22  ;;  %v6618_v22 = vld [vmem:[%s9120_s8 + $0xb4] ss:$28 sps:$4 sm:$0xff]  }
 0x558   :  { %3279 = vmatprep.subr.bf16.mxu1 %v6516_v23  ;;  %v6613_v23 = vld [vmem:[%s9120_s8 + $0xa8] ss:$28 sps:$4 sm:$0xff]  }
 0x55b   :  { %3280 = vmatpush1.bf16.msra.mxu1 %v6514_v24  ;;  %v6616_v24 = vld [vmem:[%s9120_s8 + $0xb0] ss:$28 sps:$4 sm:$0xff]  }
 0x55c   :  { %3281 = vmatprep.subr.bf16.mxu1 %v6522_v25  ;;  %v6621_v25 = vld [vmem:[%s9120_s8 + $0xe4] ss:$28 sps:$4 sm:$0xff]  }
 0x55f   :  { %3282 = vmatpush1.bf16.msra.mxu1 %v6520_v26  ;;  %v6624_v26 = vld [vmem:[%s9120_s8 + $0xec] ss:$28 sps:$4 sm:$0xff]  }
 0x560   :  { %3283 = vmatprep.subr.bf16.mxu1 %v6528_v27  ;;  %v6619_v27 = vld [vmem:[%s9120_s8 + $0xe0] ss:$28 sps:$4 sm:$0xff]  }
 0x563   :  { %3284 = vmatpush1.bf16.msra.mxu1 %v6526_v28  ;;  %v6622_v28 = vld [vmem:[%s9120_s8 + $0xe8] ss:$28 sps:$4 sm:$0xff]  }
 0x564   :  { %3285 = vmatprep.subr.bf16.mxu1 %v6534_v29  ;;  %v6627_v29 = vld [vmem:[%s9120_s8 + $0x11c] ss:$28 sps:$4 sm:$0xff]  }
 0x567   :  { %3286 = vmatpush1.bf16.msra.mxu1 %v6532_v30  ;;  %v6630_v30 = vld [vmem:[%s9120_s8 + $0x124] ss:$28 sps:$4 sm:$0xff]  }
 0x568   :  { %3287 = vmatprep.subr.bf16.mxu1 %v6540_v31  ;;  %v6625_v31 = vld [vmem:[%s9120_s8 + $0x118] ss:$28 sps:$4 sm:$0xff]  }
 0x56b   :  { %3288 = vmatpush1.bf16.msra.mxu1 %v6538_v32  ;;  %v6628_v32 = vld [vmem:[%s9120_s8 + $0x120] ss:$28 sps:$4 sm:$0xff]  }
 0x56c   :  { %3289 = vmatprep.subr.bf16.mxu1 %v6546_v1  ;;  %v6633_v1 = vld [vmem:[%s9120_s8 + $0x154] ss:$28 sps:$4 sm:$0xff]  }
 0x56f   :  { %3290 = vmatpush1.bf16.msra.mxu1 %v6544_v33  ;;  %v6636_v33 = vld [vmem:[%s9120_s8 + $0x15c] ss:$28 sps:$4 sm:$0xff]  }
 0x570   :  { %3291 = vmatprep.subr.bf16.mxu1 %v6552_v36  ;;  %v6631_v36 = vld [vmem:[%s9120_s8 + $0x150] ss:$28 sps:$4 sm:$0xff]  }
 0x573   :  { %3292 = vmatpush1.bf16.msra.mxu1 %v6550_v38  ;;  %v6634_v38 = vld [vmem:[%s9120_s8 + $0x158] ss:$28 sps:$4 sm:$0xff]  }
 0x574   :  { %3293 = vmatprep.subr.bf16.mxu1 %v6558_v39  ;;  %v6639_v39 = vld [vmem:[%s9120_s8 + $0x18c] ss:$28 sps:$4 sm:$0xff]  }
 0x577   :  { %3294 = vmatpush1.bf16.msra.mxu1 %v6556_v40  ;;  %v6642_v40 = vld [vmem:[%s9120_s8 + $0x194] ss:$28 sps:$4 sm:$0xff]  }
 0x578   :  { %3295 = vmatprep.subr.bf16.mxu1 %v6564_v41  ;;  %v6637_v41 = vld [vmem:[%s9120_s8 + $0x188] ss:$28 sps:$4 sm:$0xff]  }
 0x57b   :  { %3296 = vmatpush1.bf16.msra.mxu1 %v6562_v42  ;;  %v6640_v42 = vld [vmem:[%s9120_s8 + $0x190] ss:$28 sps:$4 sm:$0xff]  }
 0x57c   :  { %3297 = vmatprep.subr.bf16.mxu1 %v6570_v43  ;;  %v6645_v43 = vld [vmem:[%s9120_s8 + $0x1c4] ss:$28 sps:$4 sm:$0xff]  }
 0x57f   :  { %3298 = vmatpush1.bf16.msra.mxu1 %v6568_v44  ;;  %v6648_v44 = vld [vmem:[%s9120_s8 + $0x1cc] ss:$28 sps:$4 sm:$0xff]  }
 0x580   :  { %3299 = vmatprep.subr.bf16.mxu1 %v6576_v45  ;;  %v6643_v45 = vld [vmem:[%s9120_s8 + $0x1c0] ss:$28 sps:$4 sm:$0xff]  }
 0x583   :  { %3300 = vmatpush1.bf16.msra.mxu1 %v6574_v46  ;;  %v6646_v46 = vld [vmem:[%s9120_s8 + $0x1c8] ss:$28 sps:$4 sm:$0xff]  }
 0x584   :  { %3301 = vmatprep.subr.bf16.mxu1 %v6582_v47  ;;  %v6651_v47 = vld [vmem:[%s9120_s8 + $0x1fc] ss:$28 sps:$4 sm:$0xff]  }
 0x587   :  { %3302 = vmatpush1.bf16.msra.mxu1 %v6580_v48  ;;  %v6654_v48 = vld [vmem:[%s9120_s8 + $0x204] ss:$28 sps:$4 sm:$0xff]  }
 0x588   :  { %3303 = vmatprep.subr.bf16.mxu1 %v6588_v50  ;;  %v6652_v50 = vld [vmem:[%s9120_s8 + $0x200] ss:$28 sps:$4 sm:$0xff]  }
 0x58b   :  { %3304 = vmatpush1.bf16.msra.mxu1 %v6586_v52  ;;  %v6660_v52 = vld [vmem:[%s9120_s8 + $0x23c] ss:$28 sps:$4 sm:$0xff]  }
 0x58c   :  { %3305 = vmatprep.subr.bf16.mxu1 %v6594_v54  ;;  %v6658_v54 = vld [vmem:[%s9120_s8 + $0x238] ss:$28 sps:$4 sm:$0xff]  }
 0x58f   :  { %3306 = vmatpush1.bf16.msra.mxu1 %v6592_v56  ;;  %v6666_v56 = vld [vmem:[%s9120_s8 + $0x274] ss:$28 sps:$4 sm:$0xff]  }
 0x590   :  { %4851 = vmatprep.subr.bf16.mxu1 %v6600_v58  ;;  %v6664_v58 = vld [vmem:[%s9120_s8 + $0x270] ss:$28 sps:$4 sm:$0xff]  }
 0x625   :  { %v2817_v62 = vpop.f32.mrb[20].mxu1 }
 0x626   :  { %v2818_v63 = vadd.f32 %v2817_v62, %v2696_v60  ;;  %v2819_v0 = vpop.f32.mrb[21].mxu1  ;;  %v6672_v60 = vld [vmem:[%s9120_s8 + $0x2ac] ss:$28 sps:$4 sm:$0xff]  }
 0x627   :  { %v2820_v2 = vadd.f32 %v2819_v0, %v2700_v61  ;;  %v2821_v3 = vpop.f32.mrb[22].mxu1  ;;  %v6667_v61 = vld [vmem:[%s9120_s8 + $0x2a0] ss:$28 sps:$4 sm:$0xff]   ;;  %v6670_v62 = vld [vmem:[%s9120_s8 + $0x2a8] ss:$28 sps:$4 sm:$0xff]  }
 0x628   :  { %v2824_v4 = vmax.f32 %v2818_v63, 0.0  ;;  %v2822_v5 = vpop.f32.mrb[23].mxu1  ;;  %v6675_v63 = vld [vmem:[%s9120_s8 + $0x2dc] ss:$28 sps:$4 sm:$0xff]   ;;  %v6678_v0 = vld [vmem:[%s9120_s8 + $0x2e4] ss:$28 sps:$4 sm:$0xff]  }
 0x629   :  { %v2825_v6 = vmax.f32 %v2820_v2, 0.0  ;;  %v6673_v2 = vld [vmem:[%s9120_s8 + $0x2d8] ss:$28 sps:$4 sm:$0xff]   ;;  %v6676_v3 = vld [vmem:[%s9120_s8 + $0x2e0] ss:$28 sps:$4 sm:$0xff]  }
 0x62a   :  { %v2826_v10 = vpack.c.bf16 %v2824_v4, %v2824_v4  ;;  %v6681_v4 = vld [vmem:[%s9120_s8 + $0x314] ss:$28 sps:$4 sm:$0xff]   ;;  %v6684_v5 = vld [vmem:[%s9120_s8 + $0x31c] ss:$28 sps:$4 sm:$0xff]  }
 0x62b   :  { %v2827_v7 = vpack.c.bf16 %v2825_v6, %v2825_v6  ;;  %v6679_v6 = vld [vmem:[%s9120_s8 + $0x310] ss:$28 sps:$4 sm:$0xff]  }
 0x62d   :  { %3266 = vmatprep.mubr.bf16.mxu0 %v2827_v7  ;;  %3307 = vmatprep.mubr.bf16.mxu1 %v2827_v7  ;;  %v6682_v7 = vld [vmem:[%s9120_s8 + $0x318] ss:$28 sps:$4 sm:$0xff]  }
 0x62e   :  { %3267 = vmatmul.mubr.bf16.vlgmr.msra.gmra.mrb[8].mxu0 %v2826_v10  ;;  %3308 = vmatmul.mubr.bf16.vlgmr.msra.gmra.mrb[24].mxu1 %v2826_v10  ;;  %v6685_v10 = vld [vmem:[%s9120_s8 + $0x348] ss:$28 sps:$4 sm:$0xff]  }
 0x62f   :  { %4770 = vmatpush1.bf16.msra.mxu0 %v6595_v8  ;;  %4852 = vmatpush1.bf16.msra.mxu1 %v6598_v9  ;;  %v6687_v8 = vld [vmem:[%s9120_s8 + $0x34c] ss:$28 sps:$4 sm:$0xff]   ;;  %v6690_v9 = vld [vmem:[%s9120_s8 + $0x354] ss:$28 sps:$4 sm:$0xff]  }
 0x630   :  { %4771 = vmatprep.subr.bf16.mxu0 %v6603_v11  ;;  %4853 = vmatprep.subr.bf16.mxu1 %v6606_v12  ;;  %v6688_v11 = vld [vmem:[%s9120_s8 + $0x350] ss:$28 sps:$4 sm:$0xff]   ;;  %v6693_v12 = vld [vmem:[%s9120_s8 + $0x384] ss:$28 sps:$4 sm:$0xff]  }
 0x633   :  { %4772 = vmatpush1.bf16.msra.mxu0 %v6601_v13  ;;  %4854 = vmatpush1.bf16.msra.mxu1 %v6604_v14  ;;  %v6696_v13 = vld [vmem:[%s9120_s8 + $0x38c] ss:$28 sps:$4 sm:$0xff]   ;;  %v8564_v14 = vld [vmem:[%s9122_s15] sm:$0xf] }
 0x634   :  { %4773 = vmatprep.subr.bf16.mxu0 %v6609_v18  ;;  %4855 = vmatprep.subr.bf16.mxu1 %v6612_v19  ;;  %v2897_v18 = vrot.slane %v8564_v14, %v7901_v35  ;;  %v2901_v19 = vrot.slane %v8564_v14, %v7909_v37 }
 0x637   :  { %4774 = vmatpush1.bf16.msra.mxu0 %v6607_v16  ;;  %4856 = vmatpush1.bf16.msra.mxu1 %v6610_v20  ;;  %v2909_v16 = vrot.slane %v8564_v14, %v7999_v17 }
 0x638   :  { %4775 = vmatprep.subr.bf16.mxu0 %v6615_v21  ;;  %4857 = vmatprep.subr.bf16.mxu1 %v6618_v22 }
 0x63b   :  { %4776 = vmatpush1.bf16.msra.mxu0 %v6613_v23  ;;  %4858 = vmatpush1.bf16.msra.mxu1 %v6616_v24 }
 0x63c   :  { %4777 = vmatprep.subr.bf16.mxu0 %v6621_v25  ;;  %4859 = vmatprep.subr.bf16.mxu1 %v6624_v26 }
 0x63f   :  { %4778 = vmatpush1.bf16.msra.mxu0 %v6619_v27  ;;  %4860 = vmatpush1.bf16.msra.mxu1 %v6622_v28 }
 0x640   :  { %4779 = vmatprep.subr.bf16.mxu0 %v6627_v29  ;;  %4861 = vmatprep.subr.bf16.mxu1 %v6630_v30 }
 0x643   :  { %4780 = vmatpush1.bf16.msra.mxu0 %v6625_v31  ;;  %4862 = vmatpush1.bf16.msra.mxu1 %v6628_v32 }
 0x644   :  { %4781 = vmatprep.subr.bf16.mxu0 %v6633_v1  ;;  %4863 = vmatprep.subr.bf16.mxu1 %v6636_v33 }
 0x647   :  { %4782 = vmatpush1.bf16.msra.mxu0 %v6631_v36  ;;  %4864 = vmatpush1.bf16.msra.mxu1 %v6634_v38  ;;  %v6691_v36 = vld [vmem:[%s9120_s8 + $0x380] ss:$28 sps:$4 sm:$0xff]   ;;  %v6694_v38 = vld [vmem:[%s9120_s8 + $0x388] ss:$28 sps:$4 sm:$0xff]  }
 0x648   :  { %4783 = vmatprep.subr.bf16.mxu0 %v6639_v39  ;;  %4865 = vmatprep.subr.bf16.mxu1 %v6642_v40  ;;  %v6699_v40 = vld [vmem:[%s9120_s8 + $0x3bc] ss:$28 sps:$4 sm:$0xff]  }
 0x64b   :  { %4784 = vmatpush1.bf16.msra.mxu0 %v6637_v41  ;;  %4866 = vmatpush1.bf16.msra.mxu1 %v6640_v42  ;;  %v6702_v41 = vld [vmem:[%s9120_s8 + $0x3c4] ss:$28 sps:$4 sm:$0xff]  }
 0x64c   :  { %4785 = vmatprep.subr.bf16.mxu0 %v6645_v43  ;;  %4867 = vmatprep.subr.bf16.mxu1 %v6648_v44  ;;  %v6697_v43 = vld [vmem:[%s9120_s8 + $0x3b8] ss:$28 sps:$4 sm:$0xff]   ;;  %v6700_v44 = vld [vmem:[%s9120_s8 + $0x3c0] ss:$28 sps:$4 sm:$0xff]  }
 0x64f   :  { %4786 = vmatpush1.bf16.msra.mxu0 %v6643_v45  ;;  %4868 = vmatpush1.bf16.msra.mxu1 %v6646_v46  ;;  %v6705_v45 = vld [vmem:[%s9120_s8 + $0x3f4] ss:$28 sps:$4 sm:$0xff]   ;;  %v6708_v46 = vld [vmem:[%s9120_s8 + $0x3fc] ss:$28 sps:$4 sm:$0xff]  }
 0x650   :  { %4787 = vmatprep.subr.bf16.mxu0 %v6651_v47  ;;  %4869 = vmatprep.subr.bf16.mxu1 %v6654_v48  ;;  %v6703_v47 = vld [vmem:[%s9120_s8 + $0x3f0] ss:$28 sps:$4 sm:$0xff]   ;;  %v6706_v48 = vld [vmem:[%s9120_s8 + $0x3f8] ss:$28 sps:$4 sm:$0xff]  }
 0x653   :  { %4788 = vmatpush1.bf16.msra.mxu0 %v6649_v49  ;;  %4870 = vmatpush1.bf16.msra.mxu1 %v6652_v50  ;;  %v6711_v49 = vld [vmem:[%s9120_s8 + $0x42c] ss:$28 sps:$4 sm:$0xff]   ;;  %v6714_v50 = vld [vmem:[%s9120_s8 + $0x434] ss:$28 sps:$4 sm:$0xff]  }
 0x654   :  { %4789 = vmatprep.subr.bf16.mxu0 %v6657_v51  ;;  %4871 = vmatprep.subr.bf16.mxu1 %v6660_v52  ;;  %v6709_v51 = vld [vmem:[%s9120_s8 + $0x428] ss:$28 sps:$4 sm:$0xff]   ;;  %v6712_v52 = vld [vmem:[%s9120_s8 + $0x430] ss:$28 sps:$4 sm:$0xff]  }
 0x657   :  { %4790 = vmatpush1.bf16.msra.mxu0 %v6655_v53  ;;  %4872 = vmatpush1.bf16.msra.mxu1 %v6658_v54  ;;  %v6717_v53 = vld [vmem:[%s9120_s8 + $0x464] ss:$28 sps:$4 sm:$0xff]   ;;  %v6720_v54 = vld [vmem:[%s9120_s8 + $0x46c] ss:$28 sps:$4 sm:$0xff]  }
 0x658   :  { %4791 = vmatprep.subr.bf16.mxu0 %v6663_v55  ;;  %4873 = vmatprep.subr.bf16.mxu1 %v6666_v56  ;;  %v6715_v55 = vld [vmem:[%s9120_s8 + $0x460] ss:$28 sps:$4 sm:$0xff]   ;;  %v6718_v56 = vld [vmem:[%s9120_s8 + $0x468] ss:$28 sps:$4 sm:$0xff]  }
 0x65b   :  { %4792 = vmatpush1.bf16.msra.mxu0 %v6661_v57  ;;  %4874 = vmatpush1.bf16.msra.mxu1 %v6664_v58  ;;  %v6723_v57 = vld [vmem:[%s9120_s8 + $0x49c] ss:$28 sps:$4 sm:$0xff]   ;;  %v6726_v58 = vld [vmem:[%s9120_s8 + $0x4a4] ss:$28 sps:$4 sm:$0xff]  }
 0x65c   :  { %4793 = vmatprep.subr.bf16.mxu0 %v6669_v59  ;;  %4875 = vmatprep.subr.bf16.mxu1 %v6672_v60  ;;  %v6721_v59 = vld [vmem:[%s9120_s8 + $0x498] ss:$28 sps:$4 sm:$0xff]   ;;  %v6724_v60 = vld [vmem:[%s9120_s8 + $0x4a0] ss:$28 sps:$4 sm:$0xff]  }
 0x65f   :  { %4794 = vmatpush1.bf16.msra.mxu0 %v6667_v61  ;;  %4876 = vmatpush1.bf16.msra.mxu1 %v6670_v62  ;;  %v6729_v61 = vld [vmem:[%s9120_s8 + $0x4d4] ss:$28 sps:$4 sm:$0xff]   ;;  %v6732_v62 = vld [vmem:[%s9120_s8 + $0x4dc] ss:$28 sps:$4 sm:$0xff]  }
 0x660   :  { %4795 = vmatprep.subr.bf16.mxu0 %v6675_v63  ;;  %4877 = vmatprep.subr.bf16.mxu1 %v6678_v0  ;;  %v6727_v63 = vld [vmem:[%s9120_s8 + $0x4d0] ss:$28 sps:$4 sm:$0xff]   ;;  %v6730_v0 = vld [vmem:[%s9120_s8 + $0x4d8] ss:$28 sps:$4 sm:$0xff]  }
 0x663   :  { %4796 = vmatpush1.bf16.msra.mxu0 %v6673_v2  ;;  %4878 = vmatpush1.bf16.msra.mxu1 %v6676_v3  ;;  %v6735_v2 = vld [vmem:[%s9120_s8 + $0x50c] ss:$28 sps:$4 sm:$0xff]   ;;  %v6738_v3 = vld [vmem:[%s9120_s8 + $0x514] ss:$28 sps:$4 sm:$0xff]  }
 0x664   :  { %4797 = vmatprep.subr.bf16.mxu0 %v6681_v4  ;;  %4879 = vmatprep.subr.bf16.mxu1 %v6684_v5  ;;  %v6733_v4 = vld [vmem:[%s9120_s8 + $0x508] ss:$28 sps:$4 sm:$0xff]   ;;  %v6736_v5 = vld [vmem:[%s9120_s8 + $0x510] ss:$28 sps:$4 sm:$0xff]  }
 0x667   :  { %4798 = vmatpush1.bf16.msra.mxu0 %v6679_v6  ;;  %4880 = vmatpush1.bf16.msra.mxu1 %v6682_v7  ;;  %v6741_v6 = vld [vmem:[%s9120_s8 + $0x544] ss:$28 sps:$4 sm:$0xff]   ;;  %v6744_v7 = vld [vmem:[%s9120_s8 + $0x54c] ss:$28 sps:$4 sm:$0xff]  }
 0x668   :  { %4799 = vmatprep.subr.bf16.mxu0 %v6687_v8  ;;  %4881 = vmatprep.subr.bf16.mxu1 %v6690_v9  ;;  %v6739_v8 = vld [vmem:[%s9120_s8 + $0x540] ss:$28 sps:$4 sm:$0xff]   ;;  %v6742_v9 = vld [vmem:[%s9120_s8 + $0x548] ss:$28 sps:$4 sm:$0xff]  }
 0x66b   :  { %4800 = vmatpush1.bf16.msra.mxu0 %v6685_v10  ;;  %4882 = vmatpush1.bf16.msra.mxu1 %v6688_v11  ;;  %v6747_v10 = vld [vmem:[%s9120_s8 + $0x57c] ss:$28 sps:$4 sm:$0xff]   ;;  %v6750_v11 = vld [vmem:[%s9120_s8 + $0x584] ss:$28 sps:$4 sm:$0xff]  }
 0x66c   :  { %4810 = vmatprep.subr.bf16.mxu0 %v6693_v12  ;;  %4892 = vmatprep.subr.bf16.mxu1 %v6696_v13  ;;  %v6745_v12 = vld [vmem:[%s9120_s8 + $0x578] ss:$28 sps:$4 sm:$0xff]   ;;  %v6748_v13 = vld [vmem:[%s9120_s8 + $0x580] ss:$28 sps:$4 sm:$0xff]  }
 0x701   :  { %v3268_v20 = vpop.f32.mrb[8].mxu0  ;;  %v8572_v21 = vpop.f32.mrb[24].mxu1 }
 0x702   :  { %v3269_v22 = vadd.f32 %v3268_v20, %v2897_v18  ;;  %v3270_v23 = vpop.f32.mrb[9].mxu0  ;;  %v3311_v24 = vpop.f32.mrb[25].mxu1  ;;  %v6753_v18 = vld [vmem:[%s9120_s8 + $0x5b4] ss:$28 sps:$4 sm:$0xff]  }
 0x703   :  { %v3271_v25 = vadd.f32 %v3270_v23, %v2901_v19  ;;  %v3312_v26 = vadd.f32 %v3311_v24, %v2909_v16  ;;  %v3272_v27 = vpop.f32.mrb[10].mxu0  ;;  %v3313_v28 = vpop.f32.mrb[26].mxu1  ;;  %v6756_v19 = vld [vmem:[%s9120_s8 + $0x5bc] ss:$28 sps:$4 sm:$0xff]   ;;  %v6751_v16 = vld [vmem:[%s9120_s8 + $0x5b0] ss:$28 sps:$4 sm:$0xff]  }
 0x704   :  { %v3316_v29 = vmax.f32 %v3269_v22, 0.0  ;;  %v3273_v30 = vpop.f32.mrb[11].mxu0  ;;  %v3314_v31 = vpop.f32.mrb[27].mxu1  ;;  %v6754_v20 = vld [vmem:[%s9120_s8 + $0x5b8] ss:$28 sps:$4 sm:$0xff]  }
 0x705   :  { %v3317_v32 = vmax.f32 %v3271_v25, 0.0  ;;  %v3319_v1 = vmax.f32 %v3312_v26, 0.0  ;;  %v6759_v22 = vld [vmem:[%s9120_s8 + $0x5ec] ss:$28 sps:$4 sm:$0xff]   ;;  %v6762_v23 = vld [vmem:[%s9120_s8 + $0x5f4] ss:$28 sps:$4 sm:$0xff]  }
 0x706   :  { %v8582_v39 = vpack.c.bf16 %v3316_v29, %v3316_v29  ;;  %v6757_v24 = vld [vmem:[%s9120_s8 + $0x5e8] ss:$28 sps:$4 sm:$0xff]   ;;  %v6760_v25 = vld [vmem:[%s9120_s8 + $0x5f0] ss:$28 sps:$4 sm:$0xff]   ;;  %v6763_v28 = vld [vmem:[%s9120_s8 + $0x620] ss:$28 sps:$4 sm:$0xff]  }
 0x707   :  { %v8574_v33 = vpack.c.bf16 %v3317_v32, %v3317_v32  ;;  %v8592_v42 = vpack.c.bf16 %v3319_v1, %v3319_v1  ;;  %v6765_v26 = vld [vmem:[%s9120_s8 + $0x624] ss:$28 sps:$4 sm:$0xff]   ;;  %v6768_v27 = vld [vmem:[%s9120_s8 + $0x62c] ss:$28 sps:$4 sm:$0xff]   ;;  %v6771_v30 = vld [vmem:[%s9120_s8 + $0x65c] ss:$28 sps:$4 sm:$0xff]  }
 0x708   :  { %v6766_v29 = vld [vmem:[%s9120_s8 + $0x628] ss:$28 sps:$4 sm:$0xff]   ;;  %v6769_v32 = vld [vmem:[%s9120_s8 + $0x658] ss:$28 sps:$4 sm:$0xff]   ;;  %v6772_v1 = vld [vmem:[%s9120_s8 + $0x660] ss:$28 sps:$4 sm:$0xff]  }
 0x709   :  { %4801 = vmatprep.mubr.bf16.mxu0 %v8574_v33  ;;  %4883 = vmatprep.mubr.bf16.mxu1 %v8574_v33  ;;  %v6774_v31 = vld [vmem:[%s9120_s8 + $0x664] ss:$28 sps:$4 sm:$0xff]  }
 0x70a   :  { %4802 = vmatmul.mubr.bf16.vlgmr.msra.gmra.mrb[12].mxu0 %v8582_v39  ;;  %4884 = vmatmul.mubr.bf16.vlgmr.msra.gmra.mrb[28].mxu1 %v8582_v39 }
 0x70b   :  { %4811 = vmatpush1.bf16.msra.mxu0 %v6691_v36  ;;  %4893 = vmatpush1.bf16.msra.mxu1 %v6694_v38  ;;  %v2905_v36 = vrot.slane %v8564_v14, %v7996_v15  ;;  %v6777_v38 = vld [vmem:[%s9120_s8 + $0x694] ss:$28 sps:$4 sm:$0xff]  }
 0x70c   :  { %4842 = vmatprep.mubr.bf16.mxu0 %v8592_v42  ;;  %4924 = vmatprep.mubr.bf16.mxu1 %v8592_v42  ;;  %v6778_v14 = vld [vmem:[%s9120_s8 + $0x698] ss:$28 sps:$4 sm:$0xff]  }
 0x70d   :  { %4812 = vmatprep.subr.bf16.mxu0 %v6699_v40  ;;  %4894 = vmatprep.subr.bf16.mxu1 %v6702_v41  ;;  %v6780_v40 = vld [vmem:[%s9120_s8 + $0x69c] ss:$28 sps:$4 sm:$0xff]   ;;  %v6775_v41 = vld [vmem:[%s9120_s8 + $0x690] ss:$28 sps:$4 sm:$0xff]  }
 0x70f   :  { %4813 = vmatpush1.bf16.msra.mxu0 %v6697_v43  ;;  %4895 = vmatpush1.bf16.msra.mxu1 %v6700_v44  ;;  %v3310_v43 = vadd.f32 %v8572_v21, %v2905_v36  ;;  %v6783_v44 = vld [vmem:[%s9120_s8 + $0x6cc] ss:$28 sps:$4 sm:$0xff]   ;;  %v6845_v36 = vld [vmem:[%s9120_s8 + $0x600] ss:$28 sps:$4 sm:$0xff]  }
 0x710   :  { %4814 = vmatprep.subr.bf16.mxu0 %v6705_v45  ;;  %4896 = vmatprep.subr.bf16.mxu1 %v6708_v46  ;;  %v6786_v45 = vld [vmem:[%s9120_s8 + $0x6d4] ss:$28 sps:$4 sm:$0xff]   ;;  %v6781_v46 = vld [vmem:[%s9120_s8 + $0x6c8] ss:$28 sps:$4 sm:$0xff]  }
 0x711   :  { %v6784_v21 = vld [vmem:[%s9120_s8 + $0x6d0] ss:$28 sps:$4 sm:$0xff]  }
 0x713   :  { %4815 = vmatpush1.bf16.msra.mxu0 %v6703_v47  ;;  %4897 = vmatpush1.bf16.msra.mxu1 %v6706_v48  ;;  %v3318_v47 = vmax.f32 %v3310_v43, 0.0  ;;  %v6789_v48 = vld [vmem:[%s9120_s8 + $0x14] ss:$28 sps:$4 sm:$0xff]  }
 0x714   :  { %4816 = vmatprep.subr.bf16.mxu0 %v6711_v49  ;;  %4898 = vmatprep.subr.bf16.mxu1 %v6714_v50  ;;  %v6790_v49 = vld [vmem:[%s9120_s8 + $0x1d8] ss:$28 sps:$4 sm:$0xff]   ;;  %v6787_v50 = vld [vmem:[%s9120_s8 + $0x10] ss:$28 sps:$4 sm:$0xff]  }
 0x715   :  { %v6847_v43 = vld [vmem:[%s9120_s8 + $0x2b0] ss:$28 sps:$4 sm:$0xff]  }
 0x717   :  { %4817 = vmatpush1.bf16.msra.mxu0 %v6709_v51  ;;  %4899 = vmatpush1.bf16.msra.mxu1 %v6712_v52  ;;  %v8784_v51 = vpack.c.bf16 %v3318_v47, %v3318_v47  ;;  %v6791_v52 = vld [vmem:[%s9120_s8 + $0x18] ss:$28 sps:$4 sm:$0xff]   ;;  %v6856_v47 = vld [vmem:[%s9120_s8 + $0x4b0] ss:$28 sps:$4 sm:$0xff]  }
 0x718   :  { %4818 = vmatprep.subr.bf16.mxu0 %v6717_v53  ;;  %4900 = vmatprep.subr.bf16.mxu1 %v6720_v54  ;;  %v6794_v53 = vld [vmem:[%s9120_s8 + $0x4c] ss:$28 sps:$4 sm:$0xff]  }
 0x719   :  { %v6795_v54 = vld [vmem:[%s9120_s8 + $0x210] ss:$28 sps:$4 sm:$0xff]  }
 0x71b   :  { %4819 = vmatpush1.bf16.msra.mxu0 %v6715_v55  ;;  %4901 = vmatpush1.bf16.msra.mxu1 %v6718_v56  ;;  %v6792_v55 = vld [vmem:[%s9120_s8 + $0x48] ss:$28 sps:$4 sm:$0xff]   ;;  %v6796_v56 = vld [vmem:[%s9120_s8 + $0x50] ss:$28 sps:$4 sm:$0xff]  }
 0x71c   :  { %4820 = vmatprep.subr.bf16.mxu0 %v6723_v57  ;;  %4902 = vmatprep.subr.bf16.mxu1 %v6726_v58  ;;  %v6799_v57 = vld [vmem:[%s9120_s8 + $0x84] ss:$28 sps:$4 sm:$0xff]  }
 0x71d   :  { %v6800_v58 = vld [vmem:[%s9120_s8 + $0x248] ss:$28 sps:$4 sm:$0xff]  }
 0x71f   :  { %4821 = vmatpush1.bf16.msra.mxu0 %v6721_v59  ;;  %4903 = vmatpush1.bf16.msra.mxu1 %v6724_v60  ;;  %v6797_v59 = vld [vmem:[%s9120_s8 + $0x80] ss:$28 sps:$4 sm:$0xff]  }
 0x720   :  { %4822 = vmatprep.subr.bf16.mxu0 %v6729_v61  ;;  %4904 = vmatprep.subr.bf16.mxu1 %v6732_v62  ;;  %v6804_v60 = vld [vmem:[%s9120_s8 + $0xbc] ss:$28 sps:$4 sm:$0xff]  }
 0x721   :  { %v6805_v61 = vld [vmem:[%s9120_s8 + $0x280] ss:$28 sps:$4 sm:$0xff]   ;;  %v6802_v62 = vld [vmem:[%s9120_s8 + $0xb8] ss:$28 sps:$4 sm:$0xff]  }
 0x723   :  { %4823 = vmatpush1.bf16.msra.mxu0 %v6727_v63  ;;  %4905 = vmatpush1.bf16.msra.mxu1 %v6730_v0  ;;  %v6806_v63 = vld [vmem:[%s9120_s8 + $0xc0] ss:$28 sps:$4 sm:$0xff]   ;;  %v6809_v0 = vld [vmem:[%s9120_s8 + $0xf4] ss:$28 sps:$4 sm:$0xff]  }
 0x724   :  { %4824 = vmatprep.subr.bf16.mxu0 %v6735_v2  ;;  %4906 = vmatprep.subr.bf16.mxu1 %v6738_v3  ;;  %v6810_v2 = vld [vmem:[%s9120_s8 + $0x2b8] ss:$28 sps:$4 sm:$0xff]   ;;  %v6807_v3 = vld [vmem:[%s9120_s8 + $0xf0] ss:$28 sps:$4 sm:$0xff]  }
 0x727   :  { %4825 = vmatpush1.bf16.msra.mxu0 %v6733_v4  ;;  %4907 = vmatpush1.bf16.msra.mxu1 %v6736_v5  ;;  %v6811_v4 = vld [vmem:[%s9120_s8 + $0xf8] ss:$28 sps:$4 sm:$0xff]   ;;  %v6814_v5 = vld [vmem:[%s9120_s8 + $0x12c] ss:$28 sps:$4 sm:$0xff]  }
 0x728   :  { %4826 = vmatprep.subr.bf16.mxu0 %v6741_v6  ;;  %4908 = vmatprep.subr.bf16.mxu1 %v6744_v7  ;;  %v6815_v6 = vld [vmem:[%s9120_s8 + $0x2f0] ss:$28 sps:$4 sm:$0xff]   ;;  %v6812_v7 = vld [vmem:[%s9120_s8 + $0x128] ss:$28 sps:$4 sm:$0xff]  }
 0x72b   :  { %4827 = vmatpush1.bf16.msra.mxu0 %v6739_v8  ;;  %4909 = vmatpush1.bf16.msra.mxu1 %v6742_v9  ;;  %v6816_v8 = vld [vmem:[%s9120_s8 + $0x130] ss:$28 sps:$4 sm:$0xff]   ;;  %v6819_v9 = vld [vmem:[%s9120_s8 + $0x164] ss:$28 sps:$4 sm:$0xff]  }
 0x72c   :  { %4828 = vmatprep.subr.bf16.mxu0 %v6747_v10  ;;  %4910 = vmatprep.subr.bf16.mxu1 %v6750_v11  ;;  %v6820_v10 = vld [vmem:[%s9120_s8 + $0x328] ss:$28 sps:$4 sm:$0xff]   ;;  %v6817_v11 = vld [vmem:[%s9120_s8 + $0x160] ss:$28 sps:$4 sm:$0xff]  }
 0x72f   :  { %4829 = vmatpush1.bf16.msra.mxu0 %v6745_v12  ;;  %4911 = vmatpush1.bf16.msra.mxu1 %v6748_v13  ;;  %v6821_v12 = vld [vmem:[%s9120_s8 + $0x168] ss:$28 sps:$4 sm:$0xff]   ;;  %v6824_v13 = vld [vmem:[%s9120_s8 + $0x19c] ss:$28 sps:$4 sm:$0xff]  }
 0x730   :  { %4830 = vmatprep.subr.bf16.mxu0 %v6753_v18  ;;  %4912 = vmatprep.subr.bf16.mxu1 %v6756_v19  ;;  %v6825_v18 = vld [vmem:[%s9120_s8 + $0x360] ss:$28 sps:$4 sm:$0xff]   ;;  %v6822_v19 = vld [vmem:[%s9120_s8 + $0x198] ss:$28 sps:$4 sm:$0xff]  }
 0x733   :  { %4831 = vmatpush1.bf16.msra.mxu0 %v6751_v16  ;;  %4913 = vmatpush1.bf16.msra.mxu1 %v6754_v20  ;;  %v6826_v16 = vld [vmem:[%s9120_s8 + $0x1a0] ss:$28 sps:$4 sm:$0xff]   ;;  %v6829_v20 = vld [vmem:[%s9120_s8 + $0x1d4] ss:$28 sps:$4 sm:$0xff]  }
 0x734   :  { %4832 = vmatprep.subr.bf16.mxu0 %v6759_v22  ;;  %4914 = vmatprep.subr.bf16.mxu1 %v6762_v23  ;;  %v6830_v22 = vld [vmem:[%s9120_s8 + $0x558] ss:$28 sps:$4 sm:$0xff]   ;;  %v6827_v23 = vld [vmem:[%s9120_s8 + $0x1d0] ss:$28 sps:$4 sm:$0xff]  }
 0x737   :  { %4833 = vmatpush1.bf16.msra.mxu0 %v6757_v24  ;;  %4915 = vmatpush1.bf16.msra.mxu1 %v6760_v25  ;;  %v6831_v24 = vld [vmem:[%s9120_s8 + $0x398] ss:$28 sps:$4 sm:$0xff]   ;;  %v6834_v25 = vld [vmem:[%s9120_s8 + $0x20c] ss:$28 sps:$4 sm:$0xff]  }
 0x738   :  { %4834 = vmatprep.subr.bf16.mxu0 %v6765_v26  ;;  %4916 = vmatprep.subr.bf16.mxu1 %v6768_v27  ;;  %v6835_v26 = vld [vmem:[%s9120_s8 + $0x590] ss:$28 sps:$4 sm:$0xff]   ;;  %v6832_v27 = vld [vmem:[%s9120_s8 + $0x208] ss:$28 sps:$4 sm:$0xff]  }
 0x73b   :  { %4835 = vmatpush1.bf16.msra.mxu0 %v6763_v28  ;;  %4917 = vmatpush1.bf16.msra.mxu1 %v6766_v29  ;;  %v6836_v28 = vld [vmem:[%s9120_s8 + $0x3d0] ss:$28 sps:$4 sm:$0xff]   ;;  %v6839_v29 = vld [vmem:[%s9120_s8 + $0x244] ss:$28 sps:$4 sm:$0xff]  }
 0x73c   :  { %4836 = vmatprep.subr.bf16.mxu0 %v6771_v30  ;;  %4918 = vmatprep.subr.bf16.mxu1 %v6774_v31  ;;  %v6840_v30 = vld [vmem:[%s9120_s8 + $0x5c8] ss:$28 sps:$4 sm:$0xff]   ;;  %v6837_v31 = vld [vmem:[%s9120_s8 + $0x240] ss:$28 sps:$4 sm:$0xff]  }
 0x73f   :  { %4837 = vmatpush1.bf16.msra.mxu0 %v6769_v32  ;;  %4919 = vmatpush1.bf16.msra.mxu1 %v6772_v1  ;;  %v6841_v32 = vld [vmem:[%s9120_s8 + $0x408] ss:$28 sps:$4 sm:$0xff]   ;;  %v6844_v1 = vld [vmem:[%s9120_s8 + $0x27c] ss:$28 sps:$4 sm:$0xff]  }
 0x740   :  { %4838 = vmatprep.subr.bf16.mxu0 %v6777_v38  ;;  %4920 = vmatprep.subr.bf16.mxu1 %v6780_v40  ;;  %v6842_v38 = vld [vmem:[%s9120_s8 + $0x278] ss:$28 sps:$4 sm:$0xff]   ;;  %v6846_v40 = vld [vmem:[%s9120_s8 + $0x440] ss:$28 sps:$4 sm:$0xff]  }
 0x743   :  { %4839 = vmatpush1.bf16.msra.mxu0 %v6775_v41  ;;  %4921 = vmatpush1.bf16.msra.mxu1 %v6778_v14  ;;  %v6849_v41 = vld [vmem:[%s9120_s8 + $0x2b4] ss:$28 sps:$4 sm:$0xff]  }
 0x744   :  { %4840 = vmatprep.subr.bf16.mxu0 %v6783_v44  ;;  %4922 = vmatprep.subr.bf16.mxu1 %v6786_v45  ;;  %v6850_v14 = vld [vmem:[%s9120_s8 + $0x638] ss:$28 sps:$4 sm:$0xff]   ;;  %v6854_v45 = vld [vmem:[%s9120_s8 + $0x2ec] ss:$28 sps:$4 sm:$0xff]  }
 0x745   :  { %v6851_v44 = vld [vmem:[%s9120_s8 + $0x478] ss:$28 sps:$4 sm:$0xff]  }
 0x747   :  { %4841 = vmatpush1.bf16.msra.mxu0 %v6781_v46  ;;  %4923 = vmatpush1.bf16.msra.mxu1 %v6784_v21  ;;  %v6855_v46 = vld [vmem:[%s9120_s8 + $0x670] ss:$28 sps:$4 sm:$0xff]   ;;  %v6852_v21 = vld [vmem:[%s9120_s8 + $0x2e8] ss:$28 sps:$4 sm:$0xff]  }
 0x748   :  { %4933 = vmatprep.subr.bf16.mxu0 %v6789_v48  ;;  %5867 = vmatprep.subr.bf16.mxu1 %v6790_v49  ;;  %v6859_v48 = vld [vmem:[%s9120_s8 + $0x324] ss:$28 sps:$4 sm:$0xff]  }
 0x749   :  { %v6860_v49 = vld [vmem:[%s9120_s8 + $0x6a8] ss:$28 sps:$4 sm:$0xff]  }
 0x74a   :  { %4843 = vmatmul.mubr.bf16.vlgmr.msra.gmra.mrb[12].mxu0 %v8784_v51  ;;  %4925 = vmatmul.mubr.bf16.vlgmr.msra.gmra.mrb[28].mxu1 %v8784_v51 }
 0x74b   :  { %4934 = vmatpush1.bf16.msra.mxu0 %v6787_v50  ;;  %4965 = vmatprep.mubr.bf16.mxu0 %v8574_v33  ;;  %v6857_v50 = vld [vmem:[%s9120_s8 + $0x320] ss:$28 sps:$4 sm:$0xff]  }
 0x74c   :  { %5868 = vmatpush3.bf16.msra.mxu1 %v6791_v52  ;;  %5047 = vmatprep.mubr.bf16.mxu1 %v8574_v33  ;;  %v6801_v33 = vld [vmem:[%s9120_s8 + $0x88] ss:$28 sps:$4 sm:$0xff]  }
 0x74d   :  { %4935 = vmatprep.subr.bf16.mxu0 %v6794_v53  ;;  %5869 = vmatprep.subr.bf16.mxu1 %v6795_v54  ;;  %v6861_v52 = vld [vmem:[%s9120_s8 + $0x4e8] ss:$28 sps:$4 sm:$0xff]   ;;  %v6864_v53 = vld [vmem:[%s9120_s8 + $0x35c] ss:$28 sps:$4 sm:$0xff]  }
 0x74e   :  { %v6865_v54 = vld [vmem:[%s9120_s8 + $0x6e0] ss:$28 sps:$4 sm:$0xff]  }
 0x74f   :  { %4936 = vmatpush1.bf16.msra.mxu0 %v6792_v55  ;;  %v6862_v55 = vld [vmem:[%s9120_s8 + $0x358] ss:$28 sps:$4 sm:$0xff]  }
 0x750   :  { %5870 = vmatpush3.bf16.msra.mxu1 %v6796_v56  ;;  %4937 = vmatprep.subr.bf16.mxu0 %v6799_v57  ;;  %v6866_v56 = vld [vmem:[%s9120_s8 + $0x520] ss:$28 sps:$4 sm:$0xff]   ;;  %v6869_v57 = vld [vmem:[%s9120_s8 + $0x394] ss:$28 sps:$4 sm:$0xff]  }
 0x751   :  { %5871 = vmatprep.subr.bf16.mxu1 %v6800_v58  ;;  %v6867_v58 = vld [vmem:[%s9120_s8 + $0x390] ss:$28 sps:$4 sm:$0xff]  }
 0x753   :  { %4938 = vmatpush1.bf16.msra.mxu0 %v6797_v59  ;;  %v6872_v59 = vld [vmem:[%s9120_s8 + $0x3cc] ss:$28 sps:$4 sm:$0xff]  }
 0x754   :  { %5872 = vmatpush3.bf16.msra.mxu1 %v6801_v33  ;;  %4939 = vmatprep.subr.bf16.mxu0 %v6804_v60  ;;  %v6870_v33 = vld [vmem:[%s9120_s8 + $0x3c8] ss:$28 sps:$4 sm:$0xff]  }
 0x755   :  { %5873 = vmatprep.subr.bf16.mxu1 %v6805_v61  ;;  %v6875_v60 = vld [vmem:[%s9120_s8 + $0x404] ss:$28 sps:$4 sm:$0xff]  }
 0x756   :  { %v6873_v61 = vld [vmem:[%s9120_s8 + $0x400] ss:$28 sps:$4 sm:$0xff]  }
 0x757   :  { %4940 = vmatpush1.bf16.msra.mxu0 %v6802_v62  ;;  %v6881_v62 = vld [vmem:[%s9120_s8 + $0x474] ss:$28 sps:$4 sm:$0xff]  }
 0x758   :  { %5874 = vmatpush3.bf16.msra.mxu1 %v6806_v63  ;;  %4941 = vmatprep.subr.bf16.mxu0 %v6809_v0  ;;  %v6879_v63 = vld [vmem:[%s9120_s8 + $0x470] ss:$28 sps:$4 sm:$0xff]  }
 0x759   :  { %5875 = vmatprep.subr.bf16.mxu1 %v6810_v2  ;;  %v6884_v0 = vld [vmem:[%s9120_s8 + $0x4ac] ss:$28 sps:$4 sm:$0xff]  }
 0x75a   :  { %v6882_v2 = vld [vmem:[%s9120_s8 + $0x4a8] ss:$28 sps:$4 sm:$0xff]  }
 0x75b   :  { %4942 = vmatpush1.bf16.msra.mxu0 %v6807_v3  ;;  %v6887_v3 = vld [vmem:[%s9120_s8 + $0x4e4] ss:$28 sps:$4 sm:$0xff]  }
 0x75c   :  { %5876 = vmatpush3.bf16.msra.mxu1 %v6811_v4  ;;  %4943 = vmatprep.subr.bf16.mxu0 %v6814_v5  ;;  %v6885_v4 = vld [vmem:[%s9120_s8 + $0x4e0] ss:$28 sps:$4 sm:$0xff]  }
 0x75d   :  { %5877 = vmatprep.subr.bf16.mxu1 %v6815_v6  ;;  %v6890_v5 = vld [vmem:[%s9120_s8 + $0x51c] ss:$28 sps:$4 sm:$0xff]  }
 0x75e   :  { %v6888_v6 = vld [vmem:[%s9120_s8 + $0x518] ss:$28 sps:$4 sm:$0xff]  }
 0x75f   :  { %4944 = vmatpush1.bf16.msra.mxu0 %v6812_v7  ;;  %v6893_v7 = vld [vmem:[%s9120_s8 + $0x554] ss:$28 sps:$4 sm:$0xff]  }
 0x760   :  { %5878 = vmatpush3.bf16.msra.mxu1 %v6816_v8  ;;  %4945 = vmatprep.subr.bf16.mxu0 %v6819_v9  ;;  %v6891_v8 = vld [vmem:[%s9120_s8 + $0x550] ss:$28 sps:$4 sm:$0xff]  }
 0x761   :  { %5879 = vmatprep.subr.bf16.mxu1 %v6820_v10  ;;  %v6896_v9 = vld [vmem:[%s9120_s8 + $0x58c] ss:$28 sps:$4 sm:$0xff]  }
 0x762   :  { %v6894_v10 = vld [vmem:[%s9120_s8 + $0x588] ss:$28 sps:$4 sm:$0xff]  }
 0x763   :  { %4946 = vmatpush1.bf16.msra.mxu0 %v6817_v11  ;;  %v6899_v11 = vld [vmem:[%s9120_s8 + $0x5c4] ss:$28 sps:$4 sm:$0xff]  }
 0x764   :  { %5880 = vmatpush3.bf16.msra.mxu1 %v6821_v12  ;;  %4947 = vmatprep.subr.bf16.mxu0 %v6824_v13  ;;  %v6897_v12 = vld [vmem:[%s9120_s8 + $0x5c0] ss:$28 sps:$4 sm:$0xff]  }
 0x765   :  { %5881 = vmatprep.subr.bf16.mxu1 %v6825_v18  ;;  %v6902_v13 = vld [vmem:[%s9120_s8 + $0x5fc] ss:$28 sps:$4 sm:$0xff]  }
 0x766   :  { %v6900_v18 = vld [vmem:[%s9120_s8 + $0x5f8] ss:$28 sps:$4 sm:$0xff]  }
 0x767   :  { %4948 = vmatpush1.bf16.msra.mxu0 %v6822_v19  ;;  %v6905_v19 = vld [vmem:[%s9120_s8 + $0x634] ss:$28 sps:$4 sm:$0xff]  }
 0x768   :  { %5882 = vmatpush3.bf16.msra.mxu1 %v6826_v16  ;;  %4949 = vmatprep.subr.bf16.mxu0 %v6829_v20  ;;  %v6903_v16 = vld [vmem:[%s9120_s8 + $0x630] ss:$28 sps:$4 sm:$0xff]  }
 0x769   :  { %5889 = vmatprep.subr.bf16.mxu1 %v6830_v22  ;;  %v6908_v20 = vld [vmem:[%s9120_s8 + $0x66c] ss:$28 sps:$4 sm:$0xff]  }
 0x76a   :  { %v6906_v22 = vld [vmem:[%s9120_s8 + $0x668] ss:$28 sps:$4 sm:$0xff]  }
 0x76b   :  { %5048 = vmatmul.mubr.bf16.vlgmr.msra.gmra.mrb[32].mxu1 %v8582_v39  ;;  %4950 = vmatpush1.bf16.msra.mxu0 %v6827_v23  ;;  %v6911_v23 = vld [vmem:[%s9120_s8 + $0x6a4] ss:$28 sps:$4 sm:$0xff]  }
 0x76c   :  { %5890 = vmatpush3.bf16.msra.mxu1 %v6831_v24  ;;  %5087 = vmatprep.mubr.bf16.mxu1 %v8592_v42  ;;  %v6909_v24 = vld [vmem:[%s9120_s8 + $0x6a0] ss:$28 sps:$4 sm:$0xff]  }
 0x76d   :  { %4951 = vmatprep.subr.bf16.mxu0 %v6834_v25  ;;  %5891 = vmatprep.subr.bf16.mxu1 %v6835_v26  ;;  %v6914_v25 = vld [vmem:[%s9120_s8 + $0x6dc] ss:$28 sps:$4 sm:$0xff]  }
 0x76e   :  { %v6912_v26 = vld [vmem:[%s9120_s8 + $0x6d8] ss:$28 sps:$4 sm:$0xff]  }
 0x76f   :  { %4952 = vmatpush1.bf16.msra.mxu0 %v6832_v27  ;;  %v9078_v27 = vld [vmem:[%s9123_s16] sm:$0xff] }
 0x770   :  { %5892 = vmatpush3.bf16.msra.mxu1 %v6836_v28  ;;  %4953 = vmatprep.subr.bf16.mxu0 %v6839_v29  ;;  %v3585_v28 = vrot.slane %v9078_v27, %v7901_v35  ;;  %v3593_v29 = vrot.slane %v9078_v27, %v7996_v15 }
 0x771   :  { %5893 = vmatprep.subr.bf16.mxu1 %v6840_v30  ;;  %v3589_v30 = vrot.slane %v9078_v27, %v7909_v37 }
 0x773   :  { %4954 = vmatpush1.bf16.msra.mxu0 %v6837_v31  ;;  %v3597_v31 = vrot.slane %v9078_v27, %v7999_v17 }
 0x774   :  { %5894 = vmatpush3.bf16.msra.mxu1 %v6841_v32  ;;  %4955 = vmatprep.subr.bf16.mxu0 %v6844_v1 }
 0x775   :  { %5895 = vmatprep.subr.bf16.mxu1 %v6845_v36 }
 0x777   :  { %4956 = vmatpush1.bf16.msra.mxu0 %v6842_v38 }
 0x778   :  { %5896 = vmatpush3.bf16.msra.mxu1 %v6846_v40  ;;  %4957 = vmatprep.subr.bf16.mxu0 %v6849_v41 }
 0x779   :  { %5897 = vmatprep.subr.bf16.mxu1 %v6850_v14 }
 0x77b   :  { %4958 = vmatpush1.bf16.msra.mxu0 %v6847_v43 }
 0x77c   :  { %5898 = vmatpush3.bf16.msra.mxu1 %v6851_v44  ;;  %4959 = vmatprep.subr.bf16.mxu0 %v6854_v45 }
 0x77d   :  { %5899 = vmatprep.subr.bf16.mxu1 %v6855_v46 }
 0x77f   :  { %4960 = vmatpush1.bf16.msra.mxu0 %v6852_v21 }
 0x780   :  { %5900 = vmatpush3.bf16.msra.mxu1 %v6856_v47  ;;  %4961 = vmatprep.subr.bf16.mxu0 %v6859_v48 }
 0x781   :  { %5901 = vmatprep.subr.bf16.mxu1 %v6860_v49 }
 0x783   :  { %4962 = vmatpush1.bf16.msra.mxu0 %v6857_v50 }
 0x784   :  { %5902 = vmatpush3.bf16.msra.mxu1 %v6861_v52  ;;  %4963 = vmatprep.subr.bf16.mxu0 %v6864_v53 }
 0x785   :  { %5903 = vmatprep.subr.bf16.mxu1 %v6865_v54 }
 0x787   :  { %4964 = vmatpush1.bf16.msra.mxu0 %v6862_v55 }
 0x788   :  { %5904 = vmatpush3.bf16.msra.mxu1 %v6866_v56  ;;  %4974 = vmatprep.subr.bf16.mxu0 %v6869_v57 }
 0x78a   :  { %4966 = vmatmul.mubr.bf16.vlgmr.msra.gmra.mrb[16].mxu0 %v8582_v39  ;;  %v6878_v39 = vld [vmem:[%s9120_s8 + $0x43c] ss:$28 sps:$4 sm:$0xff]  }
 0x78b   :  { %5088 = vmatmul.mubr.bf16.vlgmr.msra.gmra.mrb[36].mxu1 %v8784_v51  ;;  %4975 = vmatpush1.bf16.msra.mxu0 %v6867_v58 }
 0x78c   :  { %5006 = vmatprep.mubr.bf16.mxu0 %v8592_v42  ;;  %4976 = vmatprep.subr.bf16.mxu0 %v6872_v59  ;;  %v6876_v42 = vld [vmem:[%s9120_s8 + $0x438] ss:$28 sps:$4 sm:$0xff]  }
 0x78f   :  { %4977 = vmatpush1.bf16.msra.mxu0 %v6870_v33 }
 0x790   :  { %4978 = vmatprep.subr.bf16.mxu0 %v6875_v60 }
 0x793   :  { %4979 = vmatpush1.bf16.msra.mxu0 %v6873_v61 }
 0x794   :  { %4980 = vmatprep.subr.bf16.mxu0 %v6878_v39 }
 0x797   :  { %4981 = vmatpush1.bf16.msra.mxu0 %v6876_v42 }
 0x798   :  { %4982 = vmatprep.subr.bf16.mxu0 %v6881_v62 }
 0x79b   :  { %4983 = vmatpush1.bf16.msra.mxu0 %v6879_v63  ;;  %v3608_v63 = vsub.s32 6, %v7898_v34 }
 0x79c   :  { %4984 = vmatprep.subr.bf16.mxu0 %v6884_v0 }
 0x79d   :  { %v3609_v0 = vrot.slane %v9078_v27, %v3608_v63 }
 0x79f   :  { %4985 = vmatpush1.bf16.msra.mxu0 %v6882_v2 }
 0x7a0   :  { %4986 = vmatprep.subr.bf16.mxu0 %v6887_v3 }
 0x7a3   :  { %4987 = vmatpush1.bf16.msra.mxu0 %v6885_v4 }
 0x7a4   :  { %4988 = vmatprep.subr.bf16.mxu0 %v6890_v5 }
 0x7a7   :  { %4989 = vmatpush1.bf16.msra.mxu0 %v6888_v6 }
 0x7a8   :  { %4990 = vmatprep.subr.bf16.mxu0 %v6893_v7 }
 0x7ab   :  { %4991 = vmatpush1.bf16.msra.mxu0 %v6891_v8 }
 0x7ac   :  { %4992 = vmatprep.subr.bf16.mxu0 %v6896_v9 }
 0x7af   :  { %4993 = vmatpush1.bf16.msra.mxu0 %v6894_v10 }
 0x7b0   :  { %4994 = vmatprep.subr.bf16.mxu0 %v6899_v11 }
 0x7b3   :  { %4995 = vmatpush1.bf16.msra.mxu0 %v6897_v12 }
 0x7b4   :  { %4996 = vmatprep.subr.bf16.mxu0 %v6902_v13 }
 0x7b7   :  { %4997 = vmatpush1.bf16.msra.mxu0 %v6900_v18  ;;  %v3600_v18 = vsub.s32 4, %v7898_v34 }
 0x7b8   :  { %4998 = vmatprep.subr.bf16.mxu0 %v6905_v19  ;;  %v3604_v19 = vsub.s32 5, %v7898_v34 }
 0x7bb   :  { %4999 = vmatpush1.bf16.msra.mxu0 %v6903_v16  ;;  %v3601_v16 = vrot.slane %v9078_v27, %v3600_v18 }
 0x7bc   :  { %5000 = vmatprep.subr.bf16.mxu0 %v6908_v20  ;;  %v3605_v20 = vrot.slane %v9078_v27, %v3604_v19 }
 0x7bf   :  { %5001 = vmatpush1.bf16.msra.mxu0 %v6906_v22 }
 0x7c0   :  { %5002 = vmatprep.subr.bf16.mxu0 %v6911_v23 }
 0x7c3   :  { %5003 = vmatpush1.bf16.msra.mxu0 %v6909_v24 }
 0x7c4   :  { %5004 = vmatprep.subr.bf16.mxu0 %v6914_v25 }
 0x7c7   :  { %5005 = vmatpush1.bf16.msra.mxu0 %v6912_v26 }
 0x7ca   :  { %5007 = vmatmul.mubr.bf16.vlgmr.msra.gmra.mrb[16].mxu0 %v8784_v51 }
 0x81d   :  { %v4844_v32 = vpop.f32.mrb[12].mxu0  ;;  %v4926_v1 = vpop.f32.mrb[28].mxu1 }
 0x81e   :  { %v5959_v51 = vadd.f32 %v4844_v32, %v3585_v28  ;;  %v5961_v36 = vadd.f32 %v4926_v1, %v3593_v29  ;;  %v4846_v38 = vpop.f32.mrb[13].mxu0  ;;  %v4928_v40 = vpop.f32.mrb[29].mxu1 }
 0x81f   :  { %v5960_v41 = vadd.f32 %v4846_v38, %v3589_v30  ;;  %v5962_v14 = vadd.f32 %v4928_v40, %v3597_v31  ;;  %v4848_v43 = vpop.f32.mrb[14].mxu0  ;;  %v4930_v44 = vpop.f32.mrb[30].mxu1 }
 0x820   :  { %v5812_v35 = vmul.f32 -1.442695, %v5959_v51  ;;  %v5814_v45 = vmul.f32 -1.442695, %v5961_v36  ;;  %v4849_v46 = vpop.f32.mrb[15].mxu0  ;;  %v4931_v15 = vpop.f32.mrb[31].mxu1 }
 0x821   :  { %v5813_v21 = vmul.f32 -1.442695, %v5960_v41  ;;  %v5815_v47 = vmul.f32 -1.442695, %v5962_v14 }
 0x822   :  { %6915 = vpow2.f32 %v5812_v35 }
 0x823   :  { %6917 = vpow2.f32 %v5814_v45 }
 0x824   :  { %6919 = vpow2.f32 %v5813_v21 }
 0x825   :  { %6921 = vpow2.f32 %v5815_v47 }
 0x82c   :  { %v6916_v37 = vpop.eup %6915 }
 0x82d   :  { %v6918_v17 = vpop.eup %6917  ;;  %v5116_v48 = vadd.f32 1.0, %v6916_v37 }
 0x82e   :  { %v6920_v49 = vpop.eup %6919  ;;  %v5118_v50 = vadd.f32 1.0, %v6918_v17 }
 0x82f   :  { %v6922_v52 = vpop.eup %6921  ;;  %6923 = vrcp.f32 %v5116_v48  ;;  %v5117_v53 = vadd.f32 1.0, %v6920_v49 }
 0x830   :  { %6925 = vrcp.f32 %v5118_v50  ;;  %v5119_v54 = vadd.f32 1.0, %v6922_v52 }
 0x831   :  { %6927 = vrcp.f32 %v5117_v53 }
 0x832   :  { %6929 = vrcp.f32 %v5119_v54 }
 0x839   :  { %v6924_v55 = vpop.eup %6923 }
 0x83a   :  { %v6926_v56 = vpop.eup %6925 }
 0x83b   :  { %v6928_v57 = vpop.eup %6927 }
 0x83c   :  { %v6930_v58 = vpop.eup %6929  ;;  %v5823_v59 = vpack.c.bf16 %v6928_v57, %v6924_v55 }
 0x83d   :  { %v5824_v33 = vpack.c.bf16 %v6930_v58, %v6926_v56 }
 0x83e   :  { %v5883_v60 = vpop.f32.mrb[32].mxu1  ;;  %5166 = vst [vmem:[%s9124_s17] sm:$0xff] %v5823_v59 }
 0x83f   :  { %v5884_v61 = vpop.f32.mrb[33].mxu1  ;;  %5167 = vst [vmem:[%s9124_s17 + $0x8] sm:$0xff] %v5824_v33 }
 0x840   :  { %v5885_v39 = vadd.f32 %v5884_v61, %v5883_v60  ;;  %v5886_v42 = vpop.f32.mrb[34].mxu1 }
 0x841   :  { %v5887_v62 = vpop.f32.mrb[35].mxu1 }
 0x842   :  { %v5050_v4 = vadd.f32 %v5885_v39, %v3609_v0 }
 0x85e   :  { %v5905_v2 = vpop.f32.mrb[36].mxu1 }
 0x85f   :  { %v5906_v3 = vpop.f32.mrb[37].mxu1 }
 0x860   :  { %v5907_v5 = vadd.f32 %v5906_v3, %v5905_v2  ;;  %v5908_v6 = vpop.f32.mrb[38].mxu1 }
 0x861   :  { %v5909_v7 = vpop.f32.mrb[39].mxu1 }
 0x862   :  { %v5090_v8 = vadd.f32 %v5907_v5, %v5050_v4 }
 0x864   :  { %v5818_v9 = vmul.f32 -1.442695, %v5090_v8 }
 0x866   :  { %6931 = vpow2.f32 %v5818_v9 }
 0x870   :  { %v6932_v10 = vpop.eup %6931 }
 0x871   :  { %v5122_v11 = vadd.f32 1.0, %v6932_v10 }
 0x873   :  { %6933 = vrcp.f32 %v5122_v11 }
 0x87d   :  { %v6934_v12 = vpop.eup %6933 }
 0x87e   :  { %v5826_v13 = vpack.c.bf16 %v6934_v12, %v6934_v12 }
 0x880   :  { %5169 = vst [vmem:[%s9124_s17 + $0x18] sm:$0xf] %v5826_v13 }
 0x89d   :  { %v5008_v22 = vpop.f32.mrb[16].mxu0 }
 0x89e   :  { %v5963_v23 = vadd.f32 %v5008_v22, %v3601_v16  ;;  %v5010_v24 = vpop.f32.mrb[17].mxu0 }
 0x89f   :  { %v5964_v25 = vadd.f32 %v5010_v24, %v3605_v20  ;;  %v5012_v26 = vpop.f32.mrb[18].mxu0 }
 0x8a0   :  { %v5816_v28 = vmul.f32 -1.442695, %v5963_v23  ;;  %v5013_v29 = vpop.f32.mrb[19].mxu0 }
 0x8a1   :  { %v5817_v30 = vmul.f32 -1.442695, %v5964_v25 }
 0x8a2   :  { %6935 = vpow2.f32 %v5816_v28 }
 0x8a3   :  { %6937 = vpow2.f32 %v5817_v30 }
 0x8ac   :  { %v6936_v31 = vpop.eup %6935 }
 0x8ad   :  { %v6938_v32 = vpop.eup %6937  ;;  %v5120_v1 = vadd.f32 1.0, %v6936_v31 }
 0x8ae   :  { %v5121_v51 = vadd.f32 1.0, %v6938_v32 }
 0x8af   :  { %6939 = vrcp.f32 %v5120_v1 }
 0x8b0   :  { %6941 = vrcp.f32 %v5121_v51 }
 0x8b9   :  { %v6940_v34 = vpop.eup %6939 }
 0x8ba   :  { %v6942_v36 = vpop.eup %6941 }
 0x8bb   :  { %v5825_v38 = vpack.c.bf16 %v6942_v36, %v6940_v34 }
 0x8bd   :  { %5168 = vst [vmem:[%s9124_s17 + $0x10] sm:$0xff] %v5825_v38 }

</bundles_post_ra>
